<compile_context>
chip_gen: v7x
topology: tpu7x:2x2x1
jax: 0.10.0
libtpu: 0.0.40
codegen_flags: <defaults>
</compile_context>

<pallas_src>
import numpy as np

import jax
import jax.numpy as jnp
from jax import lax
from jax.experimental import pallas as pl
from jax.experimental.pallas import tpu as pltpu

USE_BF16_MATMUL = True   # bf16 conv/scatter matmul operands, f32 accumulation
EPS = 1e-5               # nn.InstanceNorm2d default


# ----------------------------------------------------------------------------
# Static planning: per-conv-layer geometry for the fused kernel.
# ----------------------------------------------------------------------------
def _layer_plans(n_downsample, n_res, input_dim, dim, H, W):
    plans = []

    def add(cin, cout, k, stride, pad, Hin, Win, relu):
        Hp, Wp = Hin + 2 * pad, Win + 2 * pad
        Ho1, Wo1 = Hp - k + 1, Wp - k + 1                      # stride-1 output grid
        Ho, Wo = (Hp - k) // stride + 1, (Wp - k) // stride + 1
        plans.append(dict(cin=cin, cout=cout, k=k, stride=stride, pad=pad,
                          Hp=Hp, Wp=Wp, Ho=Ho, Wo=Wo,
                          L_full=(Ho1 - 1) * Wp + Wo1, relu=relu))
        return Ho, Wo

    h, w = H, W
    h, w = add(input_dim, dim, 7, 1, 3, h, w, True)            # stem
    d = dim
    for _ in range(n_downsample):
        h, w = add(d, 2 * d, 4, 2, 1, h, w, True)              # downsample
        d *= 2
    for _ in range(n_res):
        h, w = add(d, d, 3, 1, 1, h, w, True)                  # res conv 1
        h, w = add(d, d, 3, 1, 1, h, w, False)                 # res conv 2

    # scatter target = next layer's zero-padded grid; the last layer keeps its
    # own padding so the residual add and the final interior extraction align.
    for i, p in enumerate(plans):
        pad_dst = plans[i + 1]['pad'] if i + 1 < len(plans) else p['pad']
        p['pad_dst'] = pad_dst
        p['Hd'], p['Wd'] = p['Ho'] + 2 * pad_dst, p['Wo'] + 2 * pad_dst
        if i + 1 < len(plans):
            assert (p['Hd'], p['Wd']) == (plans[i + 1]['Hp'], plans[i + 1]['Wp'])
    return plans, d, h, w


def _scatter_and_mask(plan):
    """0/1 matrix folding stride selection + garbage-column drop + zero re-pad,
    plus the validity mask used for the InstanceNorm statistics."""
    Wp, L_full, s = plan['Wp'], plan['L_full'], plan['stride']
    Ho, Wo, Hd, Wd, pd = plan['Ho'], plan['Wo'], plan['Hd'], plan['Wd'], plan['pad_dst']
    T = np.zeros((L_full, Hd * Wd), np.float32)
    m = np.zeros((1, L_full), np.float32)
    for y in range(Ho):
        for x in range(Wo):
            src = (s * y) * Wp + (s * x)
            T[src, (pd + y) * Wd + (pd + x)] = 1.0
            m[0, src] = 1.0
    return T, m


def _pad_matrix(H, W, pad, Hp, Wp):
    """0/1 matrix embedding an un-padded [H*W] row into the zero-padded [Hp*Wp] grid."""
    P = np.zeros((H * W, Hp * Wp), np.float32)
    for y in range(H):
        for x in range(W):
            P[y * W + x, (pad + y) * Wp + (pad + x)] = 1.0
    return P


# ----------------------------------------------------------------------------
# Parameters (deterministic synthetic; shapes match the PyTorch module).
# ----------------------------------------------------------------------------
def init_content_encoder_params(key, n_downsample, n_res, input_dim, dim):
    specs = [(input_dim, dim, 7)]
    d = dim
    for _ in range(n_downsample):
        specs.append((d, 2 * d, 4))
        d *= 2
    for _ in range(n_res):
        specs.append((d, d, 3))
        specs.append((d, d, 3))
    params = []
    for kk, (cin, cout, k) in zip(jax.random.split(key, len(specs)), specs):
        kw_, kb_ = jax.random.split(kk)
        Wt = 0.05 * jax.random.normal(kw_, (cout, cin, k, k), dtype=jnp.float32)
        bt = 0.05 * jax.random.normal(kb_, (cout,), dtype=jnp.float32)
        params.append((Wt, bt))
    return params


# ----------------------------------------------------------------------------
# Fused forward builder.  `imgs_per_step` = images folded into one grid step.
# ----------------------------------------------------------------------------
def build_content_encoder(params, n_downsample, n_res, input_dim, dim, H, W,
                          imgs_per_step=1):
    B = int(imgs_per_step)
    plans, out_dim, Ho_f, Wo_f = _layer_plans(n_downsample, n_res, input_dim, dim, H, W)
    mm_dtype = jnp.bfloat16 if USE_BF16_MATMUL else jnp.float32

    n_pre = 1 + n_downsample
    res_first = {n_pre + 2 * r for r in range(n_res)}          # first conv of each ResBlock
    res_second = {n_pre + 2 * r + 1 for r in range(n_res)}     # second conv (residual add)

    # Pre-pack all constants ONCE (no per-forward transposes / relayouts).
    # NOTE: conv biases are intentionally dropped — InstanceNorm (no affine)
    # cancels any per-channel constant exactly.
    consts = []
    for plan, (Wt, _bt) in zip(plans, params):
        cout, cin, k = plan['cout'], plan['cin'], plan['k']
        # [Cout, Cin, kh, kw] -> [Cout, (i*k + j)*Cin + ci]   (tap-major, cin fastest)
        w2d = jnp.transpose(jnp.asarray(Wt), (0, 2, 3, 1)).reshape(cout, k * k * cin)
        T_np, m_np = _scatter_and_mask(plan)
        consts.append((w2d.astype(mm_dtype),
                       jnp.asarray(m_np),                       # f32 mask for stats
                       jnp.asarray(T_np).astype(mm_dtype)))     # 0/1 scatter, exact in bf16

    p0 = plans[0]
    P0_np = _pad_matrix(H, W, p0['pad'], p0['Hp'], p0['Wp'])    # input zero-pad fold
    last = plans[-1]
    E_np = np.zeros((last['Hd'] * last['Wd'], last['Ho'] * last['Wo']), np.float32)
    for y in range(last['Ho']):
        for x in range(last['Wo']):
            E_np[(last['pad_dst'] + y) * last['Wd'] + (last['pad_dst'] + x),
                 y * last['Wo'] + x] = 1.0

    flat_consts = ([jnp.asarray(P0_np).astype(mm_dtype)]
                   + [t for grp in consts for t in grp]
                   + [jnp.asarray(E_np)])                       # E stays f32: exact final values

    C0, HW = input_dim, H * W
    Cf, Lf = last['cout'], last['Ho'] * last['Wo']

    def kernel(*refs):
        x_ref, o_ref = refs[0], refs[-1]
        cref = refs[1:-1]
        p0_ref, e_ref = cref[0], cref[-1]
        lref = cref[1:-1]                                       # 3 refs per layer: w, m, T

        # Input zero-pad folded into the kernel: one 0/1 matmul per image; HBM
        # never sees a padded tensor and the wrapper does no jnp.pad.
        A = [jnp.dot(x_ref[b].astype(mm_dtype), p0_ref[...],
                     preferred_element_type=jnp.float32) for b in range(B)]   # [C0, Hp0*Wp0]
        R = [None] * B

        for idx, plan in enumerate(plans):
            w_ref, m_ref, T_ref = lref[3 * idx: 3 * idx + 3]
            if idx in res_first:
                R = list(A)                                     # padded residuals
            k = plan['k']
            Wp, L_full = plan['Wp'], plan['L_full']
            offs = [(t // k) * Wp + (t % k) for t in range(k * k)]

            # Fused conv: stack the k*k shifted slices along the contraction
            # axis and all B images along the free dim -> ONE MXU matmul
            # [cout, k*k*cin] x [k*k*cin, B*L_full], f32 accumulation.
            rhs = jnp.concatenate(
                [jnp.concatenate([a[:, o:o + L_full] for o in offs], axis=0)
                 for a in A], axis=1).astype(mm_dtype)
            acc = jnp.dot(w_ref[...], rhs, preferred_element_type=jnp.float32)

            # Fused InstanceNorm (+ReLU) epilogue per image (masked stats,
            # var = E[x^2] - mean^2 so the two lane reductions go back-to-back).
            m = m_ref[...]
            inv_n = 1.0 / float(plan['Ho'] * plan['Wo'])
            new_A = []
            for b in range(B):
                acc_b = acc[:, b * L_full:(b + 1) * L_full]
                am = acc_b * m
                mean = jnp.sum(am, axis=-1, keepdims=True) * inv_n
                ex2 = jnp.sum(am * acc_b, axis=-1, keepdims=True) * inv_n
                var = ex2 - mean * mean
                y = (acc_b - mean) * lax.rsqrt(var + EPS)
                if plan['relu']:
                    y = jnp.maximum(y, 0.0)
                # stride-select + drop garbage + zero re-pad: one bf16 0/1 matmul
                nb = jnp.dot(y.astype(mm_dtype), T_ref[...],
                             preferred_element_type=jnp.float32)
                if idx in res_second:
                    nb = nb + R[b]                              # ResBlock residual add
                new_A.append(nb)
            A = new_A

        # extract the un-padded interior of the final activation (f32, exact)
        for b in range(B):
            o_ref[b] = jnp.dot(A[b], e_ref[...], preferred_element_type=jnp.float32)

    in_specs = [pl.BlockSpec((B, C0, HW), lambda n: (n, 0, 0))]
    in_specs += [pl.BlockSpec(t.shape, lambda n: (0, 0)) for t in flat_consts]

    @jax.jit
    def forward(x):
        N = x.shape[0]
        assert N % B == 0, (N, B)
        xf = x.reshape(N, C0, HW).astype(jnp.float32)           # contiguous collapse, no pad
        out = pl.pallas_call(
            kernel,
            out_shape=jax.ShapeDtypeStruct((N, Cf, Lf), jnp.float32),
            grid=(N // B,),
            in_specs=in_specs,
            out_specs=pl.BlockSpec((B, Cf, Lf), lambda n: (n, 0, 0)),
            compiler_params=pltpu.CompilerParams(
                dimension_semantics=("parallel",)),
        )(xf, *flat_consts)
        return out.reshape(N, Cf, Ho_f, Wo_f)

    return forward, out_dim


# ----------------------------------------------------------------------------
# Pure-JAX reference (PyTorch semantics) for self-validation.
# ----------------------------------------------------------------------------
def reference_forward(x, params, n_downsample, n_res, match_dtype=None):
    """match_dtype=None  -> exact f32 PyTorch semantics (incl. conv bias).
    match_dtype=bf16     -> mirrors the kernel's rounding points (conv operands
    and inter-layer activations through bf16) for a tight numerical match."""
    def q(a):
        return a.astype(match_dtype).astype(jnp.float32) if match_dtype is not None else a

    def block(h, Wt, b, stride, pad, relu):
        out = lax.conv_general_dilated(
            q(h), q(Wt), window_strides=(stride, stride),
            padding=((pad, pad), (pad, pad)),
            dimension_numbers=("NCHW", "OIHW", "NCHW"),
            precision=lax.Precision.HIGHEST)
        out = out + b.reshape(1, -1, 1, 1)                      # bias kept here (IN cancels it)
        mean = jnp.mean(out, axis=(2, 3), keepdims=True)
        var = jnp.mean(jnp.square(out - mean), axis=(2, 3), keepdims=True)
        out = (out - mean) * lax.rsqrt(var + EPS)
        if relu:
            out = jnp.maximum(out, 0.0)
        return q(out)

    i = 0
    h = block(x, *params[i], 1, 3, True); i += 1
    for _ in range(n_downsample):
        h = block(h, *params[i], 2, 1, True); i += 1
    for _ in range(n_res):
        r = h
        h = block(h, *params[i], 1, 1, True); i += 1
        h = block(h, *params[i], 1, 1, False); i += 1
        h = h + r
    return h


if __name__ == "__main__":
    n_downsample, n_res = 2, 2
    input_dim, dim = 4, 8
    H = W = 16

    key = jax.random.PRNGKey(0)
    kp, kx1, kx2 = jax.random.split(key, 3)
    params = init_content_encoder_params(kp, n_downsample, n_res, input_dim, dim)
    match = jnp.bfloat16 if USE_BF16_MATMUL else None
    spatial_out = (H // (2 ** n_downsample), W // (2 ** n_downsample))

    # --- Case 1: batch=2, one image per grid step (grid=(2,): both v7x TCs busy) ---
    N1 = 2
    x1 = jax.random.normal(kx1, (N1, input_dim, H, W), dtype=jnp.float32)
    fwd1, output_dim = build_content_encoder(
        params, n_downsample, n_res, input_dim, dim, H, W, imgs_per_step=1)
    out1 = jax.block_until_ready(fwd1(x1))
    assert out1.shape == (N1, output_dim) + spatial_out, out1.shape
    assert bool(jnp.all(jnp.isfinite(out1)))
    err1 = float(jnp.max(jnp.abs(out1 - reference_forward(
        x1, params, n_downsample, n_res, match_dtype=match))))
    assert err1 < 2e-2, f"max abs err vs bf16-matched reference: {err1}"
    err1_f32 = float(jnp.max(jnp.abs(out1 - reference_forward(
        x1, params, n_downsample, n_res, match_dtype=None))))
    assert err1_f32 < 1e-1, f"max abs err vs f32 reference: {err1_f32}"

    # --- Case 2: batch=8, 4 images folded per grid step (grid stays (2,)) ---
    N2, B2 = 8, 4
    x2 = jax.random.normal(kx2, (N2, input_dim, H, W), dtype=jnp.float32)
    fwd2, _ = build_content_encoder(
        params, n_downsample, n_res, input_dim, dim, H, W, imgs_per_step=B2)
    out2 = jax.block_until_ready(fwd2(x2))
    assert out2.shape == (N2, output_dim) + spatial_out, out2.shape
    assert bool(jnp.all(jnp.isfinite(out2)))
    err2 = float(jnp.max(jnp.abs(out2 - reference_forward(
        x2, params, n_downsample, n_res, match_dtype=match))))
    assert err2 < 2e-2, f"max abs err vs bf16-matched reference (folded): {err2}"

    print("KERNEL_OK")
</pallas_src>

<mosaic_0001>
module attributes {stable_mosaic.version = 11 : i64} {
  func.func @kernel(%arg0: i32, %arg1: memref<1x4x256xf32, #tpu.memory_space<vmem>>, %arg2: memref<256x484xbf16, #tpu.memory_space<vmem>>, %arg3: memref<8x196xbf16, #tpu.memory_space<vmem>>, %arg4: memref<1x346xf32, #tpu.memory_space<vmem>>, %arg5: memref<346x324xbf16, #tpu.memory_space<vmem>>, %arg6: memref<16x128xbf16, #tpu.memory_space<vmem>>, %arg7: memref<1x267xf32, #tpu.memory_space<vmem>>, %arg8: memref<267x100xbf16, #tpu.memory_space<vmem>>, %arg9: memref<32x256xbf16, #tpu.memory_space<vmem>>, %arg10: memref<1x67xf32, #tpu.memory_space<vmem>>, %arg11: memref<67x36xbf16, #tpu.memory_space<vmem>>, %arg12: memref<32x288xbf16, #tpu.memory_space<vmem>>, %arg13: memref<1x22xf32, #tpu.memory_space<vmem>>, %arg14: memref<22x36xbf16, #tpu.memory_space<vmem>>, %arg15: memref<32x288xbf16, #tpu.memory_space<vmem>>, %arg16: memref<1x22xf32, #tpu.memory_space<vmem>>, %arg17: memref<22x36xbf16, #tpu.memory_space<vmem>>, %arg18: memref<32x288xbf16, #tpu.memory_space<vmem>>, %arg19: memref<1x22xf32, #tpu.memory_space<vmem>>, %arg20: memref<22x36xbf16, #tpu.memory_space<vmem>>, %arg21: memref<32x288xbf16, #tpu.memory_space<vmem>>, %arg22: memref<1x22xf32, #tpu.memory_space<vmem>>, %arg23: memref<22x36xbf16, #tpu.memory_space<vmem>>, %arg24: memref<36x16xf32, #tpu.memory_space<vmem>>, %arg25: memref<1x32x16xf32, #tpu.memory_space<vmem>>) attributes {dimension_semantics = [#tpu.dimension_semantics<parallel>], iteration_bounds = array<i64: 2>, scalar_prefetch = 0 : i64, scratch_operands = 0 : i64, tpu.core_type = #tpu.core_type<tc>, window_params = [{transform_indices = @transform_0, window_bounds = array<i64: 1, 4, 256>}, {pipeline_mode = #tpu.pipeline_mode<synchronous>, transform_indices = @transform_1, window_bounds = array<i64: 256, 484>}, {pipeline_mode = #tpu.pipeline_mode<synchronous>, transform_indices = @transform_2, window_bounds = array<i64: 8, 196>}, {pipeline_mode = #tpu.pipeline_mode<synchronous>, transform_indices = @transform_3, window_bounds = array<i64: 1, 346>}, {pipeline_mode = #tpu.pipeline_mode<synchronous>, transform_indices = @transform_4, window_bounds = array<i64: 346, 324>}, {pipeline_mode = #tpu.pipeline_mode<synchronous>, transform_indices = @transform_5, window_bounds = array<i64: 16, 128>}, {pipeline_mode = #tpu.pipeline_mode<synchronous>, transform_indices = @transform_6, window_bounds = array<i64: 1, 267>}, {pipeline_mode = #tpu.pipeline_mode<synchronous>, transform_indices = @transform_7, window_bounds = array<i64: 267, 100>}, {pipeline_mode = #tpu.pipeline_mode<synchronous>, transform_indices = @transform_8, window_bounds = array<i64: 32, 256>}, {pipeline_mode = #tpu.pipeline_mode<synchronous>, transform_indices = @transform_9, window_bounds = array<i64: 1, 67>}, {pipeline_mode = #tpu.pipeline_mode<synchronous>, transform_indices = @transform_10, window_bounds = array<i64: 67, 36>}, {pipeline_mode = #tpu.pipeline_mode<synchronous>, transform_indices = @transform_11, window_bounds = array<i64: 32, 288>}, {pipeline_mode = #tpu.pipeline_mode<synchronous>, transform_indices = @transform_12, window_bounds = array<i64: 1, 22>}, {pipeline_mode = #tpu.pipeline_mode<synchronous>, transform_indices = @transform_13, window_bounds = array<i64: 22, 36>}, {pipeline_mode = #tpu.pipeline_mode<synchronous>, transform_indices = @transform_14, window_bounds = array<i64: 32, 288>}, {pipeline_mode = #tpu.pipeline_mode<synchronous>, transform_indices = @transform_15, window_bounds = array<i64: 1, 22>}, {pipeline_mode = #tpu.pipeline_mode<synchronous>, transform_indices = @transform_16, window_bounds = array<i64: 22, 36>}, {pipeline_mode = #tpu.pipeline_mode<synchronous>, transform_indices = @transform_17, window_bounds = array<i64: 32, 288>}, {pipeline_mode = #tpu.pipeline_mode<synchronous>, transform_indices = @transform_18, window_bounds = array<i64: 1, 22>}, {pipeline_mode = #tpu.pipeline_mode<synchronous>, transform_indices = @transform_19, window_bounds = array<i64: 22, 36>}, {pipeline_mode = #tpu.pipeline_mode<synchronous>, transform_indices = @transform_20, window_bounds = array<i64: 32, 288>}, {pipeline_mode = #tpu.pipeline_mode<synchronous>, transform_indices = @transform_21, window_bounds = array<i64: 1, 22>}, {pipeline_mode = #tpu.pipeline_mode<synchronous>, transform_indices = @transform_22, window_bounds = array<i64: 22, 36>}, {pipeline_mode = #tpu.pipeline_mode<synchronous>, transform_indices = @transform_23, window_bounds = array<i64: 36, 16>}, {transform_indices = @transform_24, window_bounds = array<i64: 1, 32, 16>}]} {
    %c0 = arith.constant 0 : index
    %c0_0 = arith.constant 0 : index
    %c0_1 = arith.constant 0 : index
    %0 = vector.load %arg1[%c0, %c0_0, %c0_1] : memref<1x4x256xf32, #tpu.memory_space<vmem>>, vector<1x4x256xf32>
    %1 = vector.shape_cast %0 : vector<1x4x256xf32> to vector<4x256xf32>
    %2 = arith.truncf %1 : vector<4x256xf32> to vector<4x256xbf16>
    %c0_2 = arith.constant 0 : index
    %c0_3 = arith.constant 0 : index
    %3 = vector.load %arg2[%c0_2, %c0_3] : memref<256x484xbf16, #tpu.memory_space<vmem>>, vector<256x484xbf16>
    %cst = arith.constant dense<0.000000e+00> : vector<4x484xf32>
    %4 = tpu.matmul %2, %3, %cst {dimension_numbers = #tpu.dot_dimension_numbers<[1], [0], [0], [1], [0, 0, 1, 1], [], []>} : vector<4x256xbf16>, vector<256x484xbf16>, vector<4x484xf32> -> vector<4x484xf32>
    %5 = vector.extract_strided_slice %4 {offsets = [0, 0], sizes = [4, 346], strides = [1, 1]} : vector<4x484xf32> to vector<4x346xf32>
    %6 = vector.extract_strided_slice %4 {offsets = [0, 1], sizes = [4, 346], strides = [1, 1]} : vector<4x484xf32> to vector<4x346xf32>
    %7 = vector.extract_strided_slice %4 {offsets = [0, 2], sizes = [4, 346], strides = [1, 1]} : vector<4x484xf32> to vector<4x346xf32>
    %8 = vector.extract_strided_slice %4 {offsets = [0, 3], sizes = [4, 346], strides = [1, 1]} : vector<4x484xf32> to vector<4x346xf32>
    %9 = vector.extract_strided_slice %4 {offsets = [0, 4], sizes = [4, 346], strides = [1, 1]} : vector<4x484xf32> to vector<4x346xf32>
    %10 = vector.extract_strided_slice %4 {offsets = [0, 5], sizes = [4, 346], strides = [1, 1]} : vector<4x484xf32> to vector<4x346xf32>
    %11 = vector.extract_strided_slice %4 {offsets = [0, 6], sizes = [4, 346], strides = [1, 1]} : vector<4x484xf32> to vector<4x346xf32>
    %12 = vector.extract_strided_slice %4 {offsets = [0, 22], sizes = [4, 346], strides = [1, 1]} : vector<4x484xf32> to vector<4x346xf32>
    %13 = vector.extract_strided_slice %4 {offsets = [0, 23], sizes = [4, 346], strides = [1, 1]} : vector<4x484xf32> to vector<4x346xf32>
    %14 = vector.extract_strided_slice %4 {offsets = [0, 24], sizes = [4, 346], strides = [1, 1]} : vector<4x484xf32> to vector<4x346xf32>
    %15 = vector.extract_strided_slice %4 {offsets = [0, 25], sizes = [4, 346], strides = [1, 1]} : vector<4x484xf32> to vector<4x346xf32>
    %16 = vector.extract_strided_slice %4 {offsets = [0, 26], sizes = [4, 346], strides = [1, 1]} : vector<4x484xf32> to vector<4x346xf32>
    %17 = vector.extract_strided_slice %4 {offsets = [0, 27], sizes = [4, 346], strides = [1, 1]} : vector<4x484xf32> to vector<4x346xf32>
    %18 = vector.extract_strided_slice %4 {offsets = [0, 28], sizes = [4, 346], strides = [1, 1]} : vector<4x484xf32> to vector<4x346xf32>
    %19 = vector.extract_strided_slice %4 {offsets = [0, 44], sizes = [4, 346], strides = [1, 1]} : vector<4x484xf32> to vector<4x346xf32>
    %20 = vector.extract_strided_slice %4 {offsets = [0, 45], sizes = [4, 346], strides = [1, 1]} : vector<4x484xf32> to vector<4x346xf32>
    %21 = vector.extract_strided_slice %4 {offsets = [0, 46], sizes = [4, 346], strides = [1, 1]} : vector<4x484xf32> to vector<4x346xf32>
    %22 = vector.extract_strided_slice %4 {offsets = [0, 47], sizes = [4, 346], strides = [1, 1]} : vector<4x484xf32> to vector<4x346xf32>
    %23 = vector.extract_strided_slice %4 {offsets = [0, 48], sizes = [4, 346], strides = [1, 1]} : vector<4x484xf32> to vector<4x346xf32>
    %24 = vector.extract_strided_slice %4 {offsets = [0, 49], sizes = [4, 346], strides = [1, 1]} : vector<4x484xf32> to vector<4x346xf32>
    %25 = vector.extract_strided_slice %4 {offsets = [0, 50], sizes = [4, 346], strides = [1, 1]} : vector<4x484xf32> to vector<4x346xf32>
    %26 = vector.extract_strided_slice %4 {offsets = [0, 66], sizes = [4, 346], strides = [1, 1]} : vector<4x484xf32> to vector<4x346xf32>
    %27 = vector.extract_strided_slice %4 {offsets = [0, 67], sizes = [4, 346], strides = [1, 1]} : vector<4x484xf32> to vector<4x346xf32>
    %28 = vector.extract_strided_slice %4 {offsets = [0, 68], sizes = [4, 346], strides = [1, 1]} : vector<4x484xf32> to vector<4x346xf32>
    %29 = vector.extract_strided_slice %4 {offsets = [0, 69], sizes = [4, 346], strides = [1, 1]} : vector<4x484xf32> to vector<4x346xf32>
    %30 = vector.extract_strided_slice %4 {offsets = [0, 70], sizes = [4, 346], strides = [1, 1]} : vector<4x484xf32> to vector<4x346xf32>
    %31 = vector.extract_strided_slice %4 {offsets = [0, 71], sizes = [4, 346], strides = [1, 1]} : vector<4x484xf32> to vector<4x346xf32>
    %32 = vector.extract_strided_slice %4 {offsets = [0, 72], sizes = [4, 346], strides = [1, 1]} : vector<4x484xf32> to vector<4x346xf32>
    %33 = vector.extract_strided_slice %4 {offsets = [0, 88], sizes = [4, 346], strides = [1, 1]} : vector<4x484xf32> to vector<4x346xf32>
    %34 = vector.extract_strided_slice %4 {offsets = [0, 89], sizes = [4, 346], strides = [1, 1]} : vector<4x484xf32> to vector<4x346xf32>
    %35 = vector.extract_strided_slice %4 {offsets = [0, 90], sizes = [4, 346], strides = [1, 1]} : vector<4x484xf32> to vector<4x346xf32>
    %36 = vector.extract_strided_slice %4 {offsets = [0, 91], sizes = [4, 346], strides = [1, 1]} : vector<4x484xf32> to vector<4x346xf32>
    %37 = vector.extract_strided_slice %4 {offsets = [0, 92], sizes = [4, 346], strides = [1, 1]} : vector<4x484xf32> to vector<4x346xf32>
    %38 = vector.extract_strided_slice %4 {offsets = [0, 93], sizes = [4, 346], strides = [1, 1]} : vector<4x484xf32> to vector<4x346xf32>
    %39 = vector.extract_strided_slice %4 {offsets = [0, 94], sizes = [4, 346], strides = [1, 1]} : vector<4x484xf32> to vector<4x346xf32>
    %40 = vector.extract_strided_slice %4 {offsets = [0, 110], sizes = [4, 346], strides = [1, 1]} : vector<4x484xf32> to vector<4x346xf32>
    %41 = vector.extract_strided_slice %4 {offsets = [0, 111], sizes = [4, 346], strides = [1, 1]} : vector<4x484xf32> to vector<4x346xf32>
    %42 = vector.extract_strided_slice %4 {offsets = [0, 112], sizes = [4, 346], strides = [1, 1]} : vector<4x484xf32> to vector<4x346xf32>
    %43 = vector.extract_strided_slice %4 {offsets = [0, 113], sizes = [4, 346], strides = [1, 1]} : vector<4x484xf32> to vector<4x346xf32>
    %44 = vector.extract_strided_slice %4 {offsets = [0, 114], sizes = [4, 346], strides = [1, 1]} : vector<4x484xf32> to vector<4x346xf32>
    %45 = vector.extract_strided_slice %4 {offsets = [0, 115], sizes = [4, 346], strides = [1, 1]} : vector<4x484xf32> to vector<4x346xf32>
    %46 = vector.extract_strided_slice %4 {offsets = [0, 116], sizes = [4, 346], strides = [1, 1]} : vector<4x484xf32> to vector<4x346xf32>
    %47 = vector.extract_strided_slice %4 {offsets = [0, 132], sizes = [4, 346], strides = [1, 1]} : vector<4x484xf32> to vector<4x346xf32>
    %48 = vector.extract_strided_slice %4 {offsets = [0, 133], sizes = [4, 346], strides = [1, 1]} : vector<4x484xf32> to vector<4x346xf32>
    %49 = vector.extract_strided_slice %4 {offsets = [0, 134], sizes = [4, 346], strides = [1, 1]} : vector<4x484xf32> to vector<4x346xf32>
    %50 = vector.extract_strided_slice %4 {offsets = [0, 135], sizes = [4, 346], strides = [1, 1]} : vector<4x484xf32> to vector<4x346xf32>
    %51 = vector.extract_strided_slice %4 {offsets = [0, 136], sizes = [4, 346], strides = [1, 1]} : vector<4x484xf32> to vector<4x346xf32>
    %52 = vector.extract_strided_slice %4 {offsets = [0, 137], sizes = [4, 346], strides = [1, 1]} : vector<4x484xf32> to vector<4x346xf32>
    %53 = vector.extract_strided_slice %4 {offsets = [0, 138], sizes = [4, 346], strides = [1, 1]} : vector<4x484xf32> to vector<4x346xf32>
    %54 = tpu.concatenate %5, %6, %7, %8, %9, %10, %11, %12, %13, %14, %15, %16, %17, %18, %19, %20 in 0 : vector<4x346xf32>, vector<4x346xf32>, vector<4x346xf32>, vector<4x346xf32>, vector<4x346xf32>, vector<4x346xf32>, vector<4x346xf32>, vector<4x346xf32>, vector<4x346xf32>, vector<4x346xf32>, vector<4x346xf32>, vector<4x346xf32>, vector<4x346xf32>, vector<4x346xf32>, vector<4x346xf32>, vector<4x346xf32> -> vector<64x346xf32>
    %55 = tpu.concatenate %21, %22, %23, %24, %25, %26, %27, %28, %29, %30, %31, %32, %33, %34, %35, %36 in 0 : vector<4x346xf32>, vector<4x346xf32>, vector<4x346xf32>, vector<4x346xf32>, vector<4x346xf32>, vector<4x346xf32>, vector<4x346xf32>, vector<4x346xf32>, vector<4x346xf32>, vector<4x346xf32>, vector<4x346xf32>, vector<4x346xf32>, vector<4x346xf32>, vector<4x346xf32>, vector<4x346xf32>, vector<4x346xf32> -> vector<64x346xf32>
    %56 = tpu.concatenate %37, %38, %39, %40, %41, %42, %43, %44, %45, %46, %47, %48, %49, %50, %51, %52 in 0 : vector<4x346xf32>, vector<4x346xf32>, vector<4x346xf32>, vector<4x346xf32>, vector<4x346xf32>, vector<4x346xf32>, vector<4x346xf32>, vector<4x346xf32>, vector<4x346xf32>, vector<4x346xf32>, vector<4x346xf32>, vector<4x346xf32>, vector<4x346xf32>, vector<4x346xf32>, vector<4x346xf32>, vector<4x346xf32> -> vector<64x346xf32>
    %57 = tpu.concatenate %54, %55, %56, %53 in 0 : vector<64x346xf32>, vector<64x346xf32>, vector<64x346xf32>, vector<4x346xf32> -> vector<196x346xf32>
    %58 = arith.truncf %57 : vector<196x346xf32> to vector<196x346xbf16>
    %c0_4 = arith.constant 0 : index
    %c0_5 = arith.constant 0 : index
    %59 = vector.load %arg3[%c0_4, %c0_5] : memref<8x196xbf16, #tpu.memory_space<vmem>>, vector<8x196xbf16>
    %cst_6 = arith.constant dense<0.000000e+00> : vector<8x346xf32>
    %60 = tpu.matmul %59, %58, %cst_6 {dimension_numbers = #tpu.dot_dimension_numbers<[1], [0], [0], [1], [0, 0, 1, 1], [], []>} : vector<8x196xbf16>, vector<196x346xbf16>, vector<8x346xf32> -> vector<8x346xf32>
    %c0_7 = arith.constant 0 : index
    %c0_8 = arith.constant 0 : index
    %61 = vector.load %arg4[%c0_7, %c0_8] : memref<1x346xf32, #tpu.memory_space<vmem>>, vector<1x346xf32>
    %62 = vector.broadcast %61 : vector<1x346xf32> to vector<8x346xf32>
    %63 = arith.mulf %60, %62 : vector<8x346xf32>
    %cst_9 = arith.constant dense<0.000000e+00> : vector<8xf32>
    %64 = vector.multi_reduction <add>, %63, %cst_9 [1] : vector<8x346xf32> to vector<8xf32>
    %65 = vector.shape_cast %64 : vector<8xf32> to vector<8x1xf32>
    %cst_10 = arith.constant 3.906250e-03 : f32
    %66 = vector.broadcast %cst_10 : f32 to vector<8x1xf32>
    %67 = arith.mulf %65, %66 : vector<8x1xf32>
    %68 = arith.mulf %63, %60 : vector<8x346xf32>
    %cst_11 = arith.constant dense<0.000000e+00> : vector<8xf32>
    %69 = vector.multi_reduction <add>, %68, %cst_11 [1] : vector<8x346xf32> to vector<8xf32>
    %70 = vector.shape_cast %69 : vector<8xf32> to vector<8x1xf32>
    %cst_12 = arith.constant 3.906250e-03 : f32
    %71 = vector.broadcast %cst_12 : f32 to vector<8x1xf32>
    %72 = arith.mulf %70, %71 : vector<8x1xf32>
    %73 = arith.mulf %67, %67 : vector<8x1xf32>
    %74 = arith.subf %72, %73 : vector<8x1xf32>
    %75 = vector.broadcast %67 : vector<8x1xf32> to vector<8x346xf32>
    %76 = arith.subf %60, %75 : vector<8x346xf32>
    %cst_13 = arith.constant 9.99999974E-6 : f32
    %77 = vector.broadcast %cst_13 : f32 to vector<8x1xf32>
    %78 = arith.addf %74, %77 : vector<8x1xf32>
    %79 = math.rsqrt %78 : vector<8x1xf32>
    %80 = vector.broadcast %79 : vector<8x1xf32> to vector<8x346xf32>
    %81 = arith.mulf %76, %80 : vector<8x346xf32>
    %cst_14 = arith.constant 0.000000e+00 : f32
    %82 = vector.broadcast %cst_14 : f32 to vector<8x346xf32>
    %83 = arith.maximumf %81, %82 : vector<8x346xf32>
    %84 = arith.truncf %83 : vector<8x346xf32> to vector<8x346xbf16>
    %c0_15 = arith.constant 0 : index
    %c0_16 = arith.constant 0 : index
    %85 = vector.load %arg5[%c0_15, %c0_16] : memref<346x324xbf16, #tpu.memory_space<vmem>>, vector<346x324xbf16>
    %cst_17 = arith.constant dense<0.000000e+00> : vector<8x324xf32>
    %86 = tpu.matmul %84, %85, %cst_17 {dimension_numbers = #tpu.dot_dimension_numbers<[1], [0], [0], [1], [0, 0, 1, 1], [], []>} : vector<8x346xbf16>, vector<346x324xbf16>, vector<8x324xf32> -> vector<8x324xf32>
    %87 = vector.extract_strided_slice %86 {offsets = [0, 0], sizes = [8, 267], strides = [1, 1]} : vector<8x324xf32> to vector<8x267xf32>
    %88 = vector.extract_strided_slice %86 {offsets = [0, 1], sizes = [8, 267], strides = [1, 1]} : vector<8x324xf32> to vector<8x267xf32>
    %89 = vector.extract_strided_slice %86 {offsets = [0, 2], sizes = [8, 267], strides = [1, 1]} : vector<8x324xf32> to vector<8x267xf32>
    %90 = vector.extract_strided_slice %86 {offsets = [0, 3], sizes = [8, 267], strides = [1, 1]} : vector<8x324xf32> to vector<8x267xf32>
    %91 = vector.extract_strided_slice %86 {offsets = [0, 18], sizes = [8, 267], strides = [1, 1]} : vector<8x324xf32> to vector<8x267xf32>
    %92 = vector.extract_strided_slice %86 {offsets = [0, 19], sizes = [8, 267], strides = [1, 1]} : vector<8x324xf32> to vector<8x267xf32>
    %93 = vector.extract_strided_slice %86 {offsets = [0, 20], sizes = [8, 267], strides = [1, 1]} : vector<8x324xf32> to vector<8x267xf32>
    %94 = vector.extract_strided_slice %86 {offsets = [0, 21], sizes = [8, 267], strides = [1, 1]} : vector<8x324xf32> to vector<8x267xf32>
    %95 = vector.extract_strided_slice %86 {offsets = [0, 36], sizes = [8, 267], strides = [1, 1]} : vector<8x324xf32> to vector<8x267xf32>
    %96 = vector.extract_strided_slice %86 {offsets = [0, 37], sizes = [8, 267], strides = [1, 1]} : vector<8x324xf32> to vector<8x267xf32>
    %97 = vector.extract_strided_slice %86 {offsets = [0, 38], sizes = [8, 267], strides = [1, 1]} : vector<8x324xf32> to vector<8x267xf32>
    %98 = vector.extract_strided_slice %86 {offsets = [0, 39], sizes = [8, 267], strides = [1, 1]} : vector<8x324xf32> to vector<8x267xf32>
    %99 = vector.extract_strided_slice %86 {offsets = [0, 54], sizes = [8, 267], strides = [1, 1]} : vector<8x324xf32> to vector<8x267xf32>
    %100 = vector.extract_strided_slice %86 {offsets = [0, 55], sizes = [8, 267], strides = [1, 1]} : vector<8x324xf32> to vector<8x267xf32>
    %101 = vector.extract_strided_slice %86 {offsets = [0, 56], sizes = [8, 267], strides = [1, 1]} : vector<8x324xf32> to vector<8x267xf32>
    %102 = vector.extract_strided_slice %86 {offsets = [0, 57], sizes = [8, 267], strides = [1, 1]} : vector<8x324xf32> to vector<8x267xf32>
    %103 = tpu.concatenate %87, %88, %89, %90, %91, %92, %93, %94, %95, %96, %97, %98, %99, %100, %101, %102 in 0 : vector<8x267xf32>, vector<8x267xf32>, vector<8x267xf32>, vector<8x267xf32>, vector<8x267xf32>, vector<8x267xf32>, vector<8x267xf32>, vector<8x267xf32>, vector<8x267xf32>, vector<8x267xf32>, vector<8x267xf32>, vector<8x267xf32>, vector<8x267xf32>, vector<8x267xf32>, vector<8x267xf32>, vector<8x267xf32> -> vector<128x267xf32>
    %104 = arith.truncf %103 : vector<128x267xf32> to vector<128x267xbf16>
    %c0_18 = arith.constant 0 : index
    %c0_19 = arith.constant 0 : index
    %105 = vector.load %arg6[%c0_18, %c0_19] : memref<16x128xbf16, #tpu.memory_space<vmem>>, vector<16x128xbf16>
    %cst_20 = arith.constant dense<0.000000e+00> : vector<16x267xf32>
    %106 = tpu.matmul %105, %104, %cst_20 {dimension_numbers = #tpu.dot_dimension_numbers<[1], [0], [0], [1], [0, 0, 1, 1], [], []>} : vector<16x128xbf16>, vector<128x267xbf16>, vector<16x267xf32> -> vector<16x267xf32>
    %c0_21 = arith.constant 0 : index
    %c0_22 = arith.constant 0 : index
    %107 = vector.load %arg7[%c0_21, %c0_22] : memref<1x267xf32, #tpu.memory_space<vmem>>, vector<1x267xf32>
    %108 = vector.broadcast %107 : vector<1x267xf32> to vector<16x267xf32>
    %109 = arith.mulf %106, %108 : vector<16x267xf32>
    %cst_23 = arith.constant dense<0.000000e+00> : vector<16xf32>
    %110 = vector.multi_reduction <add>, %109, %cst_23 [1] : vector<16x267xf32> to vector<16xf32>
    %111 = vector.shape_cast %110 : vector<16xf32> to vector<16x1xf32>
    %cst_24 = arith.constant 1.562500e-02 : f32
    %112 = vector.broadcast %cst_24 : f32 to vector<16x1xf32>
    %113 = arith.mulf %111, %112 : vector<16x1xf32>
    %114 = arith.mulf %109, %106 : vector<16x267xf32>
    %cst_25 = arith.constant dense<0.000000e+00> : vector<16xf32>
    %115 = vector.multi_reduction <add>, %114, %cst_25 [1] : vector<16x267xf32> to vector<16xf32>
    %116 = vector.shape_cast %115 : vector<16xf32> to vector<16x1xf32>
    %cst_26 = arith.constant 1.562500e-02 : f32
    %117 = vector.broadcast %cst_26 : f32 to vector<16x1xf32>
    %118 = arith.mulf %116, %117 : vector<16x1xf32>
    %119 = arith.mulf %113, %113 : vector<16x1xf32>
    %120 = arith.subf %118, %119 : vector<16x1xf32>
    %121 = vector.broadcast %113 : vector<16x1xf32> to vector<16x267xf32>
    %122 = arith.subf %106, %121 : vector<16x267xf32>
    %cst_27 = arith.constant 9.99999974E-6 : f32
    %123 = vector.broadcast %cst_27 : f32 to vector<16x1xf32>
    %124 = arith.addf %120, %123 : vector<16x1xf32>
    %125 = math.rsqrt %124 : vector<16x1xf32>
    %126 = vector.broadcast %125 : vector<16x1xf32> to vector<16x267xf32>
    %127 = arith.mulf %122, %126 : vector<16x267xf32>
    %cst_28 = arith.constant 0.000000e+00 : f32
    %128 = vector.broadcast %cst_28 : f32 to vector<16x267xf32>
    %129 = arith.maximumf %127, %128 : vector<16x267xf32>
    %130 = arith.truncf %129 : vector<16x267xf32> to vector<16x267xbf16>
    %c0_29 = arith.constant 0 : index
    %c0_30 = arith.constant 0 : index
    %131 = vector.load %arg8[%c0_29, %c0_30] : memref<267x100xbf16, #tpu.memory_space<vmem>>, vector<267x100xbf16>
    %cst_31 = arith.constant dense<0.000000e+00> : vector<16x100xf32>
    %132 = tpu.matmul %130, %131, %cst_31 {dimension_numbers = #tpu.dot_dimension_numbers<[1], [0], [0], [1], [0, 0, 1, 1], [], []>} : vector<16x267xbf16>, vector<267x100xbf16>, vector<16x100xf32> -> vector<16x100xf32>
    %133 = vector.extract_strided_slice %132 {offsets = [0, 0], sizes = [16, 67], strides = [1, 1]} : vector<16x100xf32> to vector<16x67xf32>
    %134 = vector.extract_strided_slice %132 {offsets = [0, 1], sizes = [16, 67], strides = [1, 1]} : vector<16x100xf32> to vector<16x67xf32>
    %135 = vector.extract_strided_slice %132 {offsets = [0, 2], sizes = [16, 67], strides = [1, 1]} : vector<16x100xf32> to vector<16x67xf32>
    %136 = vector.extract_strided_slice %132 {offsets = [0, 3], sizes = [16, 67], strides = [1, 1]} : vector<16x100xf32> to vector<16x67xf32>
    %137 = vector.extract_strided_slice %132 {offsets = [0, 10], sizes = [16, 67], strides = [1, 1]} : vector<16x100xf32> to vector<16x67xf32>
    %138 = vector.extract_strided_slice %132 {offsets = [0, 11], sizes = [16, 67], strides = [1, 1]} : vector<16x100xf32> to vector<16x67xf32>
    %139 = vector.extract_strided_slice %132 {offsets = [0, 12], sizes = [16, 67], strides = [1, 1]} : vector<16x100xf32> to vector<16x67xf32>
    %140 = vector.extract_strided_slice %132 {offsets = [0, 13], sizes = [16, 67], strides = [1, 1]} : vector<16x100xf32> to vector<16x67xf32>
    %141 = vector.extract_strided_slice %132 {offsets = [0, 20], sizes = [16, 67], strides = [1, 1]} : vector<16x100xf32> to vector<16x67xf32>
    %142 = vector.extract_strided_slice %132 {offsets = [0, 21], sizes = [16, 67], strides = [1, 1]} : vector<16x100xf32> to vector<16x67xf32>
    %143 = vector.extract_strided_slice %132 {offsets = [0, 22], sizes = [16, 67], strides = [1, 1]} : vector<16x100xf32> to vector<16x67xf32>
    %144 = vector.extract_strided_slice %132 {offsets = [0, 23], sizes = [16, 67], strides = [1, 1]} : vector<16x100xf32> to vector<16x67xf32>
    %145 = vector.extract_strided_slice %132 {offsets = [0, 30], sizes = [16, 67], strides = [1, 1]} : vector<16x100xf32> to vector<16x67xf32>
    %146 = vector.extract_strided_slice %132 {offsets = [0, 31], sizes = [16, 67], strides = [1, 1]} : vector<16x100xf32> to vector<16x67xf32>
    %147 = vector.extract_strided_slice %132 {offsets = [0, 32], sizes = [16, 67], strides = [1, 1]} : vector<16x100xf32> to vector<16x67xf32>
    %148 = vector.extract_strided_slice %132 {offsets = [0, 33], sizes = [16, 67], strides = [1, 1]} : vector<16x100xf32> to vector<16x67xf32>
    %149 = tpu.concatenate %133, %134, %135, %136, %137, %138, %139, %140, %141, %142, %143, %144, %145, %146, %147, %148 in 0 : vector<16x67xf32>, vector<16x67xf32>, vector<16x67xf32>, vector<16x67xf32>, vector<16x67xf32>, vector<16x67xf32>, vector<16x67xf32>, vector<16x67xf32>, vector<16x67xf32>, vector<16x67xf32>, vector<16x67xf32>, vector<16x67xf32>, vector<16x67xf32>, vector<16x67xf32>, vector<16x67xf32>, vector<16x67xf32> -> vector<256x67xf32>
    %150 = arith.truncf %149 : vector<256x67xf32> to vector<256x67xbf16>
    %c0_32 = arith.constant 0 : index
    %c0_33 = arith.constant 0 : index
    %151 = vector.load %arg9[%c0_32, %c0_33] : memref<32x256xbf16, #tpu.memory_space<vmem>>, vector<32x256xbf16>
    %cst_34 = arith.constant dense<0.000000e+00> : vector<32x67xf32>
    %152 = tpu.matmul %151, %150, %cst_34 {dimension_numbers = #tpu.dot_dimension_numbers<[1], [0], [0], [1], [0, 0, 1, 1], [], []>} : vector<32x256xbf16>, vector<256x67xbf16>, vector<32x67xf32> -> vector<32x67xf32>
    %c0_35 = arith.constant 0 : index
    %c0_36 = arith.constant 0 : index
    %153 = vector.load %arg10[%c0_35, %c0_36] : memref<1x67xf32, #tpu.memory_space<vmem>>, vector<1x67xf32>
    %154 = vector.broadcast %153 : vector<1x67xf32> to vector<32x67xf32>
    %155 = arith.mulf %152, %154 : vector<32x67xf32>
    %cst_37 = arith.constant dense<0.000000e+00> : vector<32xf32>
    %156 = vector.multi_reduction <add>, %155, %cst_37 [1] : vector<32x67xf32> to vector<32xf32>
    %157 = vector.shape_cast %156 : vector<32xf32> to vector<32x1xf32>
    %cst_38 = arith.constant 6.250000e-02 : f32
    %158 = vector.broadcast %cst_38 : f32 to vector<32x1xf32>
    %159 = arith.mulf %157, %158 : vector<32x1xf32>
    %160 = arith.mulf %155, %152 : vector<32x67xf32>
    %cst_39 = arith.constant dense<0.000000e+00> : vector<32xf32>
    %161 = vector.multi_reduction <add>, %160, %cst_39 [1] : vector<32x67xf32> to vector<32xf32>
    %162 = vector.shape_cast %161 : vector<32xf32> to vector<32x1xf32>
    %cst_40 = arith.constant 6.250000e-02 : f32
    %163 = vector.broadcast %cst_40 : f32 to vector<32x1xf32>
    %164 = arith.mulf %162, %163 : vector<32x1xf32>
    %165 = arith.mulf %159, %159 : vector<32x1xf32>
    %166 = arith.subf %164, %165 : vector<32x1xf32>
    %167 = vector.broadcast %159 : vector<32x1xf32> to vector<32x67xf32>
    %168 = arith.subf %152, %167 : vector<32x67xf32>
    %cst_41 = arith.constant 9.99999974E-6 : f32
    %169 = vector.broadcast %cst_41 : f32 to vector<32x1xf32>
    %170 = arith.addf %166, %169 : vector<32x1xf32>
    %171 = math.rsqrt %170 : vector<32x1xf32>
    %172 = vector.broadcast %171 : vector<32x1xf32> to vector<32x67xf32>
    %173 = arith.mulf %168, %172 : vector<32x67xf32>
    %cst_42 = arith.constant 0.000000e+00 : f32
    %174 = vector.broadcast %cst_42 : f32 to vector<32x67xf32>
    %175 = arith.maximumf %173, %174 : vector<32x67xf32>
    %176 = arith.truncf %175 : vector<32x67xf32> to vector<32x67xbf16>
    %c0_43 = arith.constant 0 : index
    %c0_44 = arith.constant 0 : index
    %177 = vector.load %arg11[%c0_43, %c0_44] : memref<67x36xbf16, #tpu.memory_space<vmem>>, vector<67x36xbf16>
    %cst_45 = arith.constant dense<0.000000e+00> : vector<32x36xf32>
    %178 = tpu.matmul %176, %177, %cst_45 {dimension_numbers = #tpu.dot_dimension_numbers<[1], [0], [0], [1], [0, 0, 1, 1], [], []>} : vector<32x67xbf16>, vector<67x36xbf16>, vector<32x36xf32> -> vector<32x36xf32>
    %179 = vector.extract_strided_slice %178 {offsets = [0, 0], sizes = [32, 22], strides = [1, 1]} : vector<32x36xf32> to vector<32x22xf32>
    %180 = vector.extract_strided_slice %178 {offsets = [0, 1], sizes = [32, 22], strides = [1, 1]} : vector<32x36xf32> to vector<32x22xf32>
    %181 = vector.extract_strided_slice %178 {offsets = [0, 2], sizes = [32, 22], strides = [1, 1]} : vector<32x36xf32> to vector<32x22xf32>
    %182 = vector.extract_strided_slice %178 {offsets = [0, 6], sizes = [32, 22], strides = [1, 1]} : vector<32x36xf32> to vector<32x22xf32>
    %183 = vector.extract_strided_slice %178 {offsets = [0, 7], sizes = [32, 22], strides = [1, 1]} : vector<32x36xf32> to vector<32x22xf32>
    %184 = vector.extract_strided_slice %178 {offsets = [0, 8], sizes = [32, 22], strides = [1, 1]} : vector<32x36xf32> to vector<32x22xf32>
    %185 = vector.extract_strided_slice %178 {offsets = [0, 12], sizes = [32, 22], strides = [1, 1]} : vector<32x36xf32> to vector<32x22xf32>
    %186 = vector.extract_strided_slice %178 {offsets = [0, 13], sizes = [32, 22], strides = [1, 1]} : vector<32x36xf32> to vector<32x22xf32>
    %187 = vector.extract_strided_slice %178 {offsets = [0, 14], sizes = [32, 22], strides = [1, 1]} : vector<32x36xf32> to vector<32x22xf32>
    %188 = tpu.concatenate %179, %180, %181, %182, %183, %184, %185, %186, %187 in 0 : vector<32x22xf32>, vector<32x22xf32>, vector<32x22xf32>, vector<32x22xf32>, vector<32x22xf32>, vector<32x22xf32>, vector<32x22xf32>, vector<32x22xf32>, vector<32x22xf32> -> vector<288x22xf32>
    %189 = arith.truncf %188 : vector<288x22xf32> to vector<288x22xbf16>
    %c0_46 = arith.constant 0 : index
    %c0_47 = arith.constant 0 : index
    %190 = vector.load %arg12[%c0_46, %c0_47] : memref<32x288xbf16, #tpu.memory_space<vmem>>, vector<32x288xbf16>
    %cst_48 = arith.constant dense<0.000000e+00> : vector<32x22xf32>
    %191 = tpu.matmul %190, %189, %cst_48 {dimension_numbers = #tpu.dot_dimension_numbers<[1], [0], [0], [1], [0, 0, 1, 1], [], []>} : vector<32x288xbf16>, vector<288x22xbf16>, vector<32x22xf32> -> vector<32x22xf32>
    %c0_49 = arith.constant 0 : index
    %c0_50 = arith.constant 0 : index
    %192 = vector.load %arg13[%c0_49, %c0_50] : memref<1x22xf32, #tpu.memory_space<vmem>>, vector<1x22xf32>
    %193 = vector.broadcast %192 : vector<1x22xf32> to vector<32x22xf32>
    %194 = arith.mulf %191, %193 : vector<32x22xf32>
    %cst_51 = arith.constant dense<0.000000e+00> : vector<32xf32>
    %195 = vector.multi_reduction <add>, %194, %cst_51 [1] : vector<32x22xf32> to vector<32xf32>
    %196 = vector.shape_cast %195 : vector<32xf32> to vector<32x1xf32>
    %cst_52 = arith.constant 6.250000e-02 : f32
    %197 = vector.broadcast %cst_52 : f32 to vector<32x1xf32>
    %198 = arith.mulf %196, %197 : vector<32x1xf32>
    %199 = arith.mulf %194, %191 : vector<32x22xf32>
    %cst_53 = arith.constant dense<0.000000e+00> : vector<32xf32>
    %200 = vector.multi_reduction <add>, %199, %cst_53 [1] : vector<32x22xf32> to vector<32xf32>
    %201 = vector.shape_cast %200 : vector<32xf32> to vector<32x1xf32>
    %cst_54 = arith.constant 6.250000e-02 : f32
    %202 = vector.broadcast %cst_54 : f32 to vector<32x1xf32>
    %203 = arith.mulf %201, %202 : vector<32x1xf32>
    %204 = arith.mulf %198, %198 : vector<32x1xf32>
    %205 = arith.subf %203, %204 : vector<32x1xf32>
    %206 = vector.broadcast %198 : vector<32x1xf32> to vector<32x22xf32>
    %207 = arith.subf %191, %206 : vector<32x22xf32>
    %cst_55 = arith.constant 9.99999974E-6 : f32
    %208 = vector.broadcast %cst_55 : f32 to vector<32x1xf32>
    %209 = arith.addf %205, %208 : vector<32x1xf32>
    %210 = math.rsqrt %209 : vector<32x1xf32>
    %211 = vector.broadcast %210 : vector<32x1xf32> to vector<32x22xf32>
    %212 = arith.mulf %207, %211 : vector<32x22xf32>
    %cst_56 = arith.constant 0.000000e+00 : f32
    %213 = vector.broadcast %cst_56 : f32 to vector<32x22xf32>
    %214 = arith.maximumf %212, %213 : vector<32x22xf32>
    %215 = arith.truncf %214 : vector<32x22xf32> to vector<32x22xbf16>
    %c0_57 = arith.constant 0 : index
    %c0_58 = arith.constant 0 : index
    %216 = vector.load %arg14[%c0_57, %c0_58] : memref<22x36xbf16, #tpu.memory_space<vmem>>, vector<22x36xbf16>
    %cst_59 = arith.constant dense<0.000000e+00> : vector<32x36xf32>
    %217 = tpu.matmul %215, %216, %cst_59 {dimension_numbers = #tpu.dot_dimension_numbers<[1], [0], [0], [1], [0, 0, 1, 1], [], []>} : vector<32x22xbf16>, vector<22x36xbf16>, vector<32x36xf32> -> vector<32x36xf32>
    %218 = vector.extract_strided_slice %217 {offsets = [0, 0], sizes = [32, 22], strides = [1, 1]} : vector<32x36xf32> to vector<32x22xf32>
    %219 = vector.extract_strided_slice %217 {offsets = [0, 1], sizes = [32, 22], strides = [1, 1]} : vector<32x36xf32> to vector<32x22xf32>
    %220 = vector.extract_strided_slice %217 {offsets = [0, 2], sizes = [32, 22], strides = [1, 1]} : vector<32x36xf32> to vector<32x22xf32>
    %221 = vector.extract_strided_slice %217 {offsets = [0, 6], sizes = [32, 22], strides = [1, 1]} : vector<32x36xf32> to vector<32x22xf32>
    %222 = vector.extract_strided_slice %217 {offsets = [0, 7], sizes = [32, 22], strides = [1, 1]} : vector<32x36xf32> to vector<32x22xf32>
    %223 = vector.extract_strided_slice %217 {offsets = [0, 8], sizes = [32, 22], strides = [1, 1]} : vector<32x36xf32> to vector<32x22xf32>
    %224 = vector.extract_strided_slice %217 {offsets = [0, 12], sizes = [32, 22], strides = [1, 1]} : vector<32x36xf32> to vector<32x22xf32>
    %225 = vector.extract_strided_slice %217 {offsets = [0, 13], sizes = [32, 22], strides = [1, 1]} : vector<32x36xf32> to vector<32x22xf32>
    %226 = vector.extract_strided_slice %217 {offsets = [0, 14], sizes = [32, 22], strides = [1, 1]} : vector<32x36xf32> to vector<32x22xf32>
    %227 = tpu.concatenate %218, %219, %220, %221, %222, %223, %224, %225, %226 in 0 : vector<32x22xf32>, vector<32x22xf32>, vector<32x22xf32>, vector<32x22xf32>, vector<32x22xf32>, vector<32x22xf32>, vector<32x22xf32>, vector<32x22xf32>, vector<32x22xf32> -> vector<288x22xf32>
    %228 = arith.truncf %227 : vector<288x22xf32> to vector<288x22xbf16>
    %c0_60 = arith.constant 0 : index
    %c0_61 = arith.constant 0 : index
    %229 = vector.load %arg15[%c0_60, %c0_61] : memref<32x288xbf16, #tpu.memory_space<vmem>>, vector<32x288xbf16>
    %cst_62 = arith.constant dense<0.000000e+00> : vector<32x22xf32>
    %230 = tpu.matmul %229, %228, %cst_62 {dimension_numbers = #tpu.dot_dimension_numbers<[1], [0], [0], [1], [0, 0, 1, 1], [], []>} : vector<32x288xbf16>, vector<288x22xbf16>, vector<32x22xf32> -> vector<32x22xf32>
    %c0_63 = arith.constant 0 : index
    %c0_64 = arith.constant 0 : index
    %231 = vector.load %arg16[%c0_63, %c0_64] : memref<1x22xf32, #tpu.memory_space<vmem>>, vector<1x22xf32>
    %232 = vector.broadcast %231 : vector<1x22xf32> to vector<32x22xf32>
    %233 = arith.mulf %230, %232 : vector<32x22xf32>
    %cst_65 = arith.constant dense<0.000000e+00> : vector<32xf32>
    %234 = vector.multi_reduction <add>, %233, %cst_65 [1] : vector<32x22xf32> to vector<32xf32>
    %235 = vector.shape_cast %234 : vector<32xf32> to vector<32x1xf32>
    %cst_66 = arith.constant 6.250000e-02 : f32
    %236 = vector.broadcast %cst_66 : f32 to vector<32x1xf32>
    %237 = arith.mulf %235, %236 : vector<32x1xf32>
    %238 = arith.mulf %233, %230 : vector<32x22xf32>
    %cst_67 = arith.constant dense<0.000000e+00> : vector<32xf32>
    %239 = vector.multi_reduction <add>, %238, %cst_67 [1] : vector<32x22xf32> to vector<32xf32>
    %240 = vector.shape_cast %239 : vector<32xf32> to vector<32x1xf32>
    %cst_68 = arith.constant 6.250000e-02 : f32
    %241 = vector.broadcast %cst_68 : f32 to vector<32x1xf32>
    %242 = arith.mulf %240, %241 : vector<32x1xf32>
    %243 = arith.mulf %237, %237 : vector<32x1xf32>
    %244 = arith.subf %242, %243 : vector<32x1xf32>
    %245 = vector.broadcast %237 : vector<32x1xf32> to vector<32x22xf32>
    %246 = arith.subf %230, %245 : vector<32x22xf32>
    %cst_69 = arith.constant 9.99999974E-6 : f32
    %247 = vector.broadcast %cst_69 : f32 to vector<32x1xf32>
    %248 = arith.addf %244, %247 : vector<32x1xf32>
    %249 = math.rsqrt %248 : vector<32x1xf32>
    %250 = vector.broadcast %249 : vector<32x1xf32> to vector<32x22xf32>
    %251 = arith.mulf %246, %250 : vector<32x22xf32>
    %252 = arith.truncf %251 : vector<32x22xf32> to vector<32x22xbf16>
    %c0_70 = arith.constant 0 : index
    %c0_71 = arith.constant 0 : index
    %253 = vector.load %arg17[%c0_70, %c0_71] : memref<22x36xbf16, #tpu.memory_space<vmem>>, vector<22x36xbf16>
    %cst_72 = arith.constant dense<0.000000e+00> : vector<32x36xf32>
    %254 = tpu.matmul %252, %253, %cst_72 {dimension_numbers = #tpu.dot_dimension_numbers<[1], [0], [0], [1], [0, 0, 1, 1], [], []>} : vector<32x22xbf16>, vector<22x36xbf16>, vector<32x36xf32> -> vector<32x36xf32>
    %255 = arith.addf %254, %178 : vector<32x36xf32>
    %256 = vector.extract_strided_slice %255 {offsets = [0, 0], sizes = [32, 22], strides = [1, 1]} : vector<32x36xf32> to vector<32x22xf32>
    %257 = vector.extract_strided_slice %255 {offsets = [0, 1], sizes = [32, 22], strides = [1, 1]} : vector<32x36xf32> to vector<32x22xf32>
    %258 = vector.extract_strided_slice %255 {offsets = [0, 2], sizes = [32, 22], strides = [1, 1]} : vector<32x36xf32> to vector<32x22xf32>
    %259 = vector.extract_strided_slice %255 {offsets = [0, 6], sizes = [32, 22], strides = [1, 1]} : vector<32x36xf32> to vector<32x22xf32>
    %260 = vector.extract_strided_slice %255 {offsets = [0, 7], sizes = [32, 22], strides = [1, 1]} : vector<32x36xf32> to vector<32x22xf32>
    %261 = vector.extract_strided_slice %255 {offsets = [0, 8], sizes = [32, 22], strides = [1, 1]} : vector<32x36xf32> to vector<32x22xf32>
    %262 = vector.extract_strided_slice %255 {offsets = [0, 12], sizes = [32, 22], strides = [1, 1]} : vector<32x36xf32> to vector<32x22xf32>
    %263 = vector.extract_strided_slice %255 {offsets = [0, 13], sizes = [32, 22], strides = [1, 1]} : vector<32x36xf32> to vector<32x22xf32>
    %264 = vector.extract_strided_slice %255 {offsets = [0, 14], sizes = [32, 22], strides = [1, 1]} : vector<32x36xf32> to vector<32x22xf32>
    %265 = tpu.concatenate %256, %257, %258, %259, %260, %261, %262, %263, %264 in 0 : vector<32x22xf32>, vector<32x22xf32>, vector<32x22xf32>, vector<32x22xf32>, vector<32x22xf32>, vector<32x22xf32>, vector<32x22xf32>, vector<32x22xf32>, vector<32x22xf32> -> vector<288x22xf32>
    %266 = arith.truncf %265 : vector<288x22xf32> to vector<288x22xbf16>
    %c0_73 = arith.constant 0 : index
    %c0_74 = arith.constant 0 : index
    %267 = vector.load %arg18[%c0_73, %c0_74] : memref<32x288xbf16, #tpu.memory_space<vmem>>, vector<32x288xbf16>
    %cst_75 = arith.constant dense<0.000000e+00> : vector<32x22xf32>
    %268 = tpu.matmul %267, %266, %cst_75 {dimension_numbers = #tpu.dot_dimension_numbers<[1], [0], [0], [1], [0, 0, 1, 1], [], []>} : vector<32x288xbf16>, vector<288x22xbf16>, vector<32x22xf32> -> vector<32x22xf32>
    %c0_76 = arith.constant 0 : index
    %c0_77 = arith.constant 0 : index
    %269 = vector.load %arg19[%c0_76, %c0_77] : memref<1x22xf32, #tpu.memory_space<vmem>>, vector<1x22xf32>
    %270 = vector.broadcast %269 : vector<1x22xf32> to vector<32x22xf32>
    %271 = arith.mulf %268, %270 : vector<32x22xf32>
    %cst_78 = arith.constant dense<0.000000e+00> : vector<32xf32>
    %272 = vector.multi_reduction <add>, %271, %cst_78 [1] : vector<32x22xf32> to vector<32xf32>
    %273 = vector.shape_cast %272 : vector<32xf32> to vector<32x1xf32>
    %cst_79 = arith.constant 6.250000e-02 : f32
    %274 = vector.broadcast %cst_79 : f32 to vector<32x1xf32>
    %275 = arith.mulf %273, %274 : vector<32x1xf32>
    %276 = arith.mulf %271, %268 : vector<32x22xf32>
    %cst_80 = arith.constant dense<0.000000e+00> : vector<32xf32>
    %277 = vector.multi_reduction <add>, %276, %cst_80 [1] : vector<32x22xf32> to vector<32xf32>
    %278 = vector.shape_cast %277 : vector<32xf32> to vector<32x1xf32>
    %cst_81 = arith.constant 6.250000e-02 : f32
    %279 = vector.broadcast %cst_81 : f32 to vector<32x1xf32>
    %280 = arith.mulf %278, %279 : vector<32x1xf32>
    %281 = arith.mulf %275, %275 : vector<32x1xf32>
    %282 = arith.subf %280, %281 : vector<32x1xf32>
    %283 = vector.broadcast %275 : vector<32x1xf32> to vector<32x22xf32>
    %284 = arith.subf %268, %283 : vector<32x22xf32>
    %cst_82 = arith.constant 9.99999974E-6 : f32
    %285 = vector.broadcast %cst_82 : f32 to vector<32x1xf32>
    %286 = arith.addf %282, %285 : vector<32x1xf32>
    %287 = math.rsqrt %286 : vector<32x1xf32>
    %288 = vector.broadcast %287 : vector<32x1xf32> to vector<32x22xf32>
    %289 = arith.mulf %284, %288 : vector<32x22xf32>
    %cst_83 = arith.constant 0.000000e+00 : f32
    %290 = vector.broadcast %cst_83 : f32 to vector<32x22xf32>
    %291 = arith.maximumf %289, %290 : vector<32x22xf32>
    %292 = arith.truncf %291 : vector<32x22xf32> to vector<32x22xbf16>
    %c0_84 = arith.constant 0 : index
    %c0_85 = arith.constant 0 : index
    %293 = vector.load %arg20[%c0_84, %c0_85] : memref<22x36xbf16, #tpu.memory_space<vmem>>, vector<22x36xbf16>
    %cst_86 = arith.constant dense<0.000000e+00> : vector<32x36xf32>
    %294 = tpu.matmul %292, %293, %cst_86 {dimension_numbers = #tpu.dot_dimension_numbers<[1], [0], [0], [1], [0, 0, 1, 1], [], []>} : vector<32x22xbf16>, vector<22x36xbf16>, vector<32x36xf32> -> vector<32x36xf32>
    %295 = vector.extract_strided_slice %294 {offsets = [0, 0], sizes = [32, 22], strides = [1, 1]} : vector<32x36xf32> to vector<32x22xf32>
    %296 = vector.extract_strided_slice %294 {offsets = [0, 1], sizes = [32, 22], strides = [1, 1]} : vector<32x36xf32> to vector<32x22xf32>
    %297 = vector.extract_strided_slice %294 {offsets = [0, 2], sizes = [32, 22], strides = [1, 1]} : vector<32x36xf32> to vector<32x22xf32>
    %298 = vector.extract_strided_slice %294 {offsets = [0, 6], sizes = [32, 22], strides = [1, 1]} : vector<32x36xf32> to vector<32x22xf32>
    %299 = vector.extract_strided_slice %294 {offsets = [0, 7], sizes = [32, 22], strides = [1, 1]} : vector<32x36xf32> to vector<32x22xf32>
    %300 = vector.extract_strided_slice %294 {offsets = [0, 8], sizes = [32, 22], strides = [1, 1]} : vector<32x36xf32> to vector<32x22xf32>
    %301 = vector.extract_strided_slice %294 {offsets = [0, 12], sizes = [32, 22], strides = [1, 1]} : vector<32x36xf32> to vector<32x22xf32>
    %302 = vector.extract_strided_slice %294 {offsets = [0, 13], sizes = [32, 22], strides = [1, 1]} : vector<32x36xf32> to vector<32x22xf32>
    %303 = vector.extract_strided_slice %294 {offsets = [0, 14], sizes = [32, 22], strides = [1, 1]} : vector<32x36xf32> to vector<32x22xf32>
    %304 = tpu.concatenate %295, %296, %297, %298, %299, %300, %301, %302, %303 in 0 : vector<32x22xf32>, vector<32x22xf32>, vector<32x22xf32>, vector<32x22xf32>, vector<32x22xf32>, vector<32x22xf32>, vector<32x22xf32>, vector<32x22xf32>, vector<32x22xf32> -> vector<288x22xf32>
    %305 = arith.truncf %304 : vector<288x22xf32> to vector<288x22xbf16>
    %c0_87 = arith.constant 0 : index
    %c0_88 = arith.constant 0 : index
    %306 = vector.load %arg21[%c0_87, %c0_88] : memref<32x288xbf16, #tpu.memory_space<vmem>>, vector<32x288xbf16>
    %cst_89 = arith.constant dense<0.000000e+00> : vector<32x22xf32>
    %307 = tpu.matmul %306, %305, %cst_89 {dimension_numbers = #tpu.dot_dimension_numbers<[1], [0], [0], [1], [0, 0, 1, 1], [], []>} : vector<32x288xbf16>, vector<288x22xbf16>, vector<32x22xf32> -> vector<32x22xf32>
    %c0_90 = arith.constant 0 : index
    %c0_91 = arith.constant 0 : index
    %308 = vector.load %arg22[%c0_90, %c0_91] : memref<1x22xf32, #tpu.memory_space<vmem>>, vector<1x22xf32>
    %309 = vector.broadcast %308 : vector<1x22xf32> to vector<32x22xf32>
    %310 = arith.mulf %307, %309 : vector<32x22xf32>
    %cst_92 = arith.constant dense<0.000000e+00> : vector<32xf32>
    %311 = vector.multi_reduction <add>, %310, %cst_92 [1] : vector<32x22xf32> to vector<32xf32>
    %312 = vector.shape_cast %311 : vector<32xf32> to vector<32x1xf32>
    %cst_93 = arith.constant 6.250000e-02 : f32
    %313 = vector.broadcast %cst_93 : f32 to vector<32x1xf32>
    %314 = arith.mulf %312, %313 : vector<32x1xf32>
    %315 = arith.mulf %310, %307 : vector<32x22xf32>
    %cst_94 = arith.constant dense<0.000000e+00> : vector<32xf32>
    %316 = vector.multi_reduction <add>, %315, %cst_94 [1] : vector<32x22xf32> to vector<32xf32>
    %317 = vector.shape_cast %316 : vector<32xf32> to vector<32x1xf32>
    %cst_95 = arith.constant 6.250000e-02 : f32
    %318 = vector.broadcast %cst_95 : f32 to vector<32x1xf32>
    %319 = arith.mulf %317, %318 : vector<32x1xf32>
    %320 = arith.mulf %314, %314 : vector<32x1xf32>
    %321 = arith.subf %319, %320 : vector<32x1xf32>
    %322 = vector.broadcast %314 : vector<32x1xf32> to vector<32x22xf32>
    %323 = arith.subf %307, %322 : vector<32x22xf32>
    %cst_96 = arith.constant 9.99999974E-6 : f32
    %324 = vector.broadcast %cst_96 : f32 to vector<32x1xf32>
    %325 = arith.addf %321, %324 : vector<32x1xf32>
    %326 = math.rsqrt %325 : vector<32x1xf32>
    %327 = vector.broadcast %326 : vector<32x1xf32> to vector<32x22xf32>
    %328 = arith.mulf %323, %327 : vector<32x22xf32>
    %329 = arith.truncf %328 : vector<32x22xf32> to vector<32x22xbf16>
    %c0_97 = arith.constant 0 : index
    %c0_98 = arith.constant 0 : index
    %330 = vector.load %arg23[%c0_97, %c0_98] : memref<22x36xbf16, #tpu.memory_space<vmem>>, vector<22x36xbf16>
    %cst_99 = arith.constant dense<0.000000e+00> : vector<32x36xf32>
    %331 = tpu.matmul %329, %330, %cst_99 {dimension_numbers = #tpu.dot_dimension_numbers<[1], [0], [0], [1], [0, 0, 1, 1], [], []>} : vector<32x22xbf16>, vector<22x36xbf16>, vector<32x36xf32> -> vector<32x36xf32>
    %332 = arith.addf %331, %255 : vector<32x36xf32>
    %c0_100 = arith.constant 0 : index
    %c0_101 = arith.constant 0 : index
    %333 = vector.load %arg24[%c0_100, %c0_101] : memref<36x16xf32, #tpu.memory_space<vmem>>, vector<36x16xf32>
    %cst_102 = arith.constant dense<0.000000e+00> : vector<32x16xf32>
    %334 = tpu.matmul %332, %333, %cst_102 {dimension_numbers = #tpu.dot_dimension_numbers<[1], [0], [0], [1], [0, 0, 1, 1], [], []>} : vector<32x36xf32>, vector<36x16xf32>, vector<32x16xf32> -> vector<32x16xf32>
    %c0_103 = arith.constant 0 : index
    %c0_104 = arith.constant 0 : index
    %c0_105 = arith.constant 0 : index
    %335 = vector.load %arg25[%c0_103, %c0_104, %c0_105] : memref<1x32x16xf32, #tpu.memory_space<vmem>>, vector<1x32x16xf32>
    %336 = vector.shape_cast %335 : vector<1x32x16xf32> to vector<32x16xf32>
    %337 = vector.shape_cast %334 : vector<32x16xf32> to vector<1x32x16xf32>
    tpu.vector_store %arg25[%c0_103, %c0_104, %c0_105], %337 {strides = array<i32>} : memref<1x32x16xf32, #tpu.memory_space<vmem>>, vector<1x32x16xf32>,
    return
  }
  func.func @transform_0(%arg0: i32) -> (i32, i32, i32) {
    %c0_i32 = arith.constant 0 : i32
    %c0_i32_0 = arith.constant 0 : i32
    %c0_i32_1 = arith.constant 0 : i32
    return %arg0, %c0_i32, %c0_i32_0 : i32, i32, i32
  }
  func.func @transform_1(%arg0: i32) -> (i32, i32) {
    %c0_i32 = arith.constant 0 : i32
    %c0_i32_0 = arith.constant 0 : i32
    %c0_i32_1 = arith.constant 0 : i32
    return %c0_i32, %c0_i32_0 : i32, i32
  }
  func.func @transform_2(%arg0: i32) -> (i32, i32) {
    %c0_i32 = arith.constant 0 : i32
    %c0_i32_0 = arith.constant 0 : i32
    %c0_i32_1 = arith.constant 0 : i32
    return %c0_i32, %c0_i32_0 : i32, i32
  }
  func.func @transform_3(%arg0: i32) -> (i32, i32) {
    %c0_i32 = arith.constant 0 : i32
    %c0_i32_0 = arith.constant 0 : i32
    %c0_i32_1 = arith.constant 0 : i32
    return %c0_i32, %c0_i32_0 : i32, i32
  }
  func.func @transform_4(%arg0: i32) -> (i32, i32) {
    %c0_i32 = arith.constant 0 : i32
    %c0_i32_0 = arith.constant 0 : i32
    %c0_i32_1 = arith.constant 0 : i32
    return %c0_i32, %c0_i32_0 : i32, i32
  }
  func.func @transform_5(%arg0: i32) -> (i32, i32) {
    %c0_i32 = arith.constant 0 : i32
    %c0_i32_0 = arith.constant 0 : i32
    %c0_i32_1 = arith.constant 0 : i32
    return %c0_i32, %c0_i32_0 : i32, i32
  }
  func.func @transform_6(%arg0: i32) -> (i32, i32) {
    %c0_i32 = arith.constant 0 : i32
    %c0_i32_0 = arith.constant 0 : i32
    %c0_i32_1 = arith.constant 0 : i32
    return %c0_i32, %c0_i32_0 : i32, i32
  }
  func.func @transform_7(%arg0: i32) -> (i32, i32) {
    %c0_i32 = arith.constant 0 : i32
    %c0_i32_0 = arith.constant 0 : i32
    %c0_i32_1 = arith.constant 0 : i32
    return %c0_i32, %c0_i32_0 : i32, i32
  }
  func.func @transform_8(%arg0: i32) -> (i32, i32) {
    %c0_i32 = arith.constant 0 : i32
    %c0_i32_0 = arith.constant 0 : i32
    %c0_i32_1 = arith.constant 0 : i32
    return %c0_i32, %c0_i32_0 : i32, i32
  }
  func.func @transform_9(%arg0: i32) -> (i32, i32) {
    %c0_i32 = arith.constant 0 : i32
    %c0_i32_0 = arith.constant 0 : i32
    %c0_i32_1 = arith.constant 0 : i32
    return %c0_i32, %c0_i32_0 : i32, i32
  }
  func.func @transform_10(%arg0: i32) -> (i32, i32) {
    %c0_i32 = arith.constant 0 : i32
    %c0_i32_0 = arith.constant 0 : i32
    %c0_i32_1 = arith.constant 0 : i32
    return %c0_i32, %c0_i32_0 : i32, i32
  }
  func.func @transform_11(%arg0: i32) -> (i32, i32) {
    %c0_i32 = arith.constant 0 : i32
    %c0_i32_0 = arith.constant 0 : i32
    %c0_i32_1 = arith.constant 0 : i32
    return %c0_i32, %c0_i32_0 : i32, i32
  }
  func.func @transform_12(%arg0: i32) -> (i32, i32) {
    %c0_i32 = arith.constant 0 : i32
    %c0_i32_0 = arith.constant 0 : i32
    %c0_i32_1 = arith.constant 0 : i32
    return %c0_i32, %c0_i32_0 : i32, i32
  }
  func.func @transform_13(%arg0: i32) -> (i32, i32) {
    %c0_i32 = arith.constant 0 : i32
    %c0_i32_0 = arith.constant 0 : i32
    %c0_i32_1 = arith.constant 0 : i32
    return %c0_i32, %c0_i32_0 : i32, i32
  }
  func.func @transform_14(%arg0: i32) -> (i32, i32) {
    %c0_i32 = arith.constant 0 : i32
    %c0_i32_0 = arith.constant 0 : i32
    %c0_i32_1 = arith.constant 0 : i32
    return %c0_i32, %c0_i32_0 : i32, i32
  }
  func.func @transform_15(%arg0: i32) -> (i32, i32) {
    %c0_i32 = arith.constant 0 : i32
    %c0_i32_0 = arith.constant 0 : i32
    %c0_i32_1 = arith.constant 0 : i32
    return %c0_i32, %c0_i32_0 : i32, i32
  }
  func.func @transform_16(%arg0: i32) -> (i32, i32) {
    %c0_i32 = arith.constant 0 : i32
    %c0_i32_0 = arith.constant 0 : i32
    %c0_i32_1 = arith.constant 0 : i32
    return %c0_i32, %c0_i32_0 : i32, i32
  }
  func.func @transform_17(%arg0: i32) -> (i32, i32) {
    %c0_i32 = arith.constant 0 : i32
    %c0_i32_0 = arith.constant 0 : i32
    %c0_i32_1 = arith.constant 0 : i32
    return %c0_i32, %c0_i32_0 : i32, i32
  }
  func.func @transform_18(%arg0: i32) -> (i32, i32) {
    %c0_i32 = arith.constant 0 : i32
    %c0_i32_0 = arith.constant 0 : i32
    %c0_i32_1 = arith.constant 0 : i32
    return %c0_i32, %c0_i32_0 : i32, i32
  }
  func.func @transform_19(%arg0: i32) -> (i32, i32) {
    %c0_i32 = arith.constant 0 : i32
    %c0_i32_0 = arith.constant 0 : i32
    %c0_i32_1 = arith.constant 0 : i32
    return %c0_i32, %c0_i32_0 : i32, i32
  }
  func.func @transform_20(%arg0: i32) -> (i32, i32) {
    %c0_i32 = arith.constant 0 : i32
    %c0_i32_0 = arith.constant 0 : i32
    %c0_i32_1 = arith.constant 0 : i32
    return %c0_i32, %c0_i32_0 : i32, i32
  }
  func.func @transform_21(%arg0: i32) -> (i32, i32) {
    %c0_i32 = arith.constant 0 : i32
    %c0_i32_0 = arith.constant 0 : i32
    %c0_i32_1 = arith.constant 0 : i32
    return %c0_i32, %c0_i32_0 : i32, i32
  }
  func.func @transform_22(%arg0: i32) -> (i32, i32) {
    %c0_i32 = arith.constant 0 : i32
    %c0_i32_0 = arith.constant 0 : i32
    %c0_i32_1 = arith.constant 0 : i32
    return %c0_i32, %c0_i32_0 : i32, i32
  }
  func.func @transform_23(%arg0: i32) -> (i32, i32) {
    %c0_i32 = arith.constant 0 : i32
    %c0_i32_0 = arith.constant 0 : i32
    %c0_i32_1 = arith.constant 0 : i32
    return %c0_i32, %c0_i32_0 : i32, i32
  }
  func.func @transform_24(%arg0: i32) -> (i32, i32, i32) {
    %c0_i32 = arith.constant 0 : i32
    %c0_i32_0 = arith.constant 0 : i32
    %c0_i32_1 = arith.constant 0 : i32
    return %arg0, %c0_i32, %c0_i32_0 : i32, i32, i32
  }
}

</mosaic_0001>

<bundles_post_ra>
// kernel: forward.1
= control target key start
LH: loop header
LB: loop body
LE: loop exit
PB: predicated region body
PF: predicated region fallthrough
CT: control target
= control target key end

     0   :  { %s9349_s0 = inlined_call_operand.vmem [shape: f32[2,4,256], index: 0, kind: input, shape index: {}]   ;;  %s9350_s1 = inlined_call_operand.vmem [shape: bf16[256,484], index: 1, kind: input, shape index: {}]   ;;  %s9351_s2 = inlined_call_operand.vmem [shape: bf16[8,196], index: 2, kind: input, shape index: {}]   ;;  %s9352_s3 = inlined_call_operand.vmem [shape: f32[1,346], index: 3, kind: input, shape index: {}]   ;;  %s9353_s4 = inlined_call_operand.vmem [shape: bf16[346,324], index: 4, kind: input, shape index: {}]   ;;  %s9354_s5 = inlined_call_operand.vmem [shape: bf16[16,128], index: 5, kind: input, shape index: {}]   ;;  %s9355_s6 = inlined_call_operand.vmem [shape: f32[1,267], index: 6, kind: input, shape index: {}]   ;;  %s9356_s7 = inlined_call_operand.vmem [shape: bf16[267,100], index: 7, kind: input, shape index: {}]   ;;  %s9357_s8 = inlined_call_operand.vmem [shape: bf16[32,256], index: 8, kind: input, shape index: {}]   ;;  %s9358_s9 = inlined_call_operand.vmem [shape: f32[1,67], index: 9, kind: input, shape index: {}]   ;;  %s9359_s10 = inlined_call_operand.vmem [shape: bf16[67,36], index: 10, kind: input, shape index: {}]   ;;  %s9360_s11 = inlined_call_operand.vmem [shape: bf16[32,288], index: 11, kind: input, shape index: {}]   ;;  %s9361_s12 = inlined_call_operand.vmem [shape: f32[1,22], index: 12, kind: input, shape index: {}, may-alias: {12,15,18,21}]   ;;  %s9362_s13 = inlined_call_operand.vmem [shape: bf16[22,36], index: 13, kind: input, shape index: {}, may-alias: {13,16,19,22}]   ;;  %s9363_s14 = inlined_call_operand.vmem [shape: bf16[32,288], index: 14, kind: input, shape index: {}]   ;;  %s9364_s15 = inlined_call_operand.vmem [shape: f32[1,22], index: 15, kind: input, shape index: {}, may-alias: {12,15,18,21}]   ;;  %s9365_s16 = inlined_call_operand.vmem [shape: bf16[22,36], index: 16, kind: input, shape index: {}, may-alias: {13,16,19,22}]   ;;  %s9366_s17 = inlined_call_operand.vmem [shape: bf16[32,288], index: 17, kind: input, shape index: {}]   ;;  %s9367_s18 = inlined_call_operand.vmem [shape: f32[1,22], index: 18, kind: input, shape index: {}, may-alias: {12,15,18,21}]   ;;  %s9368_s19 = inlined_call_operand.vmem [shape: bf16[22,36], index: 19, kind: input, shape index: {}, may-alias: {13,16,19,22}]   ;;  %s9369_s20 = inlined_call_operand.vmem [shape: bf16[32,288], index: 20, kind: input, shape index: {}]   ;;  %s9370_s21 = inlined_call_operand.vmem [shape: f32[1,22], index: 21, kind: input, shape index: {}, may-alias: {12,15,18,21}]   ;;  %s9371_s22 = inlined_call_operand.vmem [shape: bf16[22,36], index: 22, kind: input, shape index: {}, may-alias: {13,16,19,22}]   ;;  %s9372_s23 = inlined_call_operand.vmem [shape: f32[36,16], index: 23, kind: input, shape index: {}]   ;;  %s9373_s24 = inlined_call_operand.vmem [shape: f32[2,32,16], index: 24, kind: output, shape index: {}]  }
   0x1   :  { %9440 = sst [smem:[#allocation25_spill]] %s9349_s0 }
   0x2   :  { %9441 = sst [smem:[#allocation26_spill]] %s9350_s1 }
   0x3   :  { %9442 = sst [smem:[#allocation27_spill]] %s9351_s2 }
   0x4   :  { %9443 = sst [smem:[#allocation28_spill]] %s9352_s3 }
   0x5   :  { %9444 = sst [smem:[#allocation29_spill]] %s9353_s4 }
   0x6   :  { %9445 = sst [smem:[#allocation30_spill]] %s9354_s5  ;;  %s7486_s5 = smov 0  }
   0x7   :  { %9446 = sst [smem:[#allocation31_spill]] %s9355_s6 }
   0x8   :  { %9447 = sst [smem:[#allocation32_spill]] %s9356_s7 }
   0x9   :  { %9448 = sst [smem:[#allocation33_spill]] %s9357_s8 }
   0xa   :  { %9449 = sst [smem:[#allocation34_spill]] %s9358_s9 }
   0xb   :  { %9450 = sst [smem:[#allocation35_spill]] %s9373_s24 }
   0xc LB: > { %9451 = sst [smem:[#allocation2_spill]] %s7311_s5  ;;  %s5471_s26 = sadd.s32 4294967295, %s7311_s5   ;;  %s7311_s5 = sphi %s7486_s5, %s34_s5  }
   0xd   : > { %p5475_p0 = scmp.ge.s32.totalorder %s7311_s5, 1  ;;  %p662_p1 = scmp.lt.s32.totalorder %s7311_s5, 3 }
   0xf   : > { %p663_p2 = pnand %p5475_p0, %p662_p1 }
  0x11   : > { %666 = sbr.rel (%p663_p2) target bundleno = 6164 (0x1814), region = 116 }
  0x18   : > { %s9452_s6 = sld [smem:[#allocation26_spill]]  ;;  %p728_p3 = scmp.lt.s32.totalorder %s5471_s26, 1  ;;  %vm1405_vm0 = vcmask 1043456   ;;  %vm1235_vm1 = vcmask 1031168   ;;  %vm1474_vm2 = vcmask 875520   ;;  %vm1259_vm3 = vcmask 1014784  }
  0x19   : > { %s9453_s3 = sld [smem:[#allocation25_spill]]  ;;  %s7313_s1 = smov 101   ;;  %vm1283_vm4 = vcmask 998400   ;;  %vm1247_vm5 = vcmask 1022976   ;;  %vm1223_vm6 = vcmask 1039360   ;;  %vm1307_vm7 = vcmask 859136  }
  0x1a   : > { %s9556_s26 = smov (!%p728_p3, %s5471_s26), 1  ;;  %s9412_s27 = smov 107   ;;  %vm1331_vm8 = vcmask 842752   ;;  %vm1382_vm9 = vcmask 687104   ;;  %vm1295_vm10 = vcmask 867328   ;;  %vm1458_vm11 = vcmask 883712  }
  0x1b   : > { %s5708_s4 = sshll.u32 %s9556_s26, 3  ;;  %s9422_s28 = smov 126   ;;  %vm1319_vm12 = vcmask 850944   ;;  %vm1343_vm13 = vcmask 834560   ;;  %vm1355_vm14 = vcmask 826368   ;;  %vm1367_vm15 = vcmask 818176  }
  0x1c   : > { %s7317_s2 = smov 84   ;;  %s7318_s29 = smov 86  }
  0x1d   : > { %s7319_s0 = smov 124   ;;  %s7321_s7 = smov 88  }
  0x1e   : > { %v7003_v0 = vld [vmem:[%s9452_s6 + $0x4] ss:$16 sps:$4 sm:$0xff]   ;;  %v7005_v1 = vld [vmem:[%s9452_s6 + $0xc] ss:$16 sps:$4 sm:$0xff]   ;;  %v7007_v2 = vld [vmem:[%s9452_s6] ss:$16 sps:$4 sm:$0xff]  }
  0x1f   : > { %1129 = vmatprep.subr.bf16.mxu0 %v7003_v0  ;;  %v7008_v3 = vld [vmem:[%s9452_s6 + $0x8] ss:$16 sps:$4 sm:$0xff]   ;;  %1170 = vmatprep.subr.bf16.mxu1 %v7005_v1  ;;  %v7009_v4 = vld [vmem:[%s9452_s6 + $0x24] ss:$16 sps:$4 sm:$0xff]   ;;  %v7011_v5 = vld [vmem:[%s9452_s6 + $0x2c] ss:$16 sps:$4 sm:$0xff]   ;;  %s732_s25 = scalar_lea.vmem %s9453_s3, %s5708_s4 }
  0x20   : > { %1130 = vmatpush1.bf16.msra.mxu0 %v7007_v2  ;;  %1171 = vmatpush1.bf16.msra.mxu1 %v7008_v3  ;;  %v7013_v6 = vld [vmem:[%s9452_s6 + $0x20] ss:$16 sps:$4 sm:$0xff]   ;;  %v7014_v7 = vld [vmem:[%s9452_s6 + $0x28] ss:$16 sps:$4 sm:$0xff]   ;;  %v7015_v8 = vld [vmem:[%s9452_s6 + $0x44] ss:$16 sps:$4 sm:$0xff]  }
  0x21   : > { %1131 = vmatprep.subr.bf16.mxu0 %v7009_v4  ;;  %1172 = vmatprep.subr.bf16.mxu1 %v7011_v5  ;;  %v7017_v9 = vld [vmem:[%s9452_s6 + $0x4c] ss:$16 sps:$4 sm:$0xff]   ;;  %v7019_v10 = vld [vmem:[%s9452_s6 + $0x40] ss:$16 sps:$4 sm:$0xff]   ;;  %v7020_v11 = vld [vmem:[%s9452_s6 + $0x48] ss:$16 sps:$4 sm:$0xff]  }
  0x22   : > { %v7021_v12 = vld [vmem:[%s9452_s6 + $0x64] ss:$16 sps:$4 sm:$0xff]   ;;  %v7023_v13 = vld [vmem:[%s9452_s6 + $0x6c] ss:$16 sps:$4 sm:$0xff]   ;;  %v7025_v14 = vld [vmem:[%s9452_s6 + $0x60] ss:$16 sps:$4 sm:$0xff]  }
  0x23   : > { %v7026_v15 = vld [vmem:[%s9452_s6 + $0x68] ss:$16 sps:$4 sm:$0xff]   ;;  %v7027_v16 = vld [vmem:[%s9452_s6 + $0x84] ss:$16 sps:$4 sm:$0xff]   ;;  %v7029_v17 = vld [vmem:[%s9452_s6 + $0x8c] ss:$16 sps:$4 sm:$0xff]  }
  0x24   : > { %1132 = vmatpush1.bf16.msra.mxu0 %v7013_v6  ;;  %1173 = vmatpush1.bf16.msra.mxu1 %v7014_v7  ;;  %v7031_v18 = vld [vmem:[%s9452_s6 + $0x80] ss:$16 sps:$4 sm:$0xff]   ;;  %v7032_v19 = vld [vmem:[%s9452_s6 + $0x88] ss:$16 sps:$4 sm:$0xff]   ;;  %v7033_v20 = vld [vmem:[%s9452_s6 + $0xa4] ss:$16 sps:$4 sm:$0xff]  }
  0x25   : > { %1133 = vmatprep.subr.bf16.mxu0 %v7015_v8  ;;  %1174 = vmatprep.subr.bf16.mxu1 %v7017_v9  ;;  %v7035_v21 = vld [vmem:[%s9452_s6 + $0xac] ss:$16 sps:$4 sm:$0xff]   ;;  %v7037_v22 = vld [vmem:[%s9452_s6 + $0xa0] ss:$16 sps:$4 sm:$0xff]   ;;  %v7038_v23 = vld [vmem:[%s9452_s6 + $0xa8] ss:$16 sps:$4 sm:$0xff]  }
  0x26   : > { %v7039_v24 = vld [vmem:[%s9452_s6 + $0xc4] ss:$16 sps:$4 sm:$0xff]   ;;  %v7041_v25 = vld [vmem:[%s9452_s6 + $0xcc] ss:$16 sps:$4 sm:$0xff]   ;;  %v7043_v26 = vld [vmem:[%s9452_s6 + $0xc0] ss:$16 sps:$4 sm:$0xff]  }
  0x27   : > { %v7044_v27 = vld [vmem:[%s9452_s6 + $0xc8] ss:$16 sps:$4 sm:$0xff]   ;;  %v7045_v28 = vld [vmem:[%s9452_s6 + $0xe4] ss:$16 sps:$4 sm:$0xff]   ;;  %v7047_v29 = vld [vmem:[%s9452_s6 + $0xec] ss:$16 sps:$4 sm:$0xff]  }
  0x28   : > { %1134 = vmatpush1.bf16.msra.mxu0 %v7019_v10  ;;  %1175 = vmatpush1.bf16.msra.mxu1 %v7020_v11  ;;  %v7049_v30 = vld [vmem:[%s9452_s6 + $0xe0] ss:$16 sps:$4 sm:$0xff]   ;;  %v7050_v31 = vld [vmem:[%s9452_s6 + $0xe8] ss:$16 sps:$4 sm:$0xff]   ;;  %v7051_v32 = vld [vmem:[%s9452_s6 + $0x104] ss:$16 sps:$4 sm:$0xff]  }
  0x29   : > { %1135 = vmatprep.subr.bf16.mxu0 %v7021_v12  ;;  %1176 = vmatprep.subr.bf16.mxu1 %v7023_v13  ;;  %v7053_v33 = vld [vmem:[%s9452_s6 + $0x10c] ss:$16 sps:$4 sm:$0xff]   ;;  %v7055_v34 = vld [vmem:[%s9452_s6 + $0x100] ss:$16 sps:$4 sm:$0xff]   ;;  %v7056_v35 = vld [vmem:[%s9452_s6 + $0x108] ss:$16 sps:$4 sm:$0xff]  }
  0x2a   : > { %v7057_v36 = vld [vmem:[%s9452_s6 + $0x124] ss:$16 sps:$4 sm:$0xff]   ;;  %v7059_v37 = vld [vmem:[%s9452_s6 + $0x12c] ss:$16 sps:$4 sm:$0xff]   ;;  %v7061_v38 = vld [vmem:[%s9452_s6 + $0x120] ss:$16 sps:$4 sm:$0xff]  }
  0x2b   : > { %v7062_v39 = vld [vmem:[%s9452_s6 + $0x128] ss:$16 sps:$4 sm:$0xff]   ;;  %v7063_v40 = vld [vmem:[%s9452_s6 + $0x144] ss:$16 sps:$4 sm:$0xff]   ;;  %v7065_v41 = vld [vmem:[%s9452_s6 + $0x14c] ss:$16 sps:$4 sm:$0xff]  }
  0x2c   : > { %1136 = vmatpush1.bf16.msra.mxu0 %v7025_v14  ;;  %1177 = vmatpush1.bf16.msra.mxu1 %v7026_v15  ;;  %v7067_v42 = vld [vmem:[%s9452_s6 + $0x140] ss:$16 sps:$4 sm:$0xff]   ;;  %v7068_v43 = vld [vmem:[%s9452_s6 + $0x148] ss:$16 sps:$4 sm:$0xff]   ;;  %v7069_v44 = vld [vmem:[%s9452_s6 + $0x164] ss:$16 sps:$4 sm:$0xff]  }
  0x2d   : > { %1137 = vmatprep.subr.bf16.mxu0 %v7027_v16  ;;  %1178 = vmatprep.subr.bf16.mxu1 %v7029_v17  ;;  %v7071_v45 = vld [vmem:[%s9452_s6 + $0x16c] ss:$16 sps:$4 sm:$0xff]   ;;  %v7073_v46 = vld [vmem:[%s9452_s6 + $0x160] ss:$16 sps:$4 sm:$0xff]   ;;  %v7074_v47 = vld [vmem:[%s9452_s6 + $0x168] ss:$16 sps:$4 sm:$0xff]  }
  0x2e   : > { %v739_v48 = vld [vmem:[%s732_s25] sm:$0xff]  ;;  %v7077_v50 = vld [vmem:[%s9452_s6 + $0x18c] ss:$16 sps:$4 sm:$0xff]   ;;  %v7080_v54 = vld [vmem:[%s9452_s6 + $0x188] ss:$16 sps:$4 sm:$0xff]   ;;  %s9379_s25 = smov 122  }
  0x2f   : > { %v7075_v49 = vld [vmem:[%s9452_s6 + $0x184] ss:$16 sps:$4 sm:$0xff]   ;;  %v741_v51 = vcombine.high %v739_v48, %v739_v48  ;;  %v7079_v53 = vld [vmem:[%s9452_s6 + $0x180] ss:$16 sps:$4 sm:$0xff]   ;;  %v7083_v56 = vld [vmem:[%s9452_s6 + $0x1ac] ss:$16 sps:$4 sm:$0xff]   ;;  %v743_v3 = vpack.c.bf16 %v739_v48, %v739_v48 }
  0x30   : > { %1138 = vmatpush1.bf16.msra.mxu0 %v7031_v18  ;;  %1179 = vmatpush1.bf16.msra.mxu1 %v7032_v19  ;;  %v7081_v55 = vld [vmem:[%s9452_s6 + $0x1a4] ss:$16 sps:$4 sm:$0xff]   ;;  %v7085_v57 = vld [vmem:[%s9452_s6 + $0x1a0] ss:$16 sps:$4 sm:$0xff]   ;;  %v7086_v58 = vld [vmem:[%s9452_s6 + $0x1a8] ss:$16 sps:$4 sm:$0xff]  }
  0x31   : > { %1139 = vmatprep.subr.bf16.mxu0 %v7033_v20  ;;  %1180 = vmatprep.subr.bf16.mxu1 %v7035_v21  ;;  %v744_v52 = vpack.c.bf16 %v741_v51, %v741_v51  ;;  %v7087_v59 = vld [vmem:[%s9452_s6 + $0x1c4] ss:$16 sps:$4 sm:$0xff]   ;;  %v7089_v60 = vld [vmem:[%s9452_s6 + $0x1cc] ss:$16 sps:$4 sm:$0xff]   ;;  %v7091_v61 = vld [vmem:[%s9452_s6 + $0x1c0] ss:$16 sps:$4 sm:$0xff]  }
  0x32   : > { %v7092_v62 = vld [vmem:[%s9452_s6 + $0x1c8] ss:$16 sps:$4 sm:$0xff]   ;;  %v7093_v63 = vld [vmem:[%s9452_s6 + $0x1e4] ss:$16 sps:$4 sm:$0xff]   ;;  %v7095_v0 = vld [vmem:[%s9452_s6 + $0x1ec] ss:$16 sps:$4 sm:$0xff]  }
  0x33   : > { %1161 = vmatprep.mubr.bf16.mxu0 %v744_v52  ;;  %1202 = vmatprep.mubr.bf16.mxu1 %v744_v52  ;;  %v7097_v1 = vld [vmem:[%s9452_s6 + $0x1e0] ss:$16 sps:$4 sm:$0xff]   ;;  %v7098_v2 = vld [vmem:[%s9452_s6 + $0x1e8] ss:$16 sps:$4 sm:$0xff]   ;;  %s9414_s4 = smov 109   ;;  %s9381_s5 = smov 105  }
  0x34   : > { %1140 = vmatpush1.bf16.msra.mxu0 %v7037_v22  ;;  %1181 = vmatpush1.bf16.msra.mxu1 %v7038_v23  ;;  %s7323_s30 = smov 100   ;;  %s7324_s3 = smov 103   ;;  %v9385_v20 = vmov 0  }
  0x35   : > { %1141 = vmatprep.subr.bf16.mxu0 %v7039_v24  ;;  %1182 = vmatprep.subr.bf16.mxu1 %v7041_v25  ;;  %s9418_s8 = smov 125   ;;  %s7348_s6 = smov 71  }
  0x36   : > { %s9541_s24 = smov 127   ;;  %s9546_s9 = sld [smem:[#allocation34_spill]] }
  0x38   : > { %1142 = vmatpush1.bf16.msra.mxu0 %v7043_v26  ;;  %1183 = vmatpush1.bf16.msra.mxu1 %v7044_v27 }
  0x39   : > { %1143 = vmatprep.subr.bf16.mxu0 %v7045_v28  ;;  %1184 = vmatprep.subr.bf16.mxu1 %v7047_v29 }
  0x3c   : > { %1144 = vmatpush1.bf16.msra.mxu0 %v7049_v30  ;;  %1185 = vmatpush1.bf16.msra.mxu1 %v7050_v31 }
  0x3d   : > { %1145 = vmatprep.subr.bf16.mxu0 %v7051_v32  ;;  %1186 = vmatprep.subr.bf16.mxu1 %v7053_v33 }
  0x40   : > { %1146 = vmatpush1.bf16.msra.mxu0 %v7055_v34  ;;  %1187 = vmatpush1.bf16.msra.mxu1 %v7056_v35 }
  0x41   : > { %1147 = vmatprep.subr.bf16.mxu0 %v7057_v36  ;;  %1188 = vmatprep.subr.bf16.mxu1 %v7059_v37 }
  0x44   : > { %1148 = vmatpush1.bf16.msra.mxu0 %v7061_v38  ;;  %1189 = vmatpush1.bf16.msra.mxu1 %v7062_v39 }
  0x45   : > { %1149 = vmatprep.subr.bf16.mxu0 %v7063_v40  ;;  %1190 = vmatprep.subr.bf16.mxu1 %v7065_v41 }
  0x48   : > { %1150 = vmatpush1.bf16.msra.mxu0 %v7067_v42  ;;  %1191 = vmatpush1.bf16.msra.mxu1 %v7068_v43 }
  0x49   : > { %1151 = vmatprep.subr.bf16.mxu0 %v7069_v44  ;;  %1192 = vmatprep.subr.bf16.mxu1 %v7071_v45 }
  0x4c   : > { %1152 = vmatpush1.bf16.msra.mxu0 %v7073_v46  ;;  %1193 = vmatpush1.bf16.msra.mxu1 %v7074_v47 }
  0x4d   : > { %1153 = vmatprep.subr.bf16.mxu0 %v7075_v49  ;;  %1194 = vmatprep.subr.bf16.mxu1 %v7077_v50 }
  0x50   : > { %1154 = vmatpush1.bf16.msra.mxu0 %v7079_v53  ;;  %1195 = vmatpush1.bf16.msra.mxu1 %v7080_v54 }
  0x51   : > { %1155 = vmatprep.subr.bf16.mxu0 %v7081_v55  ;;  %1196 = vmatprep.subr.bf16.mxu1 %v7083_v56 }
  0x54   : > { %1156 = vmatpush1.bf16.msra.mxu0 %v7085_v57  ;;  %1197 = vmatpush1.bf16.msra.mxu1 %v7086_v58 }
  0x55   : > { %1157 = vmatprep.subr.bf16.mxu0 %v7087_v59  ;;  %1198 = vmatprep.subr.bf16.mxu1 %v7089_v60 }
  0x58   : > { %1158 = vmatpush1.bf16.msra.mxu0 %v7091_v61  ;;  %1199 = vmatpush1.bf16.msra.mxu1 %v7092_v62 }
  0x59   : > { %1159 = vmatprep.subr.bf16.mxu0 %v7093_v63  ;;  %1200 = vmatprep.subr.bf16.mxu1 %v7095_v0 }
  0x5c   : > { %1160 = vmatpush1.bf16.msra.mxu0 %v7097_v1  ;;  %1201 = vmatpush1.bf16.msra.mxu1 %v7098_v2 }
  0x5d   : > { %2023 = vmatprep.subr.bf16.mxu1 %v9385_v20 }
  0x5f   : > { %1162 = vmatmul.mubr.bf16.vlgmr.msra.gmra.mrb[0].mxu0 %v743_v3  ;;  %1203 = vmatmul.mubr.bf16.vlgmr.msra.gmra.mrb[0].mxu1 %v743_v3 }
 0x132   : > { %v7696_v4 = vpop.f32.mrb[0].mxu0  ;;  %v7698_v5 = vpop.f32.mrb[0].mxu1 }
 0x133   : > { %v7701_v6 = vrot.slane %v7696_v4, 4  ;;  %v1216_v7 = vrot.slane %v7698_v5, 4  ;;  %v7704_v8 = vpop.f32.mrb[1].mxu1  ;;  %1349 = vrot.lane.b32.xlu0 %v7696_v4, %s7313_s1  ;;  %1277 = vrot.lane.b32.xlu1 %v7696_v4, %s9379_s25  ;;  %v7710_v9 = vpop.f32.mrb[1].mxu0 }
 0x134   : > { %9454 = vst [vmem:[#allocation3_spill] sm:$0xff] %v7704_v8  ;;  %v1389_v10 = vrot.slane %v7704_v8, 4  ;;  %v1215_v11 = vrot.slane %v7710_v9, 4  ;;  %v1167_v12 = vpop.f32.mrb[2].mxu0  ;;  %v1208_v13 = vpop.f32.mrb[2].mxu1  ;;  %v7716_v14 = vpack.i.bf16 %v7698_v5, %v7710_v9  ;;  %v6223_v17 = vpack.i.bf16 %v7696_v4, %v7704_v8 }
 0x135   : > { %v1168_v15 = vpop.f32.mrb[3].mxu0  ;;  %v1209_v16 = vpop.f32.mrb[3].mxu1 }
 0x136   : > { %9455 = vst [vmem:[#allocation4_spill] sm:$0xff] %v7716_v14  ;;  %v7724_v18 = vpack.i.bf16 %v1216_v7, %v1215_v11  ;;  %v6273_v19 = vpack.i.bf16 %v7701_v6, %v1389_v10 }
 0x137   : > { %6189 = vrot.lane.b32.xlu1 %v7716_v14, %s9412_s27  ;;  %6169 = vrot.lane.b32.xlu0 %v7716_v14, %s9422_s28 }
 0x13b   : > { %6224 = vrot.lane.b32.xlu1 %v6223_v17, %s7317_s2  ;;  %6174 = vrot.lane.b32.xlu0 %v6223_v17, %s9422_s28 }
 0x13f   : > { %6234 = vrot.lane.b32.xlu1 %v6223_v17, %s7318_s29  ;;  %6179 = vrot.lane.b32.xlu0 %v7716_v14, %s7319_s0 }
 0x143   : > { %6244 = vrot.lane.b32.xlu1 %v6223_v17, %s9414_s4  ;;  %6184 = vrot.lane.b32.xlu0 %v6223_v17, %s7319_s0  ;;  %s9426_s0 = smov 127  }
 0x147   : > { %1598 = vrot.lane.b32.xlu1 %v7704_v8, %s7321_s7  ;;  %6194 = vrot.lane.b32.xlu0 %v6223_v17, %s9412_s27  ;;  %s7346_s27 = smov 89  }
 0x14b   : > { %6254 = vrot.lane.b32.xlu1 %v7716_v14, %s9379_s25  ;;  %6199 = vrot.lane.b32.xlu0 %v7716_v14, %s9381_s5  ;;  %s9382_s25 = smov 106  }
 0x14f   : > { %1361 = vrot.lane.b32.xlu1 %v7701_v6, %s7323_s30  ;;  %6204 = vrot.lane.b32.xlu0 %v7716_v14, %s7324_s3 }
 0x153   : > { %6209 = vrot.lane.b32.xlu0 %v6223_v17, %s9381_s5  ;;  %6269 = vrot.lane.b32.xlu1 %v7724_v18, %s9418_s8  ;;  %s9416_s5 = smov 108  }
 0x157   : > { %6214 = vrot.lane.b32.xlu0 %v6223_v17, %s7324_s3  ;;  %6274 = vrot.lane.b32.xlu1 %v6273_v19, %s9426_s0  ;;  %s7332_s3 = smov 102  }
 0x15b   : > { %6219 = vrot.lane.b32.xlu0 %v7716_v14, %s7317_s2  ;;  %6279 = vrot.lane.b32.xlu1 %v6273_v19, %s9418_s8  ;;  %s7329_s2 = smov 104   ;;  %s7342_s8 = smov 92  }
 0x15f   : > { %6229 = vrot.lane.b32.xlu0 %v7716_v14, %s7318_s29  ;;  %6284 = vrot.lane.b32.xlu1 %v7724_v18, %s9382_s25  ;;  %s7331_s29 = smov 123  }
 0x163   : > { %6239 = vrot.lane.b32.xlu0 %v7716_v14, %s9414_s4  ;;  %6289 = vrot.lane.b32.xlu1 %v7724_v18, %s9416_s5  ;;  %s9533_s4 = smov 125  }
 0x167   : > { %6249 = vrot.lane.b32.xlu0 %v7716_v14, %s7321_s7  ;;  %6299 = vrot.lane.b32.xlu1 %v6273_v19, %s9382_s25  ;;  %s7334_s7 = smov 85   ;;  %s9420_s25 = smov 110  }
 0x16b   : > { %6259 = vrot.lane.b32.xlu0 %v7716_v14, %s7313_s1  ;;  %6304 = vrot.lane.b32.xlu1 %v7724_v18, %s7329_s2  ;;  %s7333_s1 = smov 83   ;;  %v9468_v14 = vmov 0  }
 0x16f   : > { %1265 = vrot.lane.b32.xlu0 %v7701_v6, %s7331_s29  ;;  %6309 = vrot.lane.b32.xlu1 %v7724_v18, %s7332_s3 }
 0x173   : > { %6314 = vrot.lane.b32.xlu1 %v6273_v19, %s7329_s2  ;;  %6264 = vrot.lane.b32.xlu0 %v7724_v18, %s9426_s0  ;;  %s7336_s2 = smov 87  }
 0x177   : > { %6319 = vrot.lane.b32.xlu1 %v6273_v19, %s7332_s3  ;;  %6294 = vrot.lane.b32.xlu0 %v6273_v19, %s9416_s5  ;;  %s9411_s3 = smov 118   ;;  %s9534_s5 = smov 108  }
 0x17b   : > { %6329 = vrot.lane.b32.xlu1 %v6273_v19, %s7333_s1  ;;  %6324 = vrot.lane.b32.xlu0 %v7724_v18, %s7333_s1  ;;  %s9530_s1 = sld [smem:[#allocation29_spill]] }
 0x17f   : > { %6339 = vrot.lane.b32.xlu1 %v6273_v19, %s7334_s7  ;;  %6334 = vrot.lane.b32.xlu0 %v7724_v18, %s7334_s7  ;;  %s7344_s7 = smov 91  }
 0x183   : > { %6349 = vrot.lane.b32.xlu1 %v6273_v19, %s9420_s25  ;;  %6344 = vrot.lane.b32.xlu0 %v7724_v18, %s9420_s25  ;;  %s9535_s25 = smov 109  }
 0x187   : > { %1611 = vrot.lane.b32.xlu1 %v1389_v10, %s7336_s2  ;;  %6354 = vrot.lane.b32.xlu0 %v7724_v18, %s7336_s2  ;;  %s9528_s2 = sld [smem:[#allocation27_spill]] }
 0x18b   : > { %6364 = vrot.lane.b32.xlu1 %v7724_v18, %s7323_s30  ;;  %6359 = vrot.lane.b32.xlu0 %v7724_v18, %s7331_s29  ;;  %s7337_s30 = smov 82   ;;  %s7338_s29 = smov 36  }
 0x1a5   : > { %v7776_v21 = vpop.permute.xlu0 %1349  ;;  %v7778_v22 = vpop.permute.xlu1 %1277 }
 0x1a9   : > { %v7780_v23 = vpop.permute.xlu1 %6189  ;;  %v6170_v24 = vpop.permute.xlu0 %6169 }
 0x1aa   : > { %v6172_v55 = vunpack.i.h.bf16 %v6170_v24  ;;  %v6171_v56 = vunpack.i.l.bf16 %v6170_v24  ;;  %v6192_v57 = vunpack.i.h.bf16 %v7780_v23  ;;  %v6191_v58 = vunpack.i.l.bf16 %v7780_v23 }
 0x1ac   : > { %v7856_v1 = vsel %vm1235_vm1, %v6171_v56, %v6172_v55  ;;  %v7862_v7 = vsel %vm1474_vm2, %v6191_v58, %v6192_v57 }
 0x1ad   : > { %v7782_v25 = vpop.permute.xlu1 %6224  ;;  %v6175_v26 = vpop.permute.xlu0 %6174  ;;  %9461 = vst [vmem:[#allocation10_spill] sm:$0xff] %v7856_v1  ;;  %9462 = vst [vmem:[#allocation11_spill] sm:$0xff] %v7862_v7 }
 0x1ae   : > { %v7818_v45 = vunpack.i.l.bf16 %v6175_v26  ;;  %v6177_v59 = vunpack.i.h.bf16 %v6175_v26 }
 0x1b0   : > { %v7867_v12 = vsel %vm1235_vm1, %v6177_v59, %v6171_v56  ;;  %v7882_v23 = vsel %vm1235_vm1, %v6172_v55, %v7818_v45 }
 0x1b1   : > { %v7784_v27 = vpop.permute.xlu1 %6234  ;;  %v7786_v28 = vpop.permute.xlu0 %6179  ;;  %9463 = vst [vmem:[#allocation12_spill] sm:$0xff] %v7867_v12 }
 0x1b2   : > { %v7851_v62 = vunpack.i.h.bf16 %v7786_v28  ;;  %v6181_v63 = vunpack.i.l.bf16 %v7786_v28 }
 0x1b4   : > { %v7878_v19 = vsel %vm1259_vm3, %v6181_v63, %v7851_v62 }
 0x1b5   : > { %v7788_v29 = vpop.permute.xlu1 %6244  ;;  %v7790_v30 = vpop.permute.xlu0 %6184 }
 0x1b6   : > { %9456 = vst [vmem:[#allocation5_spill] sm:$0xff] %v7788_v29  ;;  %v6187_v0 = vunpack.i.h.bf16 %v7790_v30  ;;  %v6186_v2 = vunpack.i.l.bf16 %v7790_v30 }
 0x1b8   : > { %v7885_v24 = vsel %vm1259_vm3, %v6187_v0, %v6181_v63 }
 0x1b9   : > { %v7792_v31 = vpop.permute.xlu1 %1598  ;;  %v7794_v32 = vpop.permute.xlu0 %6194 }
 0x1ba   : > { %v6197_v3 = vunpack.i.h.bf16 %v7794_v32  ;;  %v6196_v6 = vunpack.i.l.bf16 %v7794_v32 }
 0x1bc   : > { %v7901_v56 = vsel %vm1474_vm2, %v6192_v57, %v6196_v6 }
 0x1bd   : > { %v7796_v33 = vpop.permute.xlu1 %6254  ;;  %v7798_v34 = vpop.permute.xlu0 %6199  ;;  %9464 = vst [vmem:[#allocation13_spill] sm:$0xff] %v7901_v56 }
 0x1be   : > { %v9384_v13 = vunpack.i.l.bf16 %v7796_v33  ;;  %v7910_v59 = vunpack.i.h.bf16 %v7798_v34  ;;  %v6201_v63 = vunpack.i.l.bf16 %v7798_v34 }
 0x1c1   : > { %v7800_v35 = vpop.permute.xlu1 %1361  ;;  %v7802_v36 = vpop.permute.xlu0 %6204 }
 0x1c2   : > { %v7914_v0 = vunpack.i.h.bf16 %v7802_v36  ;;  %v6206_v57 = vunpack.i.l.bf16 %v7802_v36 }
 0x1c5   : > { %v7804_v37 = vpop.permute.xlu0 %6209  ;;  %v7806_v38 = vpop.permute.xlu1 %6269 }
 0x1c6   : > { %v7888_v26 = vunpack.i.h.bf16 %v7806_v38  ;;  %v6271_v28 = vunpack.i.l.bf16 %v7806_v38  ;;  %v7907_v38 = vsel %vm1283_vm4, %v7778_v22, %v9384_v13  ;;  %v6212_v22 = vunpack.i.h.bf16 %v7804_v37 }
 0x1c7   : > { %v6211_v20 = vunpack.i.l.bf16 %v7804_v37 }
 0x1c8   : > { %v1411_v10 = vsel %vm1405_vm0, %v6172_v55, %v7888_v26  ;;  %v1249_v11 = vsel %vm1247_vm5, %v6271_v28, %v7888_v26 }
 0x1c9   : > { %v7808_v39 = vpop.permute.xlu0 %6214  ;;  %v7810_v40 = vpop.permute.xlu1 %6274  ;;  %v7948_v37 = vsel %vm1405_vm0, %v7856_v1, %v1249_v11 }
 0x1ca   : > { %9457 = vst [vmem:[#allocation6_spill] sm:$0xff] %v7808_v39  ;;  %v9387_v43 = vunpack.i.l.bf16 %v7810_v40  ;;  %9465 = vst [vmem:[#allocation14_spill] sm:$0xff] %v7948_v37 }
 0x1cc   : > { %v7832_v49 = vsel %vm1405_vm0, %v7704_v8, %v9387_v43 }
 0x1cd   : > { %v7812_v41 = vpop.permute.xlu0 %6219  ;;  %v7814_v42 = vpop.permute.xlu1 %6279 }
 0x1ce   : > { %v9383_v44 = vunpack.i.l.bf16 %v7814_v42  ;;  %v6282_v30 = vunpack.i.h.bf16 %v7814_v42 }
 0x1d0   : > { %v1544_v48 = vsel %vm1405_vm0, %v7818_v45, %v9383_v44  ;;  %v1248_v34 = vsel %vm1247_vm5, %v6282_v30, %v6271_v28 }
 0x1d1   : > { %v7820_v46 = vpop.permute.xlu0 %6229  ;;  %v7822_v47 = vpop.permute.xlu1 %6284  ;;  %v6368_v50 = vpack.i.bf16 %v1544_v48, %v7832_v49  ;;  %v7895_v48 = vsel %vm1259_vm3, %v7851_v62, %v6186_v2  ;;  %vm1398_vm3 = vcmask 678912  }
 0x1d2   : > { %9458 = vst [vmem:[#allocation7_spill] sm:$0xff] %v7820_v46 }
 0x1d3   : > { %6369 = vrot.lane.b32.xlu1 %v6368_v50, %s7337_s30  ;;  %v7898_v50 = vsel %vm1474_vm2, %v6197_v3, %v6191_v58  ;;  %v6277_v3 = vunpack.i.h.bf16 %v7810_v40 }
 0x1d5   : > { %v7836_v51 = vpop.permute.xlu0 %6239  ;;  %v7838_v52 = vpop.permute.xlu1 %6289 }
 0x1d6   : > { %9459 = vst [vmem:[#allocation8_spill] sm:$0xff] %v7836_v51  ;;  %v6286_v51 = vunpack.i.l.bf16 %v7822_v47 }
 0x1d9   : > { %v7840_v53 = vpop.permute.xlu0 %6249  ;;  %v7842_v54 = vpop.permute.xlu1 %6299 }
 0x1da   : > { %9460 = vst [vmem:[#allocation9_spill] sm:$0xff] %v7840_v53  ;;  %v6287_v53 = vunpack.i.h.bf16 %v7822_v47  ;;  %v6302_v56 = vunpack.i.h.bf16 %v7842_v54 }
 0x1dd   : > { %v7846_v60 = vpop.permute.xlu0 %6259  ;;  %v7848_v61 = vpop.permute.xlu1 %6304 }
 0x1e1   : > { %v7870_v15 = vpop.permute.xlu0 %1265  ;;  %v7872_v16 = vpop.permute.xlu1 %6309 }
 0x1e5   : > { %v7916_v18 = vpop.permute.xlu1 %6314  ;;  %v6265_v58 = vpop.permute.xlu0 %6264 }
 0x1e6   : > { %v6267_v17 = vunpack.i.h.bf16 %v6265_v58  ;;  %v6266_v44 = vunpack.i.l.bf16 %v6265_v58 }
 0x1e8   : > { %v1408_v36 = vsel %vm1405_vm0, %v7698_v5, %v6267_v17  ;;  %v1224_v32 = vsel %vm1223_vm6, %v6277_v3, %v6266_v44  ;;  %v1225_v58 = vsel %vm1223_vm6, %v6266_v44, %v6267_v17  ;;  %v7952_v44 = vsel %vm1405_vm0, %v7867_v12, %v1248_v34 }
 0x1e9   : > { %v7932_v43 = vpop.permute.xlu1 %6319  ;;  %v7934_v55 = vpop.permute.xlu0 %6294  ;;  %v1924_v30 = vpack.c.bf16 %v1411_v10, %v1408_v36  ;;  %v1407_v28 = vsel %vm1405_vm0, %v7710_v9, %v1225_v58  ;;  %v7940_v13 = vsel %vm1405_vm0, %v7696_v4, %v1224_v32  ;;  %v9466_v32 = vunpack.i.l.bf16 %v7810_v40 }
 0x1ea   : > { %v7944_v3 = vunpack.i.l.bf16 %v7934_v55  ;;  %v1923_v9 = vpack.c.bf16 %v7948_v37, %v1407_v28  ;;  %v1922_v4 = vpack.c.bf16 %v7952_v44, %v7940_v13  ;;  %v9467_v34 = vunpack.i.l.bf16 %v7842_v54 }
 0x1eb   : > { %2024 = vmatpush1.bf16.msra.mxu1 %v1924_v30  ;;  %v1432_v36 = vsel %vm1223_vm6, %v6267_v17, %v9466_v32  ;;  %v6217_v40 = vunpack.i.h.bf16 %v7808_v39  ;;  %v6222_v17 = vunpack.i.h.bf16 %v7812_v41  ;;  %v9472_v12 = vunpack.i.l.bf16 %v7796_v33 }
 0x1ec   : > { %v1548_v58 = vsel %vm1405_vm0, %v6186_v2, %v7944_v3  ;;  %v7967_v10 = vsel %vm1405_vm0, %v6196_v6, %v9467_v34  ;;  %v1541_v30 = vsel %vm1405_vm0, %v7698_v5, %v1432_v36  ;;  %2025 = vmatprep.subr.bf16.mxu1 %v9468_v14  ;;  %1982 = vmatprep.subr.bf16.mxu0 %v1923_v9  ;;  %v9469_v5 = vunpack.i.l.bf16 %v7932_v43 }
 0x1ed   : > { %v7974_v32 = vpop.permute.xlu1 %6329  ;;  %v7976_v11 = vpop.permute.xlu0 %6324  ;;  %v6373_v2 = vpack.i.bf16 %v7967_v10, %v1548_v58  ;;  %v7979_v8 = vpack.i.bf16 %v1541_v30, %v1407_v28  ;;  %v7983_v6 = vsel %vm1307_vm7, %v6201_v63, %v7910_v59  ;;  %1983 = vmatpush1.bf16.msra.mxu0 %v1922_v4  ;;  %v9470_v36 = vunpack.i.l.bf16 %v7808_v39 }
 0x1ee   : > { %v9471_v34 = vunpack.i.h.bf16 %v7796_v33  ;;  %v7997_v28 = vsel %vm1331_vm8, %v6206_v57, %v7914_v0  ;;  %v8000_v30 = vsel %vm1307_vm7, %v6212_v22, %v6201_v63  ;;  %v6221_v4 = vunpack.i.l.bf16 %v7812_v41 }
 0x1ef   : > { %v1556_v9 = vsel %vm1405_vm0, %v9470_v36, %v9469_v5  ;;  %6374 = vrot.lane.b32.xlu1 %v6373_v2, %s7337_s30  ;;  %v9473_v36 = vunpack.i.l.bf16 %v7916_v18  ;;  %v8017_v41 = vsel %vm1307_vm7, %v7910_v59, %v6211_v20  ;;  %v8020_v47 = vsel %vm1331_vm8, %v6217_v40, %v6206_v57 }
 0x1f0   : > { %v1285_v58 = vsel %vm1283_vm4, %v9472_v12, %v9471_v34  ;;  %v8008_v12 = vunpack.i.l.bf16 %v7976_v11  ;;  %9474 = vst [vmem:[#allocation15_spill] sm:$0xff] %v8017_v41  ;;  %v9475_v22 = vunpack.i.l.bf16 %v7782_v25  ;;  %v8028_v34 = vunpack.i.l.bf16 %v7820_v46 }
 0x1f1   : > { %v8013_v63 = vsel %vm1405_vm0, %v6211_v20, %v9473_v36  ;;  %v8030_v5 = vpop.permute.xlu1 %6339  ;;  %v8032_v1 = vpop.permute.xlu0 %6334  ;;  %v6292_v20 = vunpack.i.h.bf16 %v7838_v52  ;;  %v9483_v46 = vunpack.i.l.bf16 %v7814_v42  ;;  %v9486_v37 = vunpack.i.l.bf16 %v7974_v32 }
 0x1f2   : > { %v8025_v2 = vsel %vm1382_vm9, %v6222_v17, %v9475_v22  ;;  %9477 = vst [vmem:[#allocation17_spill] sm:$0xff] %v8028_v34  ;;  %9478 = vst [vmem:[#allocation18_spill] sm:$0xff] %v8030_v5  ;;  %v6378_v36 = vpack.i.bf16 %v1556_v9, %v8013_v63  ;;  %v8039_v40 = vunpack.i.l.bf16 %v8032_v1  ;;  %v9481_v22 = vunpack.i.h.bf16 %v7782_v25 }
 0x1f3   : > { %9476 = vst [vmem:[#allocation16_spill] sm:$0xff] %v8025_v2  ;;  %9479 = vst [vmem:[#allocation19_spill] sm:$0xff] %v8032_v1  ;;  %v8049_v9 = vsel %vm1295_vm10, %v6286_v51, %v6287_v53  ;;  %v1442_v39 = vsel %vm1247_vm5, %v7888_v26, %v9483_v46  ;;  %v9485_v2 = vunpack.i.l.bf16 %v7784_v27  ;;  %v9487_v42 = vunpack.i.l.bf16 %v7782_v25 }
 0x1f4   : > { %9480 = vst [vmem:[#allocation20_spill] sm:$0xff] %v8039_v40  ;;  %v8044_v7 = vsel %vm1382_vm9, %v9481_v22, %v6221_v4  ;;  %6379 = vrot.lane.b32.xlu1 %v6378_v36, %s7337_s30  ;;  %v1636_v57 = vsel %vm1405_vm0, %v8028_v34, %v8039_v40  ;;  %v1637_v22 = vsel %vm1405_vm0, %v6221_v4, %v8008_v12  ;;  %v8071_v46 = vunpack.i.h.bf16 %v7848_v61 }
 0x1f5   : > { %9482 = vst [vmem:[#allocation21_spill] sm:$0xff] %v8044_v7  ;;  %v9484_v7 = vunpack.i.l.bf16 %v8030_v5  ;;  %v1561_v1 = vsel %vm1405_vm0, %v9487_v42, %v9486_v37  ;;  %v8074_v34 = vpop.permute.xlu1 %6349  ;;  %v8076_v40 = vpop.permute.xlu0 %6344  ;;  %v6403_v5 = vpack.i.bf16 %v1637_v22, %v1636_v57  ;;  %v9489_v37 = vunpack.i.l.bf16 %v7838_v52 }
 0x1f6   : > { %9488 = vst [vmem:[#allocation22_spill] sm:$0xff] %v8076_v40  ;;  %v9405_v25 = vunpack.i.l.bf16 %v8074_v34  ;;  %v8091_v26 = vsel %vm1382_vm9, %v6221_v4, %v6222_v17  ;;  %v1296_v40 = vsel %vm1295_vm10, %v6302_v56, %v6286_v51  ;;  %v6261_v57 = vunpack.i.l.bf16 %v7846_v60 }
 0x1f7   : > { %v1560_v36 = vsel %vm1405_vm0, %v9485_v2, %v9484_v7  ;;  %v8081_v7 = vunpack.i.h.bf16 %v7872_v16  ;;  %v6311_v2 = vunpack.i.l.bf16 %v7872_v16  ;;  %v8088_v42 = vsel %vm1458_vm11, %v9489_v37, %v6292_v20  ;;  %6404 = vrot.lane.b32.xlu0 %v6403_v5, %s7338_s29 }
 0x1f8   : > { %v8078_v41 = vpack.i.bf16 %v1561_v1, %v1560_v36  ;;  %9490 = vst [vmem:[#allocation23_spill] sm:$0xff] %v8088_v42  ;;  %v9406_v1 = vunpack.i.h.bf16 %v7846_v60  ;;  %v9491_v16 = vunpack.i.h.bf16 %v7796_v33  ;;  %v1627_v17 = vsel %vm1405_vm0, %v7818_v45, %v9405_v25 }
 0x1f9   : > { %v8108_v51 = vsel %vm1405_vm0, %v1285_v58, %v8049_v9  ;;  %v8112_v56 = vsel %vm1405_vm0, %v7882_v23, %v1442_v39  ;;  %v9492_v4 = vunpack.i.l.bf16 %v7848_v61  ;;  %v8118_v5 = vpop.permute.xlu1 %1611  ;;  %v8120_v36 = vpop.permute.xlu0 %6354  ;;  %v6388_v45 = vpack.i.bf16 %v1627_v17, %v7832_v49 }
 0x1fa   : > { %6384 = vrot.lane.b32.xlu1 %v8078_v41, %s7337_s30  ;;  %v1417_v22 = vsel %vm1405_vm0, %v9491_v16, %v6287_v53  ;;  %v1546_v58 = vsel %vm1405_vm0, %v7878_v19, %v8088_v42  ;;  %v9493_v37 = vunpack.i.l.bf16 %v7842_v54  ;;  %v9494_v16 = vunpack.i.l.bf16 %v7788_v29 }
 0x1fb   : > { %v1321_v33 = vsel %vm1319_vm12, %v9492_v4, %v8071_v46  ;;  %v1415_v25 = vsel %vm1405_vm0, %v7907_v38, %v1296_v40  ;;  %v1345_v49 = vsel %vm1343_vm13, %v6311_v2, %v8081_v7  ;;  %v8141_v17 = vsel %vm1405_vm0, %v7898_v50, %v1296_v40  ;;  %6414 = vrot.lane.b32.xlu0 %v7979_v8, %s7337_s30 }
 0x1fc   : > { %v8129_v39 = vsel %vm1295_vm10, %v6287_v53, %v9493_v37  ;;  %v1631_v4 = vsel %vm1405_vm0, %v9494_v16, %v7944_v3  ;;  %v8145_v53 = vsel %vm1355_vm14, %v7776_v21, %v6261_v57  ;;  %v8150_v54 = vsel %vm1405_vm0, %v7910_v59, %v8071_v46 }
 0x1fd   : > { %vm1271_vm4 = vcmask 1006592   ;;  %v1357_v50 = vsel %vm1355_vm14, %v6261_v57, %v9406_v1  ;;  %v6297_v38 = vunpack.i.h.bf16 %v7934_v55  ;;  %v8161_v21 = vsel %vm1458_vm11, %v6292_v20, %v7944_v3  ;;  %v6360_v37 = vpop.permute.xlu0 %6359 }
 0x1fe   : > { %6389 = vrot.lane.b32.xlu1 %v6388_v45, %s7338_s29  ;;  %9495 = vst [vmem:[#allocation24_spill] sm:$0xff] %v8161_v21  ;;  %v8165_v59 = vsel %vm1405_vm0, %v7983_v6, %v1321_v33  ;;  %v1423_v40 = vsel %vm1405_vm0, %v7914_v0, %v8081_v7  ;;  %v6365_v45 = vpop.permute.xlu1 %6364  ;;  %v6393_v16 = vpack.i.bf16 %v7967_v10, %v1631_v4  ;;  %v6322_v3 = vunpack.i.h.bf16 %v7932_v43 }
 0x1ff   : > { %v6423_v57 = vpack.i.bf16 %v7952_v44, %v7940_v13  ;;  %v8175_v55 = vsel %vm1405_vm0, %v7997_v28, %v1345_v49  ;;  %v1635_v6 = vsel %vm1405_vm0, %v7792_v31, %v8118_v5  ;;  %v6362_v20 = vunpack.i.h.bf16 %v6360_v37 }
 0x200   : > { %v6361_v33 = vunpack.i.l.bf16 %v6360_v37  ;;  %v6317_v1 = vunpack.i.h.bf16 %v7916_v18  ;;  %v6367_v42 = vunpack.i.h.bf16 %v6365_v45  ;;  %v6366_v29 = vunpack.i.l.bf16 %v6365_v45 }
 0x201   : > { %6424 = vrot.lane.b32.xlu0 %v6423_v57, %s7337_s30  ;;  %v1547_v44 = vsel %vm1405_vm0, %v7895_v48, %v8161_v21  ;;  %v6327_v10 = vunpack.i.h.bf16 %v7976_v11  ;;  %v1414_v28 = vsel %vm1405_vm0, %v7851_v62, %v6362_v20  ;;  %v9496_v49 = vunpack.i.l.bf16 %v7838_v52 }
 0x202   : > { %6394 = vrot.lane.b32.xlu1 %v6393_v16, %s7338_s29  ;;  %v1272_v4 = vsel %vm1271_vm4, %v7870_v15, %v6361_v33  ;;  %v6398_v37 = vpack.i.bf16 %v1635_v6, %v8013_v63  ;;  %v1927_v16 = vpack.c.bf16 %v1417_v22, %v1414_v28  ;;  %v1273_v57 = vsel %vm1271_vm4, %v6361_v33, %v6362_v20  ;;  %v9505_v28 = vld [vmem:[#allocation7_spill] sm:$0xff] }
 0x203   : > { %v8195_v45 = vsel %vm1458_vm11, %v6297_v38, %v9496_v49  ;;  %v1412_v48 = vsel %vm1405_vm0, %v7885_v24, %v1272_v4  ;;  %v1344_v11 = vsel %vm1343_vm13, %v6322_v3, %v6311_v2  ;;  %v6428_v21 = vpack.i.bf16 %v1547_v44, %v1546_v58  ;;  %v9504_v44 = vld [vmem:[#allocation16_spill] sm:$0xff] }
 0x204   : > { %v1413_v62 = vsel %vm1405_vm0, %v7878_v19, %v1273_v57  ;;  %v1925_v15 = vpack.c.bf16 %v1415_v25, %v1412_v48  ;;  %2026 = vmatpush1.bf16.msra.mxu1 %v1927_v16  ;;  %v1545_v63 = vsel %vm1405_vm0, %v7885_v24, %v8195_v45  ;;  %v1369_v22 = vsel %vm1367_vm15, %v6366_v29, %v6367_v42  ;;  %v9508_v48 = vld [vmem:[#allocation11_spill] sm:$0xff] }
 0x205   : > { %v1926_v52 = vpack.c.bf16 %v8108_v51, %v1413_v62  ;;  %v9497_v38 = vunpack.i.l.bf16 %v7848_v61  ;;  %v6332_v58 = vunpack.i.h.bf16 %v7974_v32  ;;  %6429 = vrot.lane.b32.xlu0 %v6428_v21, %s7337_s30  ;;  %2027 = vmatprep.subr.bf16.mxu1 %v9468_v14  ;;  %v1930_v19 = vpack.c.bf16 %v1423_v40, %v8150_v54  ;;  %v9510_v62 = vld [vmem:[#allocation18_spill] sm:$0xff] }
 0x206   : > { %6399 = vrot.lane.b32.xlu1 %v6398_v37, %s7338_s29  ;;  %v9498_v25 = vunpack.i.l.bf16 %v7916_v18  ;;  %v1400_v24 = vsel %vm1398_vm3, %v8008_v12, %v6327_v10  ;;  %v1929_v61 = vpack.c.bf16 %v8175_v55, %v8165_v59  ;;  %v9499_v21 = vunpack.i.l.bf16 %v7974_v32 }
 0x207   : > { %v1320_v2 = vsel %vm1319_vm12, %v6317_v1, %v9497_v38  ;;  %1984 = vmatprep.subr.bf16.mxu0 %v1926_v52  ;;  %v1421_v1 = vsel %vm1405_vm0, %v8020_v47, %v1344_v11  ;;  %v1368_v18 = vsel %vm1367_vm15, %v7800_v35, %v6366_v29  ;;  %v1425_v54 = vsel %vm1405_vm0, %v1357_v50, %v1369_v22  ;;  %v9501_v47 = vld [vmem:[#allocation15_spill] sm:$0xff]  ;;  %v9511_v52 = vld [vmem:[#allocation20_spill] sm:$0xff] }
 0x208   : > { %v1494_v51 = vsel %vm1319_vm12, %v8071_v46, %v9498_v25  ;;  %v1401_v3 = vsel %vm1398_vm3, %v6327_v10, %v9499_v21  ;;  %1985 = vmatpush1.bf16.msra.mxu0 %v1925_v15  ;;  %v6438_v46 = vpack.i.bf16 %v8141_v17, %v1545_v63  ;;  %v9500_v40 = vunpack.i.h.bf16 %v7846_v60  ;;  %v9502_v50 = vld [vmem:[#allocation19_spill] sm:$0xff]  ;;  %2028 = vmatpush1.bf16.msra.mxu1 %v1930_v19  ;;  %v9515_v25 = vld [vmem:[#allocation17_spill] sm:$0xff]  ;;  %v9517_v21 = vld [vmem:[#allocation22_spill] sm:$0xff] }
 0x209   : > { %1986 = vmatprep.subr.bf16.mxu0 %v1929_v61  ;;  %v8241_v32 = vsel %vm1405_vm0, %v8000_v30, %v1320_v2  ;;  %v1553_v29 = vsel %vm1405_vm0, %v9501_v47, %v1494_v51  ;;  %vm1531_vm7 = vcmask 695296   ;;  %v1399_v35 = vsel %vm1398_vm3, %v6332_v58, %v8008_v12  ;;  %2029 = vmatprep.subr.bf16.mxu1 %v9468_v14  ;;  %v9503_v30 = vld [vmem:[#allocation14_spill] sm:$0xff] }
 0x20a   : > { %v1426_v6 = vsel %vm1405_vm0, %v9500_v40, %v6367_v42  ;;  %6409 = vrot.lane.b32.xlu1 %v8078_v41, %s7338_s29  ;;  %v6337_v20 = vunpack.i.h.bf16 %v9502_v50  ;;  %6439 = vrot.lane.b32.xlu0 %v6438_v46, %s7337_s30  ;;  %v1928_v60 = vpack.c.bf16 %v1421_v1, %v8241_v32  ;;  %v1428_v41 = vsel %vm1405_vm0, %v8091_v26, %v1400_v24  ;;  %v9506_v26 = vld [vmem:[#allocation13_spill] sm:$0xff] }
 0x20b   : > { %v1932_v42 = vpack.c.bf16 %v1428_v41, %v1425_v54  ;;  %v6418_v33 = vpack.i.bf16 %v8112_v56, %v9503_v30  ;;  %v1429_v10 = vsel %vm1405_vm0, %v9504_v44, %v1401_v3  ;;  %v1424_v12 = vsel %vm1405_vm0, %v8145_v53, %v1368_v18  ;;  %v9507_v56 = vld [vmem:[#allocation21_spill] sm:$0xff] }
 0x20c   : > { %v6232_v4 = vunpack.i.h.bf16 %v9505_v28  ;;  %1987 = vmatpush1.bf16.msra.mxu0 %v1928_v60  ;;  %v1933_v49 = vpack.c.bf16 %v1429_v10, %v1426_v6  ;;  %v8261_v37 = vpack.i.bf16 %v1553_v29, %v8165_v59  ;;  %v1551_v16 = vsel %vm1405_vm0, %v9506_v26, %v8129_v39  ;;  %v9520_v28 = vld [vmem:[#allocation8_spill] sm:$0xff] }
 0x20d   : > { %1988 = vmatprep.subr.bf16.mxu0 %v1932_v42  ;;  %v1427_v57 = vsel %vm1405_vm0, %v9507_v56, %v1399_v35  ;;  %v1550_v53 = vsel %vm1405_vm0, %v9508_v48, %v8049_v9  ;;  %v9509_v11 = vunpack.i.l.bf16 %v7932_v43  ;;  %vm1515_vm9 = vcmask 703488   ;;  %v9513_v43 = vld [vmem:[#allocation6_spill] sm:$0xff] }
 0x20e   : > { %6419 = vrot.lane.b32.xlu1 %v6418_v33, %s7337_s30  ;;  %v6342_v15 = vunpack.i.h.bf16 %v9510_v62  ;;  %2030 = vmatpush1.bf16.msra.mxu1 %v1933_v49  ;;  %v1931_v39 = vpack.c.bf16 %v1427_v57, %v1424_v12  ;;  %v1533_v63 = vsel %vm1531_vm7, %v9511_v52, %v6337_v20  ;;  %v9512_v22 = vunpack.i.l.bf16 %v9510_v62  ;;  %v9519_v42 = vld [vmem:[#allocation10_spill] sm:$0xff] }
 0x20f   : > { %v1504_v59 = vsel %vm1343_vm13, %v8081_v7, %v9509_v11  ;;  %6444 = vrot.lane.b32.xlu0 %v8261_v37, %s7337_s30  ;;  %v6433_v38 = vpack.i.bf16 %v1551_v16, %v1550_v53  ;;  %v9514_v2 = vunpack.i.l.bf16 %v9513_v43  ;;  %2031 = vmatprep.subr.bf16.mxu1 %v9468_v14  ;;  %v6453_v58 = vpack.i.bf16 %v1421_v1, %v8241_v32 }
 0x210   : > { %v1534_v9 = vsel %vm1531_vm7, %v6337_v20, %v9512_v22  ;;  %1989 = vmatpush1.bf16.msra.mxu0 %v1931_v39  ;;  %v1517_v51 = vsel %vm1515_vm9, %v9515_v25, %v6232_v4  ;;  %v9516_v24 = vunpack.i.l.bf16 %v7784_v27  ;;  %v6347_v3 = vunpack.i.h.bf16 %v9517_v21  ;;  %v9523_v39 = vld [vmem:[#allocation5_spill] sm:$0xff] }
 0x211   : > { %v1499_v7 = vsel %vm1331_vm8, %v7914_v0, %v9514_v2  ;;  %v6346_v18 = vunpack.i.l.bf16 %v9517_v21  ;;  %v1558_v0 = vsel %vm1405_vm0, %v1517_v51, %v1533_v63  ;;  %v6237_v1 = vunpack.i.h.bf16 %v7784_v27  ;;  %v9529_v51 = vld [vmem:[#allocation4_spill] sm:$0xff] }
 0x212   : > { %v1555_v19 = vsel %vm1405_vm0, %v1499_v7, %v1504_v59  ;;  %v1518_v61 = vsel %vm1515_vm9, %v6232_v4, %v9516_v24  ;;  %6434 = vrot.lane.b32.xlu1 %v6433_v38, %s7337_s30  ;;  %v1532_v54 = vsel %vm1531_vm7, %v6342_v15, %v9511_v52  ;;  %vm1570_vm8 = vcmask 900096  }
 0x213   : > { %v1559_v46 = vsel %vm1405_vm0, %v1518_v61, %v1534_v9  ;;  %6454 = vrot.lane.b32.xlu0 %v6453_v58, %s7337_s30  ;;  %v6448_v40 = vpack.i.bf16 %v1555_v19, %v8175_v55  ;;  %v1516_v47 = vsel %vm1515_vm9, %v6237_v1, %v9515_v25  ;;  %v1572_v35 = vsel %vm1570_vm8, %v6346_v18, %v6347_v3  ;;  %v9526_v9 = vld [vmem:[#allocation23_spill] sm:$0xff] }
 0x214   : > { %v6458_v6 = vpack.i.bf16 %v1559_v46, %v1558_v0  ;;  %v1557_v29 = vsel %vm1405_vm0, %v1516_v47, %v1532_v54  ;;  %v9518_v27 = vunpack.i.l.bf16 %v8074_v34  ;;  %v6352_v20 = vunpack.i.h.bf16 %v8074_v34  ;;  %v9527_v58 = vld [vmem:[#allocation3_spill] sm:$0xff] }
 0x215   : > { %v6463_v60 = vpack.i.bf16 %v1429_v10, %v1428_v41  ;;  %v6468_v55 = vpack.i.bf16 %v1427_v57, %v1557_v29  ;;  %v1625_v30 = vsel %vm1405_vm0, %v9519_v42, %v1572_v35  ;;  %v6357_v44 = vunpack.i.h.bf16 %v8120_v36  ;;  %v9521_v10 = vld [vmem:[#allocation9_spill] sm:$0xff] }
 0x216   : > { %6449 = vrot.lane.b32.xlu1 %v6448_v40, %s7337_s30  ;;  %v1573_v50 = vsel %vm1570_vm8, %v6347_v3, %v9518_v27  ;;  %v6356_v12 = vunpack.i.l.bf16 %v8120_v36  ;;  %v6242_v4 = vunpack.i.h.bf16 %v9520_v28  ;;  %v1571_v34 = vsel %vm1570_vm8, %v6352_v20, %v6346_v18  ;;  %v9522_v36 = vld [vmem:[#allocation12_spill] sm:$0xff] }
 0x217   : > { %6459 = vrot.lane.b32.xlu0 %v6458_v6, %s7337_s30  ;;  %v1626_v33 = vsel %vm1405_vm0, %v7882_v23, %v1573_v50  ;;  %vm1613_vm10 = vcmask 711680   ;;  %v6241_v41 = vunpack.i.l.bf16 %v9520_v28  ;;  %v6252_v49 = vunpack.i.h.bf16 %v9521_v10 }
 0x218   : > { %v6251_v26 = vunpack.i.l.bf16 %v9521_v10  ;;  %v6478_v23 = vpack.i.bf16 %v1626_v33, %v1625_v30  ;;  %vm1600_vm12 = vcmask 719872   ;;  %vm1586_vm13 = vcmask 891904  }
 0x219   : > { %v1624_v16 = vsel %vm1405_vm0, %v9522_v36, %v1571_v34  ;;  %v1614_v56 = vsel %vm1613_vm10, %v6356_v12, %v6357_v44  ;;  %v1615_v57 = vsel %vm1613_vm10, %v6357_v44, %v8118_v5  ;;  %v1602_v53 = vsel %vm1600_vm12, %v6252_v49, %v7792_v31  ;;  %v9525_v5 = vld [vmem:[#allocation24_spill] sm:$0xff] }
 0x21a   : > { %6464 = vrot.lane.b32.xlu1 %v6463_v60, %s7337_s30  ;;  %v1601_v48 = vsel %vm1600_vm12, %v6251_v26, %v6252_v49  ;;  %v1588_v11 = vsel %vm1586_vm13, %v6241_v41, %v6242_v4  ;;  %v6483_v59 = vpack.i.bf16 %v1624_v16, %v7940_v13  ;;  %v1634_v15 = vsel %vm1405_vm0, %v1602_v53, %v1615_v57 }
 0x21b   : > { %6469 = vrot.lane.b32.xlu0 %v6468_v55, %s7337_s30  ;;  %v1633_v62 = vsel %vm1405_vm0, %v1601_v48, %v1614_v56  ;;  %v9524_v52 = vunpack.i.l.bf16 %v9523_v39  ;;  %v6247_v22 = vunpack.i.h.bf16 %v9523_v39  ;;  %v1629_v13 = vsel %vm1405_vm0, %v1588_v11, %v9526_v9  ;;  %s9531_s30 = sld [smem:[#allocation28_spill]] }
 0x21c   : > { %v6508_v31 = vpack.i.bf16 %v1634_v15, %v1633_v62  ;;  %v1632_v19 = vsel %vm1405_vm0, %v6251_v26, %v6356_v12  ;;  %vm1968_vm14 = vcmask 556032   ;;  %vm1734_vm15 = vcmask 670720  }
 0x21d   : > { %v1589_v63 = vsel %vm1586_vm13, %v6242_v4, %v9524_v52  ;;  %v1587_v2 = vsel %vm1586_vm13, %v6247_v22, %v6241_v41  ;;  %v6513_v25 = vpack.i.bf16 %v1632_v19, %v8241_v32  ;;  %vm1861_vm3 = vcmask 293888  }
 0x21e   : > { %6479 = vrot.lane.b32.xlu1 %v6478_v23, %s7338_s29  ;;  %v1628_v7 = vsel %vm1405_vm0, %v1587_v2, %v8195_v45  ;;  %vm1916_vm4 = vcmask 965632   ;;  %vm1972_vm7 = vcmask 1041408   ;;  %vm2084_vm9 = vcmask 736256  }
 0x21f   : > { %6474 = vrot.lane.b32.xlu0 %v7979_v8, %s7338_s29  ;;  %v1630_v8 = vsel %vm1405_vm0, %v1589_v63, %v9525_v5  ;;  %vm7341_vm10 = vmmov 0   ;;  %vm2555_vm12 = vcmask 1044480  }
 0x220   : > { %v6488_v43 = vpack.i.bf16 %v1630_v8, %v1629_v13 }
 0x222   : > { %6494 = vrot.lane.b32.xlu1 %v6433_v38, %s7338_s29  ;;  %v6498_v38 = vpack.i.bf16 %v8141_v17, %v1628_v7  ;;  %v8368_v17 = vld [vmem:[%s9528_s2] sm:$0xff]  ;;  %s7345_s2 = smov 74  }
 0x223   : > { %6484 = vrot.lane.b32.xlu0 %v6483_v59, %s7338_s29  ;;  %v5545_v45 = vcombine.high %v8368_v17, %v8368_v17 }
 0x225   : > { %5548 = vmatprep.mubr.msk.bf16.mxu1 %vm1968_vm14, %v5545_v45  ;;  %5547 = vmatprep.mubr.msk.bf16.mxu0 %vm1968_vm14, %v5545_v45  ;;  %vm3042_vm14 = vcmask 89088  }
 0x226   : > { %6509 = vrot.lane.b32.xlu1 %v6508_v31, %s7338_s29 }
 0x227   : > { %6489 = vrot.lane.b32.xlu0 %v6488_v43, %s7338_s29 }
 0x22a   : > { %6529 = vrot.lane.b32.xlu1 %v6463_v60, %s7338_s29 }
 0x22b   : > { %6499 = vrot.lane.b32.xlu0 %v6498_v38, %s7338_s29 }
 0x22e   : > { %1914 = vrot.lane.b32.xlu1 %v9527_v58, %s9411_s3 }
 0x22f   : > { %6504 = vrot.lane.b32.xlu0 %v8261_v37, %s7338_s29 }
 0x233   : > { %6514 = vrot.lane.b32.xlu0 %v6513_v25, %s7338_s29 }
 0x237   : > { %6519 = vrot.lane.b32.xlu0 %v6458_v6, %s7338_s29  ;;  %s7343_s29 = smov 90  }
 0x23b   : > { %6524 = vrot.lane.b32.xlu0 %v9529_v51, %s9411_s3  ;;  %s9532_s3 = smov 110  }
 0x245   : > { %v6370_v37 = vpop.permute.xlu1 %6369 }
 0x246   : > { %v6372_v27 = vunpack.i.h.bf16 %v6370_v37  ;;  %v6371_v50 = vunpack.i.l.bf16 %v6370_v37 }
 0x261   : > { %v6375_v32 = vpop.permute.xlu1 %6374 }
 0x262   : > { %v6377_v20 = vunpack.i.h.bf16 %v6375_v32  ;;  %v6376_v28 = vunpack.i.l.bf16 %v6375_v32 }
 0x266   : > { %v8375_v24 = vpop.permute.xlu1 %6379 }
 0x267   : > { %v6381_v9 = vunpack.i.l.bf16 %v8375_v24  ;;  %v6382_v38 = vunpack.i.h.bf16 %v8375_v24 }
 0x269   : > { %v8377_v61 = vpop.permute.xlu0 %6404 }
 0x26c   : > { %v8379_v21 = vpop.permute.xlu1 %6384 }
 0x26d   : > { %v6415_v18 = vpop.permute.xlu0 %6414 }
 0x26e   : > { %v6417_v47 = vunpack.i.h.bf16 %v6415_v18  ;;  %v6416_v29 = vunpack.i.l.bf16 %v6415_v18 }
 0x270   : > { %v8381_v3 = vpop.permute.xlu1 %6389  ;;  %v1737_v4 = vsel %vm1734_vm15, %v6417_v47, %v6371_v50  ;;  %v1736_v41 = vsel %vm1734_vm15, %v6416_v29, %v6417_v47  ;;  %v6386_v47 = vunpack.i.l.bf16 %v8379_v21 }
 0x273   : > { %v6425_v46 = vpop.permute.xlu0 %6424 }
 0x274   : > { %v8383_v0 = vpop.permute.xlu1 %6394  ;;  %v6426_v35 = vunpack.i.l.bf16 %v6425_v46  ;;  %v6427_v42 = vunpack.i.h.bf16 %v6425_v46 }
 0x276   : > { %v1735_v10 = vsel %vm1734_vm15, %v6426_v35, %v6416_v29 }
 0x277   : > { %v6430_v54 = vpop.permute.xlu0 %6429 }
 0x278   : > { %v8385_v1 = vpop.permute.xlu1 %6399  ;;  %v6432_v60 = vunpack.i.h.bf16 %v6430_v54  ;;  %v6431_v30 = vunpack.i.l.bf16 %v6430_v54 }
 0x27a   : > { %v1743_v36 = vsel %vm1734_vm15, %v6432_v60, %v6376_v28  ;;  %v1742_v15 = vsel %vm1734_vm15, %v6431_v30, %v6432_v60 }
 0x27c   : > { %v8387_v40 = vpop.permute.xlu1 %6409  ;;  %v6440_v6 = vpop.permute.xlu0 %6439 }
 0x27d   : > { %v6441_v34 = vunpack.i.l.bf16 %v6440_v6  ;;  %v6442_v53 = vunpack.i.h.bf16 %v6440_v6 }
 0x27f   : > { %v1741_v39 = vsel %vm1734_vm15, %v6441_v34, %v6431_v30 }
 0x280   : > { %v6420_v55 = vpop.permute.xlu1 %6419 }
 0x281   : > { %v6422_v33 = vunpack.i.h.bf16 %v6420_v55  ;;  %v6421_v44 = vunpack.i.l.bf16 %v6420_v55  ;;  %v6445_v12 = vpop.permute.xlu0 %6444 }
 0x282   : > { %v6447_v52 = vunpack.i.h.bf16 %v6445_v12  ;;  %v6446_v63 = vunpack.i.l.bf16 %v6445_v12 }
 0x283   : > { %v1740_v49 = vsel %vm1734_vm15, %v6422_v33, %v6372_v27  ;;  %v1738_v26 = vsel %vm1734_vm15, %v6427_v42, %v6421_v44  ;;  %v1739_v23 = vsel %vm1734_vm15, %v6421_v44, %v6422_v33 }
 0x284   : > { %v6435_v16 = vpop.permute.xlu1 %6434  ;;  %v1935_v56 = vpack.c.bf16 %v1739_v23, %v1736_v41  ;;  %v1936_v57 = vpack.c.bf16 %v1740_v49, %v1737_v4  ;;  %v1934_v48 = vpack.c.bf16 %v1738_v26, %v1735_v10  ;;  %v1749_v51 = vsel %vm1734_vm15, %v6447_v52, %v6381_v9 }
 0x285   : > { %v6437_v11 = vunpack.i.h.bf16 %v6435_v16  ;;  %v6436_v59 = vunpack.i.l.bf16 %v6435_v16  ;;  %v6455_v62 = vpop.permute.xlu0 %6454  ;;  %v1748_v18 = vsel %vm1734_vm15, %v6446_v63, %v6447_v52  ;;  %v6392_v26 = vunpack.i.h.bf16 %v8381_v3 }
 0x286   : > { %v6456_v5 = vunpack.i.l.bf16 %v6455_v62  ;;  %1990 = vmatprep.subr.bf16.mxu0 %v1935_v56  ;;  %2032 = vmatpush1.bf16.msra.mxu1 %v1936_v57  ;;  %v6457_v58 = vunpack.i.h.bf16 %v6455_v62  ;;  %v6391_v57 = vunpack.i.l.bf16 %v8381_v3 }
 0x287   : > { %v1744_v8 = vsel %vm1734_vm15, %v6442_v53, %v6436_v59  ;;  %v1746_v22 = vsel %vm1734_vm15, %v6437_v11, %v6377_v20  ;;  %1991 = vmatpush1.bf16.msra.mxu0 %v1934_v48  ;;  %2033 = vmatprep.subr.bf16.mxu1 %v9468_v14  ;;  %v1745_v31 = vsel %vm1734_vm15, %v6436_v59, %v6437_v11  ;;  %v6387_v20 = vunpack.i.h.bf16 %v8379_v21 }
 0x288   : > { %v6450_v13 = vpop.permute.xlu1 %6449  ;;  %v1938_v43 = vpack.c.bf16 %v1745_v31, %v1742_v15  ;;  %v1939_v2 = vpack.c.bf16 %v1746_v22, %v1743_v36  ;;  %v1937_v7 = vpack.c.bf16 %v1744_v8, %v1741_v39  ;;  %v1747_v37 = vsel %vm1734_vm15, %v6456_v5, %v6446_v63 }
 0x289   : > { %v6452_v19 = vunpack.i.h.bf16 %v6450_v13  ;;  %v6451_v25 = vunpack.i.l.bf16 %v6450_v13  ;;  %v6460_v45 = vpop.permute.xlu0 %6459 }
 0x28a   : > { %v6462_v32 = vunpack.i.h.bf16 %v6460_v45  ;;  %1992 = vmatprep.subr.bf16.mxu0 %v1938_v43  ;;  %2034 = vmatpush1.bf16.msra.mxu1 %v1939_v2  ;;  %v6461_v6 = vunpack.i.l.bf16 %v6460_v45 }
 0x28b   : > { %v1750_v46 = vsel %vm1734_vm15, %v6457_v58, %v6451_v25  ;;  %v1752_v54 = vsel %vm1734_vm15, %v6452_v19, %v6382_v38  ;;  %1993 = vmatpush1.bf16.msra.mxu0 %v1937_v7  ;;  %2035 = vmatprep.subr.bf16.mxu1 %v9468_v14  ;;  %v1751_v24 = vsel %vm1734_vm15, %v6451_v25, %v6452_v19  ;;  %v6397_v7 = vunpack.i.h.bf16 %v8383_v0 }
 0x28c   : > { %v6465_v29 = vpop.permute.xlu1 %6464  ;;  %v1941_v35 = vpack.c.bf16 %v1751_v24, %v1748_v18  ;;  %v1942_v27 = vpack.c.bf16 %v1752_v54, %v1749_v51  ;;  %v1940_v50 = vpack.c.bf16 %v1750_v46, %v1747_v37  ;;  %v1755_v30 = vsel %vm1734_vm15, %v6462_v32, %v6386_v47 }
 0x28d   : > { %v6467_v60 = vunpack.i.h.bf16 %v6465_v29  ;;  %v6466_v55 = vunpack.i.l.bf16 %v6465_v29  ;;  %v6470_v42 = vpop.permute.xlu0 %6469  ;;  %v1754_v28 = vsel %vm1734_vm15, %v6461_v6, %v6462_v32  ;;  %v6396_v38 = vunpack.i.l.bf16 %v8383_v0 }
 0x28e   : > { %v6472_v33 = vunpack.i.h.bf16 %v6470_v42  ;;  %v6471_v44 = vunpack.i.l.bf16 %v6470_v42  ;;  %1994 = vmatprep.subr.bf16.mxu0 %v1941_v35  ;;  %2036 = vmatpush1.bf16.msra.mxu1 %v1942_v27 }
 0x28f   : > { %v1758_v12 = vsel %vm1734_vm15, %v6467_v60, %v6387_v20  ;;  %1995 = vmatpush1.bf16.msra.mxu0 %v1940_v50  ;;  %2037 = vmatprep.subr.bf16.mxu1 %v9468_v14  ;;  %v1757_v4 = vsel %vm1734_vm15, %v6466_v55, %v6467_v60  ;;  %v6402_v20 = vunpack.i.h.bf16 %v8385_v1  ;;  %v6401_v60 = vunpack.i.l.bf16 %v8385_v1 }
 0x290   : > { %v1756_v21 = vsel %vm1734_vm15, %v6472_v33, %v6466_v55  ;;  %v1753_v34 = vsel %vm1734_vm15, %v6471_v44, %v6461_v6  ;;  %v6480_v41 = vpop.permute.xlu1 %6479  ;;  %v1944_v10 = vpack.c.bf16 %v1757_v4, %v1754_v28  ;;  %v1945_v49 = vpack.c.bf16 %v1758_v12, %v1755_v30 }
 0x291   : > { %v6482_v23 = vunpack.i.h.bf16 %v6480_v41  ;;  %v6481_v36 = vunpack.i.l.bf16 %v6480_v41  ;;  %v6475_v16 = vpop.permute.xlu0 %6474  ;;  %v1943_v56 = vpack.c.bf16 %v1756_v21, %v1753_v34  ;;  %vm3239_vm15 = vcmask 1045504  }
 0x292   : > { %v6477_v48 = vunpack.i.h.bf16 %v6475_v16  ;;  %v6476_v53 = vunpack.i.l.bf16 %v6475_v16  ;;  %1996 = vmatprep.subr.bf16.mxu0 %v1944_v10  ;;  %2038 = vmatpush1.bf16.msra.mxu1 %v1945_v49  ;;  %v6412_v16 = vunpack.i.h.bf16 %v8387_v40 }
 0x293   : > { %v1867_v11 = vsel %vm1861_vm3, %v6482_v23, %v6392_v26  ;;  %1997 = vmatpush1.bf16.msra.mxu0 %v1943_v56  ;;  %2039 = vmatprep.subr.bf16.mxu1 %v9468_v14  ;;  %v1866_v59 = vsel %vm1861_vm3, %v6481_v36, %v6482_v23 }
 0x294   : > { %v1864_v62 = vsel %vm1861_vm3, %v6477_v48, %v6391_v57  ;;  %v1863_v15 = vsel %vm1861_vm3, %v6476_v53, %v6477_v48  ;;  %v6495_v39 = vpop.permute.xlu1 %6494  ;;  %v6406_v48 = vunpack.i.l.bf16 %v8377_v61 }
 0x295   : > { %v6485_v52 = vpop.permute.xlu0 %6484  ;;  %v1947_v63 = vpack.c.bf16 %v1866_v59, %v1863_v15  ;;  %v1948_v5 = vpack.c.bf16 %v1867_v11, %v1864_v62  ;;  %v6497_v22 = vunpack.i.h.bf16 %v6495_v39  ;;  %v6496_v31 = vunpack.i.l.bf16 %v6495_v39 }
 0x296   : > { %v6487_v3 = vunpack.i.h.bf16 %v6485_v52  ;;  %v6486_v8 = vunpack.i.l.bf16 %v6485_v52 }
 0x297   : > { %1998 = vmatprep.subr.bf16.mxu0 %v1947_v63  ;;  %2040 = vmatpush1.bf16.msra.mxu1 %v1948_v5  ;;  %v1873_v25 = vsel %vm1861_vm3, %v6497_v22, %v6397_v7  ;;  %v1872_v37 = vsel %vm1861_vm3, %v6496_v31, %v6497_v22 }
 0x298   : > { %v1865_v9 = vsel %vm1861_vm3, %v6487_v3, %v6481_v36  ;;  %v1862_v13 = vsel %vm1861_vm3, %v6486_v8, %v6476_v53  ;;  %2041 = vmatprep.subr.bf16.mxu1 %v9468_v14  ;;  %v6510_v32 = vpop.permute.xlu1 %6509  ;;  %v6407_v36 = vunpack.i.h.bf16 %v8377_v61  ;;  %v6411_v53 = vunpack.i.l.bf16 %v8387_v40 }
 0x299   : > { %v6490_v43 = vpop.permute.xlu0 %6489  ;;  %v1946_v2 = vpack.c.bf16 %v1865_v9, %v1862_v13  ;;  %v6512_v0 = vunpack.i.h.bf16 %v6510_v32  ;;  %v6511_v47 = vunpack.i.l.bf16 %v6510_v32  ;;  %v7110_v32 = vld [vmem:[%s9530_s1 + $0x34] ss:$12 sps:$4 sm:$0xff]  }
 0x29a   : > { %v6492_v58 = vunpack.i.h.bf16 %v6490_v43  ;;  %v6491_v19 = vunpack.i.l.bf16 %v6490_v43 }
 0x29b   : > { %1999 = vmatpush1.bf16.msra.mxu0 %v1946_v2  ;;  %v1879_v30 = vsel %vm1861_vm3, %v6512_v0, %v6402_v20  ;;  %v1878_v28 = vsel %vm1861_vm3, %v6511_v47, %v6512_v0  ;;  %v7135_v0 = vld [vmem:[%s9530_s1 + $0x20] ss:$12 sps:$4 sm:$0xff]  }
 0x29c   : > { %v1870_v45 = vsel %vm1861_vm3, %v6492_v58, %v6396_v38  ;;  %v1869_v51 = vsel %vm1861_vm3, %v6491_v19, %v6492_v58  ;;  %v6530_v33 = vpop.permute.xlu1 %6529  ;;  %v7122_v20 = vld [vmem:[%s9530_s1 + $0x94] ss:$12 sps:$4 sm:$0xff]  }
 0x29d   : > { %v6500_v18 = vpop.permute.xlu0 %6499  ;;  %v1950_v46 = vpack.c.bf16 %v1872_v37, %v1869_v51  ;;  %v1951_v54 = vpack.c.bf16 %v1873_v25, %v1870_v45  ;;  %v6532_v49 = vunpack.i.h.bf16 %v6530_v33  ;;  %v6531_v26 = vunpack.i.l.bf16 %v6530_v33  ;;  %v7102_v45 = vld [vmem:[%s9530_s1] ss:$12 sps:$4 sm:$0xff]   ;;  %v7104_v51 = vld [vmem:[%s9530_s1 + $0x4] ss:$12 sps:$4 sm:$0xff]  }
 0x29e   : > { %v6502_v6 = vunpack.i.h.bf16 %v6500_v18  ;;  %v6501_v24 = vunpack.i.l.bf16 %v6500_v18  ;;  %v7105_v37 = vld [vmem:[%s9530_s1 + $0x18] ss:$12 sps:$4 sm:$0xff]   ;;  %v7129_v18 = vld [vmem:[%s9530_s1 + $0xc8] ss:$12 sps:$4 sm:$0xff]   ;;  %v7126_v33 = vld [vmem:[%s9530_s1 + $0xc0] ss:$12 sps:$4 sm:$0xff]  }
 0x29f   : > { %2000 = vmatprep.subr.bf16.mxu0 %v1950_v46  ;;  %2042 = vmatpush1.bf16.msra.mxu1 %v1951_v54  ;;  %v1883_v62 = vsel %vm1861_vm3, %v6407_v36, %v6531_v26  ;;  %v1885_v15 = vsel %vm1861_vm3, %v6532_v49, %v6412_v16  ;;  %v1884_v3 = vsel %vm1861_vm3, %v6531_v26, %v6532_v49  ;;  %v7130_v46 = vld [vmem:[%s9530_s1 + $0x8] ss:$12 sps:$4 sm:$0xff]   ;;  %v7108_v54 = vld [vmem:[%s9530_s1 + $0x30] ss:$12 sps:$4 sm:$0xff]  }
 0x2a0   : > { %v1871_v29 = vsel %vm1861_vm3, %v6502_v6, %v6496_v31  ;;  %v1868_v35 = vsel %vm1861_vm3, %v6501_v24, %v6491_v19  ;;  %2043 = vmatprep.subr.bf16.mxu1 %v9468_v14  ;;  %v1915_v39 = vpop.permute.xlu1 %1914  ;;  %v5544_v19 = vcombine.low %v8368_v17, %v8368_v17  ;;  %v7107_v17 = vld [vmem:[%s9530_s1 + $0x1c] ss:$12 sps:$4 sm:$0xff]   ;;  %v7134_v6 = vld [vmem:[%s9530_s1 + $0xe0] ss:$12 sps:$4 sm:$0xff]  }
 0x2a1   : > { %v6505_v27 = vpop.permute.xlu0 %6504  ;;  %v1949_v50 = vpack.c.bf16 %v1871_v29, %v1868_v35  ;;  %v1960_v31 = vpack.c.bf16 %v1915_v39, %v1915_v39  ;;  %v7113_v24 = vld [vmem:[%s9530_s1 + $0x4c] ss:$12 sps:$4 sm:$0xff]   ;;  %v7116_v29 = vld [vmem:[%s9530_s1 + $0x64] ss:$12 sps:$4 sm:$0xff]  }
 0x2a2   : > { %v6507_v55 = vunpack.i.h.bf16 %v6505_v27  ;;  %v6506_v42 = vunpack.i.l.bf16 %v6505_v27  ;;  %v7114_v35 = vld [vmem:[%s9530_s1 + $0x60] ss:$12 sps:$4 sm:$0xff]   ;;  %v7119_v27 = vld [vmem:[%s9530_s1 + $0x7c] ss:$12 sps:$4 sm:$0xff]  }
 0x2a3   : > { %2001 = vmatpush1.bf16.msra.mxu0 %v1949_v50  ;;  %v1980_v58 = vsel %vm1972_vm7, %v1960_v31, 0  ;;  %v7117_v50 = vld [vmem:[%s9530_s1 + $0x78] ss:$12 sps:$4 sm:$0xff]   ;;  %v7136_v31 = vld [vmem:[%s9530_s1 + $0xf0] ss:$12 sps:$4 sm:$0xff]  }
 0x2a4   : > { %v1876_v44 = vsel %vm1861_vm3, %v6507_v55, %v6401_v60  ;;  %v1875_v12 = vsel %vm1861_vm3, %v6506_v42, %v6507_v55  ;;  %v7120_v60 = vld [vmem:[%s9530_s1 + $0x90] ss:$12 sps:$4 sm:$0xff]   ;;  %v7125_v55 = vld [vmem:[%s9530_s1 + $0xac] ss:$12 sps:$4 sm:$0xff]  }
 0x2a5   : > { %v6515_v4 = vpop.permute.xlu0 %6514  ;;  %v1953_v21 = vpack.c.bf16 %v1878_v28, %v1875_v12  ;;  %v1954_v34 = vpack.c.bf16 %v1879_v30, %v1876_v44  ;;  %v7128_v30 = vld [vmem:[%s9530_s1 + $0xc4] ss:$12 sps:$4 sm:$0xff]   ;;  %v7133_v44 = vld [vmem:[%s9530_s1 + $0xdc] ss:$12 sps:$4 sm:$0xff]   ;;  %v2065_v28 = vlaneseq }
 0x2a6   : > { %v6517_v41 = vunpack.i.h.bf16 %v6515_v4  ;;  %v6516_v10 = vunpack.i.l.bf16 %v6515_v4  ;;  %v7131_v12 = vld [vmem:[%s9530_s1 + $0xd8] ss:$12 sps:$4 sm:$0xff]  }
 0x2a7   : > { %2002 = vmatprep.subr.bf16.mxu0 %v1953_v21  ;;  %2044 = vmatpush1.bf16.msra.mxu1 %v1954_v34  ;;  %v8536_v4 = vshrl.u32 %v2065_v28, 7  ;;  %v2063_v34 = vld [vmem:[%s9531_s30] sm:$0x7]  ;;  %s9536_s30 = smov 107  }
 0x2a8   : > { %v1877_v1 = vsel %vm1861_vm3, %v6517_v41, %v6511_v47  ;;  %v1874_v23 = vsel %vm1861_vm3, %v6516_v10, %v6506_v42  ;;  %2045 = vmatprep.subr.bf16.mxu1 %v9468_v14  ;;  %v7111_v47 = vld [vmem:[%s9530_s1 + $0x48] ss:$12 sps:$4 sm:$0xff]  }
 0x2a9   : > { %v6520_v56 = vpop.permute.xlu0 %6519  ;;  %v1952_v57 = vpack.c.bf16 %v1877_v1, %v1874_v23  ;;  %v7123_v42 = vld [vmem:[%s9530_s1 + $0xa8] ss:$12 sps:$4 sm:$0xff]   ;;  %v2075_v21 = vsub.s32 2, %v8536_v4  ;;  %v2067_v41 = vsub.s32 0, %v8536_v4  ;;  %v2071_v10 = vsub.s32 1, %v8536_v4 }
 0x2aa   : > { %v6522_v11 = vunpack.i.h.bf16 %v6520_v56  ;;  %v6521_v59 = vunpack.i.l.bf16 %v6520_v56 }
 0x2ab   : > { %2003 = vmatpush1.bf16.msra.mxu0 %v1952_v57  ;;  %v2076_v49 = vrot.slane %v2063_v34, %v2075_v21  ;;  %v2068_v26 = vrot.slane %v2063_v34, %v2067_v41  ;;  %v2072_v1 = vrot.slane %v2063_v34, %v2071_v10 }
 0x2ac   : > { %v1882_v52 = vsel %vm1861_vm3, %v6522_v11, %v6411_v53  ;;  %v1880_v63 = vsel %vm1861_vm3, %v6406_v48, %v6521_v59  ;;  %v1881_v5 = vsel %vm1861_vm3, %v6521_v59, %v6522_v11 }
 0x2ad   : > { %v6525_v8 = vpop.permute.xlu0 %6524  ;;  %v1956_v61 = vpack.c.bf16 %v1884_v3, %v1881_v5  ;;  %v1957_v22 = vpack.c.bf16 %v1885_v15, %v1882_v52  ;;  %v1955_v40 = vpack.c.bf16 %v1883_v62, %v1880_v63 }
 0x2ae   : > { %v6527_v9 = vunpack.i.h.bf16 %v6525_v8  ;;  %v6526_v13 = vunpack.i.l.bf16 %v6525_v8 }
 0x2af   : > { %2004 = vmatprep.subr.bf16.mxu0 %v1956_v61  ;;  %2046 = vmatpush1.bf16.msra.mxu1 %v1957_v22 }
 0x2b0   : > { %2005 = vmatpush1.bf16.msra.mxu0 %v1955_v40  ;;  %2047 = vmatprep.subr.bf16.mxu1 %v9468_v14  ;;  %v1918_v43 = vsel %vm1916_vm4, %v6527_v9, %v1915_v39  ;;  %v1917_v2 = vsel %vm1916_vm4, %v6526_v13, %v6527_v9  ;;  %v7138_v9 = vld [vmem:[%s9530_s1 + $0xf4] ss:$12 sps:$4 sm:$0xff]   ;;  %v7139_v13 = vld [vmem:[%s9530_s1 + $0xf8] ss:$12 sps:$4 sm:$0xff]   ;;  %vm3519_vm4 = vcmask 547840  }
 0x2b1   : > { %v1959_v7 = vpack.c.bf16 %v1918_v43, %v1918_v43  ;;  %v1958_v38 = vpack.c.bf16 %v1917_v2, %v1917_v2  ;;  %v7140_v43 = vld [vmem:[%s9530_s1 + $0x38] ss:$12 sps:$4 sm:$0xff]   ;;  %v7141_v2 = vld [vmem:[%s9530_s1 + $0x108] ss:$12 sps:$4 sm:$0xff]  }
 0x2b3   : > { %5546 = vmatprep.subr.msk.bf16.mxu0 %vm1972_vm7, %v1959_v7  ;;  %2048 = vmatpush1.bf16.msra.mxu1 %v1980_v58  ;;  %v1974_v25 = vsel %vm1972_vm7, %v1958_v38, 0  ;;  %v7143_v7 = vld [vmem:[%s9530_s1 + $0x10c] ss:$12 sps:$4 sm:$0xff]   ;;  %v7144_v38 = vld [vmem:[%s9530_s1 + $0x110] ss:$12 sps:$4 sm:$0xff]  }
 0x2b4   : > { %2007 = vmatpush1.bf16.msra.mxu0 %v1974_v25  ;;  %5710 = vmatprep.subr.bf16.mxu1 %v7129_v18  ;;  %v7145_v58 = vld [vmem:[%s9530_s1 + $0x50] ss:$12 sps:$4 sm:$0xff]   ;;  %v7146_v25 = vld [vmem:[%s9530_s1 + $0x120] ss:$12 sps:$4 sm:$0xff]  }
 0x2b5   : > { %2565 = vmatprep.subr.bf16.mxu0 %v7104_v51  ;;  %v7153_v51 = vld [vmem:[%s9530_s1 + $0x13c] ss:$12 sps:$4 sm:$0xff]   ;;  %v7158_v18 = vld [vmem:[%s9530_s1 + $0x154] ss:$12 sps:$4 sm:$0xff]  }
 0x2b6   : > { %2056 = vmatmul.mubr.bf16.vlgmr.msra.gmra.mrb[4].mxu1 %v5544_v19 }
 0x2b7   : > { %2015 = vmatmul.mubr.bf16.vlgmr.msra.gmra.mrb[4].mxu0 %v5544_v19  ;;  %5711 = vmatpush3.bf16.msra.mxu1 %v7130_v46  ;;  %v7148_v19 = vld [vmem:[%s9530_s1 + $0x124] ss:$12 sps:$4 sm:$0xff]   ;;  %v7155_v46 = vld [vmem:[%s9530_s1 + $0x80] ss:$12 sps:$4 sm:$0xff]  }
 0x2b8   : > { %2566 = vmatpush1.bf16.msra.mxu0 %v7102_v45  ;;  %5712 = vmatprep.subr.bf16.mxu1 %v7134_v6  ;;  %v7149_v45 = vld [vmem:[%s9530_s1 + $0x128] ss:$12 sps:$4 sm:$0xff]   ;;  %v7159_v6 = vld [vmem:[%s9530_s1 + $0x158] ss:$12 sps:$4 sm:$0xff]  }
 0x2b9   : > { %2567 = vmatprep.subr.bf16.mxu0 %v7107_v17  ;;  %v7150_v17 = vld [vmem:[%s9530_s1 + $0x68] ss:$12 sps:$4 sm:$0xff]  }
 0x2bb   : > { %5713 = vmatpush3.bf16.msra.mxu1 %v7135_v0  ;;  %v7160_v0 = vld [vmem:[%s9530_s1 + $0x98] ss:$12 sps:$4 sm:$0xff]  }
 0x2bc   : > { %2568 = vmatpush1.bf16.msra.mxu0 %v7105_v37  ;;  %5714 = vmatprep.subr.bf16.mxu1 %v7139_v13  ;;  %v7151_v37 = vld [vmem:[%s9530_s1 + $0x138] ss:$12 sps:$4 sm:$0xff]  }
 0x2bd   : > { %2569 = vmatprep.subr.bf16.mxu0 %v7110_v32  ;;  %v7154_v32 = vld [vmem:[%s9530_s1 + $0x140] ss:$12 sps:$4 sm:$0xff]  }
 0x2bf   : > { %5715 = vmatpush3.bf16.msra.mxu1 %v7140_v43 }
 0x2c0   : > { %2570 = vmatpush1.bf16.msra.mxu0 %v7108_v54  ;;  %5716 = vmatprep.subr.bf16.mxu1 %v7144_v38  ;;  %v7156_v54 = vld [vmem:[%s9530_s1 + $0x150] ss:$12 sps:$4 sm:$0xff]  }
 0x2c1   : > { %2571 = vmatprep.subr.bf16.mxu0 %v7113_v24  ;;  %v7163_v24 = vld [vmem:[%s9530_s1 + $0x16c] ss:$12 sps:$4 sm:$0xff]  }
 0x2c3   : > { %5717 = vmatpush3.bf16.msra.mxu1 %v7145_v58 }
 0x2c4   : > { %2572 = vmatpush1.bf16.msra.mxu0 %v7111_v47  ;;  %5718 = vmatprep.subr.bf16.mxu1 %v7149_v45  ;;  %v7161_v47 = vld [vmem:[%s9530_s1 + $0x168] ss:$12 sps:$4 sm:$0xff]  }
 0x2c5   : > { %2573 = vmatprep.subr.bf16.mxu0 %v7116_v29  ;;  %v7164_v29 = vld [vmem:[%s9530_s1 + $0x170] ss:$12 sps:$4 sm:$0xff]  }
 0x2c7   : > { %5719 = vmatpush3.bf16.msra.mxu1 %v7150_v17 }
 0x2c8   : > { %2574 = vmatpush1.bf16.msra.mxu0 %v7114_v35  ;;  %5720 = vmatprep.subr.bf16.mxu1 %v7154_v32  ;;  %v7168_v35 = vld [vmem:[%s9530_s1 + $0x184] ss:$12 sps:$4 sm:$0xff]  }
 0x2c9   : > { %2575 = vmatprep.subr.bf16.mxu0 %v7119_v27  ;;  %v7165_v27 = vld [vmem:[%s9530_s1 + $0xb0] ss:$12 sps:$4 sm:$0xff]  }
 0x2cb   : > { %5721 = vmatpush3.bf16.msra.mxu1 %v7155_v46 }
 0x2cc   : > { %2576 = vmatpush1.bf16.msra.mxu0 %v7117_v50  ;;  %5722 = vmatprep.subr.bf16.mxu1 %v7159_v6  ;;  %v7340_v50 = vmov 0.0  }
 0x2cd   : > { %2577 = vmatprep.subr.bf16.mxu0 %v7122_v20 }
 0x2cf   : > { %5723 = vmatpush3.bf16.msra.mxu1 %v7160_v0 }
 0x2d0   : > { %2578 = vmatpush1.bf16.msra.mxu0 %v7120_v60  ;;  %5724 = vmatprep.subr.bf16.mxu1 %v7164_v29 }
 0x2d1   : > { %2579 = vmatprep.subr.bf16.mxu0 %v7125_v55 }
 0x2d3   : > { %5725 = vmatpush3.bf16.msra.mxu1 %v7165_v27 }
 0x2d4   : > { %2580 = vmatpush1.bf16.msra.mxu0 %v7123_v42  ;;  %5960 = vmatprep.subr.bf16.mxu1 %v7340_v50 }
 0x2d5   : > { %2581 = vmatprep.subr.bf16.mxu0 %v7128_v30 }
 0x2d8   : > { %2582 = vmatpush1.bf16.msra.mxu0 %v7126_v33 }
 0x2d9   : > { %2583 = vmatprep.subr.bf16.mxu0 %v7133_v44 }
 0x2dc   : > { %2584 = vmatpush1.bf16.msra.mxu0 %v7131_v12 }
 0x2dd   : > { %2585 = vmatprep.subr.bf16.mxu0 %v7138_v9 }
 0x2e0   : > { %2586 = vmatpush1.bf16.msra.mxu0 %v7136_v31  ;;  %v7189_v31 = vld [vmem:[%s9530_s1 + $0x200] ss:$12 sps:$4 sm:$0x1f]  }
 0x2e1   : > { %2587 = vmatprep.subr.bf16.mxu0 %v7143_v7  ;;  %v2563_v43 = vsel %vm2555_vm12, %v7189_v31, 0 }
 0x2e4   : > { %2588 = vmatpush1.bf16.msra.mxu0 %v7141_v2 }
 0x2e5   : > { %2589 = vmatprep.subr.bf16.mxu0 %v7148_v19 }
 0x2e8   : > { %2590 = vmatpush1.bf16.msra.mxu0 %v7146_v25 }
 0x2e9   : > { %2591 = vmatprep.subr.bf16.mxu0 %v7153_v51 }
 0x2ec   : > { %2592 = vmatpush1.bf16.msra.mxu0 %v7151_v37 }
 0x2ed   : > { %2593 = vmatprep.subr.bf16.mxu0 %v7158_v18 }
 0x2f0   : > { %2594 = vmatpush1.bf16.msra.mxu0 %v7156_v54 }
 0x2f1   : > { %2595 = vmatprep.subr.bf16.mxu0 %v7163_v24 }
 0x2f4   : > { %2596 = vmatpush1.bf16.msra.mxu0 %v7161_v47 }
 0x2f5   : > { %2606 = vmatprep.subr.bf16.mxu0 %v7168_v35 }
 0x389   : > { %v8550_v23 = vpop.f32.mrb[4].mxu1 }
 0x38a   : > { %v2082_v36 = vmul.f32 %v2076_v49, %v8550_v23  ;;  %v8553_v16 = vpop.f32.mrb[4].mxu0  ;;  %v2059_v56 = vpop.f32.mrb[5].mxu1 }
 0x38b   : > { %v2080_v57 = vmul.f32 %v2068_v26, %v8553_v16  ;;  %v8556_v48 = vpop.f32.mrb[5].mxu0  ;;  %v2060_v53 = vpop.f32.mrb[6].mxu1 }
 0x38c   : > { %v2081_v11 = vmul.f32 %v2072_v1, %v8556_v48  ;;  %v2020_v59 = vpop.f32.mrb[6].mxu0  ;;  %v2061_v62 = vpop.f32.mrb[7].mxu1  ;;  %v2092_v15 = vmul.f32 %v2082_v36, %v8550_v23  ;;  %v2085_v63 = vsel %vm2084_vm9, %v2082_v36, 0.0 }
 0x38d   : > { %v2090_v39 = vmul.f32 %v2080_v57, %v8553_v16  ;;  %v2021_v52 = vpop.f32.mrb[7].mxu0  ;;  %v7173_v59 = vld [vmem:[%s9530_s1 + $0x1a0] ss:$12 sps:$4 sm:$0xff]  }
 0x38e   : > { %v2091_v5 = vmul.f32 %v2081_v11, %v8556_v48  ;;  %v2083_v3 = vadd.f32 %v2081_v11, %v2080_v57  ;;  %v2094_v22 = vsel %vm2084_vm9, %v2092_v15, 0.0  ;;  %v7166_v57 = vld [vmem:[%s9530_s1 + $0x180] ss:$12 sps:$4 sm:$0xff]   ;;  %v7169_v11 = vld [vmem:[%s9530_s1 + $0x188] ss:$12 sps:$4 sm:$0xff]  }
 0x38f   : > { %v7176_v62 = vld [vmem:[%s9530_s1 + $0x1b4] ss:$12 sps:$4 sm:$0xff]   ;;  %v7174_v15 = vld [vmem:[%s9530_s1 + $0x1b0] ss:$12 sps:$4 sm:$0xff]   ;;  %v7180_v52 = vld [vmem:[%s9530_s1 + $0x1cc] ss:$12 sps:$4 sm:$0xff]  }
 0x390   : > { %v2086_v8 = vadd.f32 %v2085_v63, %v2083_v3  ;;  %v2093_v61 = vadd.f32 %v2091_v5, %v2090_v39  ;;  %v7177_v39 = vld [vmem:[%s9530_s1 + $0x1b8] ss:$12 sps:$4 sm:$0xff]   ;;  %v7178_v63 = vld [vmem:[%s9530_s1 + $0x1c8] ss:$12 sps:$4 sm:$0xff]   ;;  %v7181_v5 = vld [vmem:[%s9530_s1 + $0x1d0] ss:$12 sps:$4 sm:$0xff]  }
 0x391   : > { %v7184_v3 = vld [vmem:[%s9530_s1 + $0x1e4] ss:$12 sps:$4 sm:$0xff]  }
 0x392   : > { %2087 = vadd.xlane.f32.xlu0 %v2086_v8  ;;  %v2095_v40 = vadd.f32 %v2094_v22, %v2093_v61  ;;  %v7182_v61 = vld [vmem:[%s9530_s1 + $0x1e0] ss:$12 sps:$4 sm:$0xff]   ;;  %v7185_v22 = vld [vmem:[%s9530_s1 + $0x1e8] ss:$12 sps:$4 sm:$0xff]  }
 0x394   : > { %2096 = vadd.xlane.f32.xlu1 %v2095_v40  ;;  %v7186_v40 = vld [vmem:[%s9530_s1 + $0x1fc] ss:$12 sps:$4 sm:$0x1f]  }
 0x41f   : > { %v2088_v20 = vpop.xlane.xlu0 %2087 }
 0x420   : > { %v2089_v60 = vmul.f32 0.00390625, %v2088_v20 }
 0x421   : > { %v2097_v55 = vpop.xlane.xlu1 %2096 }
 0x422   : > { %v2098_v42 = vmul.f32 0.00390625, %v2097_v55  ;;  %v2099_v30 = vmul.f32 %v2089_v60, %v2089_v60  ;;  %v2101_v12 = vsub.f32 %v8553_v16, %v2089_v60  ;;  %v2102_v28 = vsub.f32 %v8556_v48, %v2089_v60  ;;  %v7172_v16 = vld [vmem:[%s9530_s1 + $0x19c] ss:$12 sps:$4 sm:$0xff]   ;;  %v7170_v48 = vld [vmem:[%s9530_s1 + $0x198] ss:$12 sps:$4 sm:$0xff]  }
 0x423   : > { %v2103_v8 = vsub.f32 %v8550_v23, %v2089_v60  ;;  %v7188_v23 = vld [vmem:[%s9530_s1 + $0x1f8] ss:$12 sps:$4 sm:$0x1f]   ;;  %s9537_s1 = smov 126  }
 0x424   : > { %v2100_v33 = vsub.f32 %v2098_v42, %v2099_v30  ;;  %v2557_v13 = vsel %vm2555_vm12, %v7188_v23, 0 }
 0x426   : > { %v2104_v44 = vadd.f32 1e-05, %v2100_v33 }
 0x428   : > { %7259 = vrsqrt.f32 %v2104_v44 }
 0x432   : > { %v7260_v34 = vpop.eup %7259 }
 0x433   : > { %v2107_v49 = vmul.f32 %v7260_v34, %v2102_v28  ;;  %v2106_v26 = vmul.f32 %v7260_v34, %v2101_v12  ;;  %v2108_v9 = vmul.f32 %v7260_v34, %v2103_v8 }
 0x435   : > { %v2110_v1 = vmax.f32 %v2107_v49, 0.0  ;;  %v2109_v36 = vmax.f32 %v2106_v26, 0.0  ;;  %v2111_v2 = vmax.f32 %v2108_v9, 0.0 }
 0x437   : > { %v2113_v56 = vpack.c.bf16 %v2110_v1, %v2110_v1  ;;  %v2112_v53 = vpack.c.bf16 %v2109_v36, %v2109_v36  ;;  %v2114_v7 = vpack.c.bf16 %v2111_v2, %v2111_v2 }
 0x439   : > { %2597 = vmatprep.mubr.bf16.mxu0 %v2113_v56  ;;  %2679 = vmatprep.mubr.bf16.mxu1 %v2113_v56 }
 0x43a   : > { %2598 = vmatmul.mubr.bf16.vlgmr.msra.gmra.mrb[8].mxu0 %v2112_v53  ;;  %2680 = vmatmul.mubr.bf16.vlgmr.msra.gmra.mrb[8].mxu1 %v2112_v53 }
 0x43b   : > { %2607 = vmatpush1.bf16.msra.mxu0 %v7166_v57  ;;  %5961 = vmatpush3.bf16.msra.mxu1 %v7169_v11 }
 0x43c   : > { %2608 = vmatprep.subr.bf16.mxu0 %v7172_v16  ;;  %5962 = vmatprep.subr.bf16.mxu1 %v7340_v50 }
 0x43d   : > { %2638 = vmatprep.mubr.bf16.mxu0 %v9468_v14  ;;  %5972 = vmatprep.mubr.msk.bf16.mxu1 %vm7341_vm10, %v7340_v50 }
 0x43f   : > { %2609 = vmatpush1.bf16.msra.mxu0 %v7170_v48  ;;  %5963 = vmatpush3.bf16.msra.mxu1 %v7173_v59 }
 0x440   : > { %2610 = vmatprep.subr.bf16.mxu0 %v7176_v62  ;;  %5964 = vmatprep.subr.bf16.mxu1 %v7340_v50 }
 0x443   : > { %2611 = vmatpush1.bf16.msra.mxu0 %v7174_v15  ;;  %5965 = vmatpush3.bf16.msra.mxu1 %v7177_v39 }
 0x444   : > { %2612 = vmatprep.subr.bf16.mxu0 %v7180_v52  ;;  %5966 = vmatprep.subr.bf16.mxu1 %v7340_v50 }
 0x447   : > { %2613 = vmatpush1.bf16.msra.mxu0 %v7178_v63  ;;  %5967 = vmatpush3.bf16.msra.mxu1 %v7181_v5 }
 0x448   : > { %2614 = vmatprep.subr.bf16.mxu0 %v7184_v3  ;;  %5968 = vmatprep.subr.bf16.mxu1 %v7340_v50 }
 0x44b   : > { %2615 = vmatpush1.bf16.msra.mxu0 %v7182_v61  ;;  %5969 = vmatpush3.bf16.msra.mxu1 %v7185_v22 }
 0x44c   : > { %5615 = vmatprep.subr.msk.bf16.mxu0 %vm2555_vm12, %v7186_v40  ;;  %5970 = vmatprep.subr.bf16.mxu1 %v7340_v50 }
 0x44f   : > { %2617 = vmatpush1.bf16.msra.mxu0 %v2557_v13  ;;  %5971 = vmatpush3.bf16.msra.mxu1 %v2563_v43 }
 0x450   : > { %5976 = vmatprep.subr.bf16.mxu0 %v7340_v50 }
 0x452   : > { %5616 = vmatmul.mubr.msk.bf16.vlgmr.msra.gmra.mrb[8].mxu0 %vm2084_vm9, %v2114_v7  ;;  %5973 = vmatmul.mubr.msk.bf16.vlgmr.msra.gmra.mrb[12].mxu1 %vm2084_vm9, %v2114_v7 }
 0x453   : > { %5992 = vmatprep.mubr.msk.bf16.mxu0 %vm7341_vm10, %v7340_v50  ;;  %2966 = vmatprep.mubr.bf16.mxu1 %v9468_v14 }
 0x50d   : > { %v5726_v38 = vpop.f32.mrb[8].mxu1 }
 0x50e   : > { %v5727_v58 = vpop.f32.mrb[9].mxu1 }
 0x50f   : > { %v5728_v19 = vadd.f32 %v5727_v58, %v5726_v38  ;;  %v5729_v25 = vpop.f32.mrb[10].mxu1 }
 0x510   : > { %v5730_v45 = vpop.f32.mrb[11].mxu1 }
 0x525   : > { %v8711_v51 = vpop.f32.mrb[8].mxu0  ;;  %v2721_v17 = vpop.f32.mrb[12].mxu1 }
 0x526   : > { %v2722_v37 = vadd.f32 %v5728_v19, %v2721_v17  ;;  %v5974_v32 = vpop.f32.mrb[13].mxu1  ;;  %2741 = vrot.lane.b32.xlu0 %v8711_v51, %s9422_s28  ;;  %2730 = vrot.lane.b32.xlu1 %v8711_v51, %s9426_s0  ;;  %v8717_v18 = vpop.f32.mrb[9].mxu0  ;;  %s7347_s28 = smov 73  }
 0x527   : > { %v2644_v46 = vpop.f32.mrb[10].mxu0  ;;  %v2724_v14 = vpop.f32.mrb[14].mxu1 }
 0x528   : > { %v2645_v54 = vpop.f32.mrb[11].mxu0  ;;  %v5975_v6 = vpop.f32.mrb[15].mxu1  ;;  %v6533_v24 = vpack.i.bf16 %v2722_v37, %v8717_v18 }
 0x52a   : > { %2763 = vrot.lane.b32.xlu0 %v8711_v51, %s9532_s3  ;;  %2752 = vrot.lane.b32.xlu1 %v8711_v51, %s9533_s4 }
 0x52e   : > { %2785 = vrot.lane.b32.xlu0 %v8711_v51, %s9534_s5  ;;  %2774 = vrot.lane.b32.xlu1 %v8711_v51, %s9535_s25 }
 0x532   : > { %2807 = vrot.lane.b32.xlu0 %v8711_v51, %s7342_s8  ;;  %2796 = vrot.lane.b32.xlu1 %v8711_v51, %s9536_s30 }
 0x536   : > { %2831 = vrot.lane.b32.xlu0 %v8711_v51, %s7343_s29  ;;  %2819 = vrot.lane.b32.xlu1 %v8711_v51, %s7344_s7 }
 0x53a   : > { %2854 = vrot.lane.b32.xlu0 %v8711_v51, %s7345_s2  ;;  %2842 = vrot.lane.b32.xlu1 %v8711_v51, %s7346_s27 }
 0x53e   : > { %2866 = vrot.lane.b32.xlu1 %v8711_v51, %s7347_s28  ;;  %6534 = vrot.lane.b32.xlu0 %v6533_v24, %s9426_s0  ;;  %s7349_s0 = smov 72  }
 0x542   : > { %6544 = vrot.lane.b32.xlu1 %v6533_v24, %s9533_s4  ;;  %6539 = vrot.lane.b32.xlu0 %v6533_v24, %s9537_s1 }
 0x546   : > { %6554 = vrot.lane.b32.xlu1 %v6533_v24, %s9535_s25  ;;  %6549 = vrot.lane.b32.xlu0 %v6533_v24, %s9532_s3  ;;  %s9543_s3 = smov 118   ;;  %s9544_s25 = smov 105  }
 0x54a   : > { %6564 = vrot.lane.b32.xlu1 %v6533_v24, %s9536_s30  ;;  %6559 = vrot.lane.b32.xlu0 %v6533_v24, %s9534_s5 }
 0x54e   : > { %6574 = vrot.lane.b32.xlu1 %v6533_v24, %s7344_s7  ;;  %6569 = vrot.lane.b32.xlu0 %v6533_v24, %s7342_s8  ;;  %s9539_s8 = sld [smem:[#allocation31_spill]]  ;;  %s9548_s7 = smov 116  }
 0x552   : > { %6584 = vrot.lane.b32.xlu1 %v6533_v24, %s7346_s27  ;;  %6579 = vrot.lane.b32.xlu0 %v6533_v24, %s7343_s29  ;;  %s7352_s29 = smov 98   ;;  %s9549_s27 = smov 115  }
 0x556   : > { %6594 = vrot.lane.b32.xlu1 %v6533_v24, %s7347_s28  ;;  %6589 = vrot.lane.b32.xlu0 %v6533_v24, %s7345_s2  ;;  %s9540_s2 = sld [smem:[#allocation32_spill]]  ;;  %s7356_s28 = smov 96  }
 0x55a   : > { %6604 = vrot.lane.b32.xlu1 %v6533_v24, %s7348_s6  ;;  %6599 = vrot.lane.b32.xlu0 %v6533_v24, %s7349_s0 }
 0x55e   : > { %2890 = vrot.lane.b32.xlu1 %v8711_v51, %s7348_s6  ;;  %2878 = vrot.lane.b32.xlu0 %v8711_v51, %s7349_s0  ;;  %s9538_s0 = sld [smem:[#allocation30_spill]]  ;;  %s9545_s6 = sld [smem:[#allocation33_spill]] }
 0x598   : > { %v2742_v0 = vpop.permute.xlu0 %2741  ;;  %v2731_v47 = vpop.permute.xlu1 %2730 }
 0x59c   : > { %v2764_v29 = vpop.permute.xlu0 %2763  ;;  %v2753_v35 = vpop.permute.xlu1 %2752 }
 0x5a0   : > { %v2786_v27 = vpop.permute.xlu0 %2785  ;;  %v2775_v20 = vpop.permute.xlu1 %2774 }
 0x5a4   : > { %v8745_v60 = vpop.permute.xlu0 %2807  ;;  %v2797_v55 = vpop.permute.xlu1 %2796 }
 0x5a8   : > { %v8747_v42 = vpop.permute.xlu0 %2831  ;;  %v8749_v30 = vpop.permute.xlu1 %2819 }
 0x5ac   : > { %v8751_v33 = vpop.permute.xlu0 %2854  ;;  %v8753_v44 = vpop.permute.xlu1 %2842 }
 0x5b0   : > { %v8755_v12 = vpop.permute.xlu1 %2866  ;;  %v6535_v28 = vpop.permute.xlu0 %6534 }
 0x5b1   : > { %v6537_v34 = vunpack.i.h.bf16 %v6535_v28  ;;  %v6536_v49 = vunpack.i.l.bf16 %v6535_v28 }
 0x5b3   : > { %v2904_v26 = vpack.c.bf16 %v6537_v34, %v2722_v37  ;;  %v2736_v1 = vsel %vm1223_vm6, %v2731_v47, %v6536_v49  ;;  %v2737_v36 = vsel %vm1223_vm6, %v6536_v49, %v6537_v34  ;;  %vm2860_vm6 = vcmask 605184  }
 0x5b4   : > { %v6545_v56 = vpop.permute.xlu1 %6544  ;;  %v6540_v57 = vpop.permute.xlu0 %6539  ;;  %v2903_v53 = vpack.c.bf16 %v2737_v36, %v8717_v18  ;;  %v2902_v11 = vpack.c.bf16 %v2736_v1, %v8711_v51 }
 0x5b5   : > { %v6547_v16 = vunpack.i.h.bf16 %v6545_v56  ;;  %v6546_v48 = vunpack.i.l.bf16 %v6545_v56  ;;  %v6542_v59 = vunpack.i.h.bf16 %v6540_v57  ;;  %v6541_v62 = vunpack.i.l.bf16 %v6540_v57  ;;  %5977 = vmatpush3.bf16.msra.mxu0 %v2904_v26 }
 0x5b6   : > { %2934 = vmatprep.subr.bf16.mxu1 %v2903_v53  ;;  %5978 = vmatprep.subr.bf16.mxu0 %v7340_v50 }
 0x5b7   : > { %v2758_v15 = vsel %vm1247_vm5, %v2753_v35, %v6546_v48  ;;  %v2907_v39 = vpack.c.bf16 %v6547_v16, %v6542_v59  ;;  %v2747_v52 = vsel %vm1235_vm1, %v2742_v0, %v6541_v62  ;;  %2935 = vmatpush1.bf16.msra.mxu1 %v2902_v11  ;;  %v2748_v63 = vsel %vm1235_vm1, %v6541_v62, %v6542_v59 }
 0x5b8   : > { %v6555_v5 = vpop.permute.xlu1 %6554  ;;  %v6550_v3 = vpop.permute.xlu0 %6549  ;;  %v2759_v8 = vsel %vm1247_vm5, %v6546_v48, %v6547_v16  ;;  %v2905_v61 = vpack.c.bf16 %v2758_v15, %v2747_v52  ;;  %vm2813_vm1 = vcmask 752640   ;;  %vm2825_vm5 = vcmask 744448  }
 0x5b9   : > { %v6557_v22 = vunpack.i.h.bf16 %v6555_v5  ;;  %v6556_v40 = vunpack.i.l.bf16 %v6555_v5  ;;  %v6552_v23 = vunpack.i.h.bf16 %v6550_v3  ;;  %v6551_v31 = vunpack.i.l.bf16 %v6550_v3  ;;  %5979 = vmatpush3.bf16.msra.mxu0 %v2907_v39 }
 0x5ba   : > { %v2906_v9 = vpack.c.bf16 %v2759_v8, %v2748_v63  ;;  %5980 = vmatprep.subr.bf16.mxu0 %v7340_v50 }
 0x5bb   : > { %v2780_v13 = vsel %vm1586_vm13, %v2775_v20, %v6556_v40  ;;  %v2910_v43 = vpack.c.bf16 %v6557_v22, %v6552_v23  ;;  %v2769_v2 = vsel %vm1570_vm8, %v2764_v29, %v6551_v31  ;;  %v2770_v7 = vsel %vm1570_vm8, %v6551_v31, %v6552_v23 }
 0x5bc   : > { %2936 = vmatprep.subr.bf16.mxu1 %v2906_v9  ;;  %v6565_v38 = vpop.permute.xlu1 %6564  ;;  %v6560_v58 = vpop.permute.xlu0 %6559  ;;  %v2781_v19 = vsel %vm1586_vm13, %v6556_v40, %v6557_v22  ;;  %v2908_v25 = vpack.c.bf16 %v2780_v13, %v2769_v2  ;;  %vm2896_vm8 = vcmask 580608   ;;  %vm2884_vm13 = vcmask 588800  }
 0x5bd   : > { %2937 = vmatpush1.bf16.msra.mxu1 %v2905_v61  ;;  %v6567_v45 = vunpack.i.h.bf16 %v6565_v38  ;;  %v6566_v51 = vunpack.i.l.bf16 %v6565_v38  ;;  %v6562_v17 = vunpack.i.h.bf16 %v6560_v58  ;;  %v6561_v37 = vunpack.i.l.bf16 %v6560_v58  ;;  %5981 = vmatpush3.bf16.msra.mxu0 %v2910_v43 }
 0x5be   : > { %v2909_v32 = vpack.c.bf16 %v2781_v19, %v2770_v7  ;;  %5982 = vmatprep.subr.bf16.mxu0 %v7340_v50 }
 0x5bf   : > { %v2802_v18 = vsel %vm1474_vm2, %v2797_v55, %v6566_v51  ;;  %v2913_v46 = vpack.c.bf16 %v6567_v45, %v6562_v17  ;;  %v2791_v14 = vsel %vm1458_vm11, %v2786_v27, %v6561_v37  ;;  %v2792_v54 = vsel %vm1458_vm11, %v6561_v37, %v6562_v17 }
 0x5c0   : > { %2938 = vmatprep.subr.bf16.mxu1 %v2909_v32  ;;  %v6575_v6 = vpop.permute.xlu1 %6574  ;;  %v6570_v24 = vpop.permute.xlu0 %6569  ;;  %v2803_v0 = vsel %vm1474_vm2, %v6566_v51, %v6567_v45  ;;  %v2911_v47 = vpack.c.bf16 %v2802_v18, %v2791_v14  ;;  %vm2848_vm2 = vcmask 728064   ;;  %vm2872_vm11 = vcmask 596992   ;;  %v7190_v32 = vld [vmem:[%s9538_s0] sm:$0xff]   ;;  %s9542_s0 = smov 106  }
 0x5c1   : > { %2939 = vmatpush1.bf16.msra.mxu1 %v2908_v25  ;;  %v6577_v29 = vunpack.i.h.bf16 %v6575_v6  ;;  %v6576_v35 = vunpack.i.l.bf16 %v6575_v6  ;;  %v6572_v20 = vunpack.i.h.bf16 %v6570_v24  ;;  %v6571_v28 = vunpack.i.l.bf16 %v6570_v24  ;;  %5983 = vmatpush3.bf16.msra.mxu0 %v2913_v46 }
 0x5c2   : > { %v2912_v55 = vpack.c.bf16 %v2803_v0, %v2792_v54  ;;  %5984 = vmatprep.subr.bf16.mxu0 %v7340_v50  ;;  %v3018_v54 = vld [vmem:[%s9539_s8] sm:$0x7]  ;;  %s7351_s8 = smov 117  }
 0x5c3   : > { %v2916_v27 = vpack.c.bf16 %v6577_v29, %v6572_v20  ;;  %v2815_v34 = vsel %vm2813_vm1, %v6571_v28, %v6572_v20  ;;  %v2827_v49 = vsel %vm2825_vm5, %v6576_v35, %v6577_v29  ;;  %v2814_v26 = vsel %vm2813_vm1, %v8745_v60, %v6571_v28 }
 0x5c4   : > { %2940 = vmatprep.subr.bf16.mxu1 %v2912_v55  ;;  %v6585_v1 = vpop.permute.xlu1 %6584  ;;  %v6580_v36 = vpop.permute.xlu0 %6579  ;;  %v2915_v56 = vpack.c.bf16 %v2827_v49, %v2815_v34  ;;  %v2826_v57 = vsel %vm2825_vm5, %v8749_v30, %v6576_v35  ;;  %v3031_v6 = vrot.slane %v3018_v54, %v2075_v21  ;;  %v3027_v35 = vrot.slane %v3018_v54, %v2071_v10 }
 0x5c5   : > { %2941 = vmatpush1.bf16.msra.mxu1 %v2911_v47  ;;  %v6587_v53 = vunpack.i.h.bf16 %v6585_v1  ;;  %v6586_v11 = vunpack.i.l.bf16 %v6585_v1  ;;  %v6582_v16 = vunpack.i.h.bf16 %v6580_v36  ;;  %v6581_v48 = vunpack.i.l.bf16 %v6580_v36  ;;  %5985 = vmatpush3.bf16.msra.mxu0 %v2916_v27 }
 0x5c6   : > { %2942 = vmatprep.subr.bf16.mxu1 %v2915_v56  ;;  %v2914_v59 = vpack.c.bf16 %v2826_v57, %v2814_v26  ;;  %5986 = vmatprep.subr.bf16.mxu0 %v7340_v50  ;;  %v3023_v47 = vrot.slane %v3018_v54, %v2067_v41 }
 0x5c7   : > { %v2919_v62 = vpack.c.bf16 %v6587_v53, %v6582_v16  ;;  %v2837_v60 = vsel %vm2084_vm9, %v8747_v42, %v6581_v48  ;;  %v2838_v15 = vsel %vm2084_vm9, %v6581_v48, %v6582_v16  ;;  %v2850_v39 = vsel %vm2848_vm2, %v6586_v11, %v6587_v53 }
 0x5c8   : > { %v6595_v30 = vpop.permute.xlu1 %6594  ;;  %v6590_v52 = vpop.permute.xlu0 %6589  ;;  %v2918_v63 = vpack.c.bf16 %v2850_v39, %v2838_v15  ;;  %v2849_v5 = vsel %vm2848_vm2, %v8753_v44, %v6586_v11  ;;  %vm3628_vm9 = vcmask 1040384  }
 0x5c9   : > { %2943 = vmatpush1.bf16.msra.mxu1 %v2914_v59  ;;  %v6597_v3 = vunpack.i.h.bf16 %v6595_v30  ;;  %v6596_v8 = vunpack.i.l.bf16 %v6595_v30  ;;  %v6592_v61 = vunpack.i.h.bf16 %v6590_v52  ;;  %v6591_v22 = vunpack.i.l.bf16 %v6590_v52  ;;  %5987 = vmatpush3.bf16.msra.mxu0 %v2919_v62 }
 0x5ca   : > { %2944 = vmatprep.subr.bf16.mxu1 %v2918_v63  ;;  %v2917_v42 = vpack.c.bf16 %v2849_v5, %v2837_v60  ;;  %5988 = vmatprep.subr.bf16.mxu0 %v7340_v50 }
 0x5cb   : > { %v2922_v40 = vpack.c.bf16 %v6597_v3, %v6592_v61  ;;  %v2862_v23 = vsel %vm2860_vm6, %v6591_v22, %v6592_v61  ;;  %v2874_v31 = vsel %vm2872_vm11, %v6596_v8, %v6597_v3  ;;  %v2861_v9 = vsel %vm2860_vm6, %v8751_v33, %v6591_v22  ;;  %v7191_v3 = vld [vmem:[%s9540_s2 + $0x40] sm:$0xff]   ;;  %v7193_v61 = vld [vmem:[%s9540_s2 + $0x48] sm:$0xff]  }
 0x5cc   : > { %v6605_v13 = vpop.permute.xlu1 %6604  ;;  %v6600_v44 = vpop.permute.xlu0 %6599  ;;  %v2921_v43 = vpack.c.bf16 %v2874_v31, %v2862_v23  ;;  %v2873_v2 = vsel %vm2872_vm11, %v8755_v12, %v6596_v8  ;;  %v7192_v8 = vld [vmem:[%s9540_s2] sm:$0xff]   ;;  %v7194_v22 = vld [vmem:[%s9540_s2 + $0x8] sm:$0xff]   ;;  %v7195_v23 = vld [vmem:[%s9540_s2 + $0x50] sm:$0xff]  }
 0x5cd   : > { %2945 = vmatpush1.bf16.msra.mxu1 %v2917_v42  ;;  %v6607_v7 = vunpack.i.h.bf16 %v6605_v13  ;;  %v6606_v38 = vunpack.i.l.bf16 %v6605_v13  ;;  %v6602_v58 = vunpack.i.h.bf16 %v6600_v44  ;;  %v6601_v19 = vunpack.i.l.bf16 %v6600_v44  ;;  %5989 = vmatpush3.bf16.msra.mxu0 %v2922_v40  ;;  %v7196_v31 = vld [vmem:[%s9540_s2 + $0x10] sm:$0xff]   ;;  %v7198_v44 = vld [vmem:[%s9540_s2 + $0x18] sm:$0xff]  }
 0x5ce   : > { %2946 = vmatprep.subr.bf16.mxu1 %v2921_v43  ;;  %v2920_v25 = vpack.c.bf16 %v2873_v2, %v2861_v9  ;;  %5990 = vmatprep.subr.bf16.mxu0 %v7340_v50  ;;  %v7350_v42 = vmov 65535   ;;  %v7197_v9 = vld [vmem:[%s9540_s2 + $0x58] sm:$0xff]   ;;  %v7206_v43 = vld [vmem:[%s9540_s2 + $0x80] sm:$0x3f]  }
 0x5cf   : > { %v2925_v45 = vpack.c.bf16 %v6607_v7, %v6602_v58  ;;  %v2886_v33 = vsel %vm2884_vm13, %v6601_v19, %v6602_v58  ;;  %v2898_v51 = vsel %vm2896_vm8, %v6606_v38, %v6607_v7  ;;  %v3240_v40 = vsel %vm2555_vm12, 4294967295, %v7350_v42  ;;  %v7199_v2 = vld [vmem:[%s9540_s2 + $0x60] sm:$0xff]   ;;  %v7201_v58 = vld [vmem:[%s9540_s2 + $0x68] sm:$0xff]  }
 0x5d0   : > { %v2891_v17 = vpop.permute.xlu1 %2890  ;;  %v2879_v37 = vpop.permute.xlu0 %2878  ;;  %v2924_v12 = vpack.c.bf16 %v2898_v51, %v2886_v33  ;;  %v3241_v13 = vsel %vm3239_vm15, %v3240_v40, 0  ;;  %v7205_v33 = vld [vmem:[%s9540_s2 + $0x78] sm:$0xff]   ;;  %vm4040_vm12 = vcmask 1042432  }
 0x5d1   : > { %2947 = vmatpush1.bf16.msra.mxu1 %v2920_v25  ;;  %v2897_v18 = vsel %vm2896_vm8, %v2891_v17, %v6606_v38  ;;  %v2885_v46 = vsel %vm2884_vm13, %v2879_v37, %v6601_v19  ;;  %5991 = vmatpush3.bf16.msra.mxu0 %v2925_v45  ;;  %v3243_v7 = vand.u32 %v7206_v43, %v3241_v13  ;;  %v7200_v38 = vld [vmem:[%s9540_s2 + $0x20] sm:$0xff]   ;;  %v7202_v19 = vld [vmem:[%s9540_s2 + $0x28] sm:$0xff]   ;;  %v7203_v25 = vld [vmem:[%s9540_s2 + $0x70] sm:$0xff]  }
 0x5d2   : > { %v2923_v14 = vpack.c.bf16 %v2897_v18, %v2885_v46  ;;  %2948 = vmatprep.subr.bf16.mxu1 %v2924_v12  ;;  %5996 = vmatprep.subr.bf16.mxu0 %v7340_v50  ;;  %v7204_v45 = vld [vmem:[%s9540_s2 + $0x30] sm:$0xff]   ;;  %v7207_v51 = vld [vmem:[%s9540_s2 + $0x38] sm:$0xff]   ;;  %v7210_v13 = vld [vmem:[%s9545_s6 + $0x4] ss:$8 sps:$4 sm:$0xff]  }
 0x5d4   : > { %5993 = vmatmul.mubr.bf16.vlgmr.msra.gmra.mrb[12].mxu0 %v7190_v32 }
 0x5d5   : > { %2949 = vmatpush1.bf16.msra.mxu1 %v2923_v14  ;;  %5998 = vmatprep.mubr.msk.bf16.mxu0 %vm7341_vm10, %v7340_v50  ;;  %vm3955_vm10 = vcmask 179200  }
 0x5d6   : > { %5748 = vmatprep.subr.bf16.mxu1 %v7191_v3  ;;  %5997 = vmatpush3.bf16.msra.mxu0 %v3243_v7 }
 0x5d8   : > { %2967 = vmatmul.mubr.bf16.vlgmr.msra.gmra.mrb[16].mxu1 %v7190_v32 }
 0x5d9   : > { %5749 = vmatpush3.bf16.msra.mxu1 %v7192_v8 }
 0x5da   : > { %5750 = vmatprep.subr.bf16.mxu1 %v7193_v61 }
 0x5dd   : > { %5751 = vmatpush3.bf16.msra.mxu1 %v7194_v22 }
 0x5de   : > { %5752 = vmatprep.subr.bf16.mxu1 %v7195_v23 }
 0x5e1   : > { %5753 = vmatpush3.bf16.msra.mxu1 %v7196_v31 }
 0x5e2   : > { %5754 = vmatprep.subr.bf16.mxu1 %v7197_v9 }
 0x5e5   : > { %5755 = vmatpush3.bf16.msra.mxu1 %v7198_v44 }
 0x5e6   : > { %5756 = vmatprep.subr.bf16.mxu1 %v7199_v2 }
 0x5e9   : > { %5757 = vmatpush3.bf16.msra.mxu1 %v7200_v38 }
 0x5ea   : > { %5758 = vmatprep.subr.bf16.mxu1 %v7201_v58 }
 0x5ed   : > { %5759 = vmatpush3.bf16.msra.mxu1 %v7202_v19 }
 0x5ee   : > { %5760 = vmatprep.subr.bf16.mxu1 %v7203_v25 }
 0x5f1   : > { %5761 = vmatpush3.bf16.msra.mxu1 %v7204_v45 }
 0x5f2   : > { %5762 = vmatprep.subr.bf16.mxu1 %v7205_v33 }
 0x5f5   : > { %5763 = vmatpush3.bf16.msra.mxu1 %v7207_v51 }
 0x6a7   : > { %v8809_v24 = vpop.f32.mrb[12].mxu0 }
 0x6a8   : > { %v5994_v0 = vpop.f32.mrb[13].mxu0  ;;  %v3037_v50 = vmul.f32 %v3031_v6, %v8809_v24 }
 0x6a9   : > { %v8813_v29 = vpop.f32.mrb[14].mxu0 }
 0x6aa   : > { %v5995_v20 = vpop.f32.mrb[15].mxu0  ;;  %v3040_v21 = vmul.f32 %v3031_v6, %v8813_v29  ;;  %v3056_v49 = vmul.f32 %v3037_v50, %v8809_v24  ;;  %v3043_v1 = vsel %vm3042_vm14, %v3037_v50, 0.0 }
 0x6ab   : > { %v8818_v28 = vpop.f32.mrb[16].mxu1 }
 0x6ac   : > { %v3035_v55 = vmul.f32 %v3023_v47, %v8818_v28  ;;  %v8822_v27 = vpop.f32.mrb[17].mxu1  ;;  %v3059_v53 = vmul.f32 %v3040_v21, %v8813_v29  ;;  %v3048_v60 = vsel %vm3042_vm14, %v3040_v21, 0.0  ;;  %v3061_v15 = vsel %vm3042_vm14, %v3056_v49, 0.0 }
 0x6ad   : > { %v3036_v34 = vmul.f32 %v3027_v35, %v8822_v27  ;;  %v8825_v41 = vpop.f32.mrb[18].mxu1 }
 0x6ae   : > { %v3054_v4 = vmul.f32 %v3035_v55, %v8818_v28  ;;  %v3038_v10 = vmul.f32 %v3023_v47, %v8825_v41  ;;  %v8830_v26 = vpop.f32.mrb[19].mxu1  ;;  %v3066_v63 = vsel %vm3042_vm14, %v3059_v53, 0.0 }
 0x6af   : > { %v3041_v36 = vadd.f32 %v3036_v34, %v3035_v55  ;;  %v3055_v56 = vmul.f32 %v3036_v34, %v8822_v27  ;;  %v3039_v57 = vmul.f32 %v3027_v35, %v8830_v26 }
 0x6b0   : > { %v3057_v11 = vmul.f32 %v3038_v10, %v8825_v41 }
 0x6b1   : > { %v3060_v16 = vadd.f32 %v3055_v56, %v3054_v4  ;;  %v3047_v48 = vadd.f32 %v3039_v57, %v3038_v10  ;;  %v3058_v59 = vmul.f32 %v3039_v57, %v8830_v26  ;;  %v3044_v62 = vadd.f32 %v3043_v1, %v3041_v36 }
 0x6b3   : > { %v3065_v39 = vadd.f32 %v3058_v59, %v3057_v11  ;;  %3045 = vadd.xlane.f32.xlu0 %v3044_v62  ;;  %v3049_v30 = vadd.f32 %v3048_v60, %v3047_v48  ;;  %v3062_v52 = vadd.f32 %v3061_v15, %v3060_v16 }
 0x6b5   : > { %3050 = vadd.xlane.f32.xlu1 %v3049_v30  ;;  %v3067_v5 = vadd.f32 %v3066_v63, %v3065_v39 }
 0x6b7   : > { %3063 = vadd.xlane.f32.xlu0 %v3062_v52 }
 0x6bb   : > { %3068 = vadd.xlane.f32.xlu0 %v3067_v5 }
 0x740   : > { %v3046_v17 = vpop.xlane.xlu0 %3045 }
 0x741   : > { %v3052_v37 = vmul.f32 0.015625, %v3046_v17 }
 0x742   : > { %v3051_v12 = vpop.xlane.xlu1 %3050 }
 0x743   : > { %v3053_v18 = vmul.f32 0.015625, %v3051_v12  ;;  %v3072_v46 = vmul.f32 %v3052_v37, %v3052_v37  ;;  %v3078_v21 = vsub.f32 %v8809_v24, %v3052_v37  ;;  %v3077_v34 = vsub.f32 %v8822_v27, %v3052_v37 }
 0x744   : > { %v3064_v32 = vpop.xlane.xlu0 %3063  ;;  %v3076_v49 = vsub.f32 %v8818_v28, %v3052_v37 }
 0x745   : > { %v3070_v14 = vmul.f32 0.015625, %v3064_v32  ;;  %v3073_v35 = vmul.f32 %v3053_v18, %v3053_v18  ;;  %v3079_v1 = vsub.f32 %v8825_v41, %v3053_v18  ;;  %v3081_v36 = vsub.f32 %v8813_v29, %v3053_v18 }
 0x746   : > { %v3080_v56 = vsub.f32 %v8830_v26, %v3053_v18 }
 0x747   : > { %v3074_v54 = vsub.f32 %v3070_v14, %v3072_v46 }
 0x748   : > { %v3069_v6 = vpop.xlane.xlu0 %3068 }
 0x749   : > { %v3082_v0 = vadd.f32 1e-05, %v3074_v54  ;;  %v3071_v47 = vmul.f32 0.015625, %v3069_v6 }
 0x74b   : > { %7261 = vrsqrt.f32 %v3082_v0  ;;  %v3075_v50 = vsub.f32 %v3071_v47, %v3073_v35 }
 0x74d   : > { %v3083_v20 = vadd.f32 1e-05, %v3075_v50 }
 0x74f   : > { %7263 = vrsqrt.f32 %v3083_v20 }
 0x755   : > { %v7262_v55 = vpop.eup %7261 }
 0x756   : > { %v3087_v4 = vmul.f32 %v7262_v55, %v3077_v34  ;;  %v3088_v10 = vmul.f32 %v7262_v55, %v3078_v21  ;;  %v3086_v57 = vmul.f32 %v7262_v55, %v3076_v49 }
 0x758   : > { %v3093_v59 = vmax.f32 %v3087_v4, 0.0  ;;  %v3094_v62 = vmax.f32 %v3088_v10, 0.0  ;;  %v3092_v27 = vmax.f32 %v3086_v57, 0.0 }
 0x759   : > { %v7264_v53 = vpop.eup %7263 }
 0x75a   : > { %v3090_v11 = vmul.f32 %v7264_v53, %v3080_v56  ;;  %v3091_v16 = vmul.f32 %v7264_v53, %v3081_v36  ;;  %v3089_v48 = vmul.f32 %v7264_v53, %v3079_v1 }
 0x75c   : > { %v3096_v24 = vmax.f32 %v3090_v11, 0.0  ;;  %v3097_v60 = vmax.f32 %v3091_v16, 0.0  ;;  %v3095_v15 = vmax.f32 %v3089_v48, 0.0 }
 0x75e   : > { %v3099_v28 = vpack.c.bf16 %v3096_v24, %v3093_v59  ;;  %v3100_v39 = vpack.c.bf16 %v3097_v60, %v3094_v62  ;;  %v3098_v30 = vpack.c.bf16 %v3095_v15, %v3092_v27 }
 0x760   : > { %3277 = vmatprep.mubr.bf16.mxu1 %v3099_v28  ;;  %5999 = vmatmul.mubr.msk.bf16.vlgmr.msra.gmra.mrb[16].mxu0 %vm3042_vm14, %v3100_v39 }
 0x761   : > { %3278 = vmatmul.mubr.bf16.vlgmr.msra.gmra.mrb[20].mxu1 %v3098_v30 }
 0x762   : > { %3491 = vmatprep.mubr.bf16.mxu1 %v7210_v13  ;;  %v7213_v13 = vld [vmem:[%s9545_s6 + $0x10] ss:$8 sps:$4 sm:$0xff]  }
 0x833   : > { %v3320_v29 = vpop.f32.mrb[16].mxu0 }
 0x834   : > { %v5764_v41 = vpop.f32.mrb[20].mxu1  ;;  %v6000_v26 = vpop.f32.mrb[17].mxu0 }
 0x835   : > { %v5765_v52 = vpop.f32.mrb[21].mxu1  ;;  %v3323_v63 = vpop.f32.mrb[18].mxu0 }
 0x836   : > { %v5766_v5 = vadd.f32 %v5765_v52, %v5764_v41  ;;  %v5767_v3 = vpop.f32.mrb[22].mxu1  ;;  %v6001_v8 = vpop.f32.mrb[19].mxu0 }
 0x837   : > { %v5768_v61 = vpop.f32.mrb[23].mxu1 }
 0x838   : > { %v3321_v22 = vadd.f32 %v5766_v5, %v3320_v29  ;;  %v5769_v40 = vadd.f32 %v5768_v61, %v5767_v3 }
 0x83a   : > { %v3324_v23 = vadd.f32 %v5769_v40, %v3323_v63 }
 0x83c   : > { %v6613_v31 = vpack.i.bf16 %v3324_v23, %v3321_v22  ;;  %v3419_v9 = vpack.c.bf16 %v3324_v23, %v3321_v22 }
 0x83e   : > { %6614 = vrot.lane.b32.xlu0 %v6613_v31, %s9536_s30  ;;  %6609 = vrot.lane.b32.xlu1 %v6613_v31, %s9534_s5  ;;  %s9432_s30 = smov 116   ;;  %s7354_s5 = smov 97  }
 0x842   : > { %6629 = vrot.lane.b32.xlu0 %v6613_v31, %s9537_s1  ;;  %6619 = vrot.lane.b32.xlu1 %v6613_v31, %s9541_s24 }
 0x846   : > { %6639 = vrot.lane.b32.xlu0 %v6613_v31, %s9533_s4  ;;  %6624 = vrot.lane.b32.xlu1 %v6613_v31, %s9542_s0  ;;  %s9430_s4 = smov 115   ;;  %s7357_s0 = smov 95  }
 0x84a   : > { %6649 = vrot.lane.b32.xlu0 %v6613_v31, %s9543_s3  ;;  %6634 = vrot.lane.b32.xlu1 %v6613_v31, %s9544_s25  ;;  %s9436_s3 = smov 121   ;;  %s9434_s25 = smov 120  }
 0x84e   : > { %6659 = vrot.lane.b32.xlu0 %v6613_v31, %s7351_s8  ;;  %6644 = vrot.lane.b32.xlu1 %v6613_v31, %s7352_s29  ;;  %s9547_s8 = smov 122   ;;  %s9550_s29 = smov 114  }
 0x852   : > { %6669 = vrot.lane.b32.xlu0 %v6613_v31, %s9432_s30  ;;  %6654 = vrot.lane.b32.xlu1 %v6613_v31, %s7354_s5  ;;  %s9553_s5 = sld [smem:[#allocation35_spill]] }
 0x856   : > { %6679 = vrot.lane.b32.xlu0 %v6613_v31, %s9430_s4  ;;  %6664 = vrot.lane.b32.xlu1 %v6613_v31, %s7356_s28  ;;  %s9428_s28 = smov 114  }
 0x85a   : > { %6674 = vrot.lane.b32.xlu1 %v6613_v31, %s7357_s0  ;;  %v7208_v31 = vld [vmem:[%s9545_s6] ss:$8 sps:$4 sm:$0xff]  }
 0x8b0   : > { %v6615_v44 = vpop.permute.xlu0 %6614  ;;  %v6610_v43 = vpop.permute.xlu1 %6609 }
 0x8b1   : > { %v6617_v2 = vunpack.i.h.bf16 %v6615_v44  ;;  %v6616_v7 = vunpack.i.l.bf16 %v6615_v44  ;;  %v6612_v38 = vunpack.i.h.bf16 %v6610_v43  ;;  %v6611_v58 = vunpack.i.l.bf16 %v6610_v43 }
 0x8b3   : > { %v3427_v19 = vpack.c.bf16 %v6612_v38, %v6611_v58  ;;  %v3428_v17 = vpack.c.bf16 %v6617_v2, %v6616_v7  ;;  %v5641_v2 = vld [vmem:[%s9546_s9] ss:$0 sm:$0xff]  ;;  %s5709_s9 = sshll.u32 %s9556_s26, 5 }
 0x8b4   : > { %v6630_v25 = vpop.permute.xlu0 %6629  ;;  %v6620_v45 = vpop.permute.xlu1 %6619 }
 0x8b5   : > { %v6622_v33 = vunpack.i.h.bf16 %v6620_v45  ;;  %v6621_v51 = vunpack.i.l.bf16 %v6620_v45  ;;  %5772 = vmatprep.subr.bf16.mxu1 %v3427_v19  ;;  %v6632_v12 = vunpack.i.h.bf16 %v6630_v25  ;;  %v6631_v32 = vunpack.i.l.bf16 %v6630_v25 }
 0x8b6   : > { %5773 = vmatpush3.bf16.msra.mxu1 %v3419_v9  ;;  %v7211_v9 = vld [vmem:[%s9545_s6 + $0x14] ss:$8 sps:$4 sm:$0xff]  }
 0x8b7   : > { %v3420_v37 = vpack.c.bf16 %v6622_v33, %v6621_v51  ;;  %5774 = vmatprep.subr.bf16.mxu1 %v3428_v17  ;;  %v3421_v0 = vpack.c.bf16 %v6632_v12, %v6631_v32 }
 0x8b8   : > { %v6640_v18 = vpop.permute.xlu0 %6639  ;;  %v6625_v46 = vpop.permute.xlu1 %6624 }
 0x8b9   : > { %v6627_v14 = vunpack.i.h.bf16 %v6625_v46  ;;  %v6626_v54 = vunpack.i.l.bf16 %v6625_v46  ;;  %v6642_v47 = vunpack.i.h.bf16 %v6640_v18  ;;  %v6641_v35 = vunpack.i.l.bf16 %v6640_v18 }
 0x8ba   : > { %5775 = vmatpush3.bf16.msra.mxu1 %v3420_v37 }
 0x8bb   : > { %v3429_v6 = vpack.c.bf16 %v6627_v14, %v6626_v54  ;;  %v3422_v49 = vpack.c.bf16 %v6642_v47, %v6641_v35 }
 0x8bc   : > { %v6650_v50 = vpop.permute.xlu0 %6649  ;;  %v6635_v20 = vpop.permute.xlu1 %6634 }
 0x8bd   : > { %v6637_v55 = vunpack.i.h.bf16 %v6635_v20  ;;  %v6636_v21 = vunpack.i.l.bf16 %v6635_v20  ;;  %5776 = vmatprep.subr.bf16.mxu1 %v3429_v6  ;;  %v6652_v4 = vunpack.i.h.bf16 %v6650_v50  ;;  %v6651_v10 = vunpack.i.l.bf16 %v6650_v50 }
 0x8be   : > { %5777 = vmatpush3.bf16.msra.mxu1 %v3421_v0 }
 0x8bf   : > { %v3430_v34 = vpack.c.bf16 %v6637_v55, %v6636_v21  ;;  %v3423_v11 = vpack.c.bf16 %v6652_v4, %v6651_v10  ;;  %v7214_v4 = vld [vmem:[%s9359_s10] sm:$0xff]   ;;  %v7215_v10 = vld [vmem:[%s9359_s10 + $0x8] sm:$0xff]  }
 0x8c0   : > { %v6660_v1 = vpop.permute.xlu0 %6659  ;;  %v6645_v36 = vpop.permute.xlu1 %6644  ;;  %6002 = vmatprep.subr.bf16.mxu0 %v7214_v4 }
 0x8c1   : > { %v6647_v56 = vunpack.i.h.bf16 %v6645_v36  ;;  %v6646_v57 = vunpack.i.l.bf16 %v6645_v36  ;;  %5778 = vmatprep.subr.bf16.mxu1 %v3430_v34  ;;  %v6662_v16 = vunpack.i.h.bf16 %v6660_v1  ;;  %v6661_v48 = vunpack.i.l.bf16 %v6660_v1  ;;  %6003 = vmatpush3.bf16.msra.mxu0 %v7214_v4  ;;  %v7216_v1 = vld [vmem:[%s9359_s10 + $0x10] sm:$0xff]   ;;  %v7217_v36 = vld [vmem:[%s9359_s10 + $0x18] sm:$0xff]  }
 0x8c2   : > { %5779 = vmatpush3.bf16.msra.mxu1 %v3422_v49  ;;  %6004 = vmatprep.subr.bf16.mxu0 %v7215_v10 }
 0x8c3   : > { %v3431_v53 = vpack.c.bf16 %v6647_v56, %v6646_v57  ;;  %v3424_v15 = vpack.c.bf16 %v6662_v16, %v6661_v48  ;;  %v7218_v56 = vld [vmem:[%s9359_s10 + $0x20] ss:$0 sps:$4 sm:$0x33]   ;;  %v3629_v57 = vsel %vm3628_vm9, 4294967295, %v7350_v42 }
 0x8c4   : > { %v6670_v59 = vpop.permute.xlu0 %6669  ;;  %v6655_v62 = vpop.permute.xlu1 %6654 }
 0x8c5   : > { %v6657_v24 = vunpack.i.h.bf16 %v6655_v62  ;;  %v6656_v60 = vunpack.i.l.bf16 %v6655_v62  ;;  %5780 = vmatprep.subr.bf16.mxu1 %v3431_v53  ;;  %v6672_v28 = vunpack.i.h.bf16 %v6670_v59  ;;  %v6671_v39 = vunpack.i.l.bf16 %v6670_v59  ;;  %6005 = vmatpush3.bf16.msra.mxu0 %v7215_v10 }
 0x8c6   : > { %5781 = vmatpush3.bf16.msra.mxu1 %v3423_v11  ;;  %6006 = vmatprep.subr.bf16.mxu0 %v7216_v1  ;;  %v3630_v53 = vsel %vm1972_vm7, %v3629_v57, 0  ;;  %vm3839_vm7 = vcmask 261120  }
 0x8c7   : > { %v3432_v27 = vpack.c.bf16 %v6657_v24, %v6656_v60  ;;  %v3425_v63 = vpack.c.bf16 %v6672_v28, %v6671_v39  ;;  %v3632_v11 = vand.u32 %v7218_v56, %v3630_v53 }
 0x8c8   : > { %v6665_v30 = vpop.permute.xlu1 %6664  ;;  %v6680_v29 = vpop.permute.xlu0 %6679 }
 0x8c9   : > { %v6667_v41 = vunpack.i.h.bf16 %v6665_v30  ;;  %v6666_v26 = vunpack.i.l.bf16 %v6665_v30  ;;  %5782 = vmatprep.subr.bf16.mxu1 %v3432_v27  ;;  %v6682_v5 = vunpack.i.h.bf16 %v6680_v29  ;;  %v6681_v3 = vunpack.i.l.bf16 %v6680_v29  ;;  %6007 = vmatpush3.bf16.msra.mxu0 %v7216_v1 }
 0x8ca   : > { %5783 = vmatpush3.bf16.msra.mxu1 %v3424_v15  ;;  %6008 = vmatprep.subr.bf16.mxu0 %v7217_v36 }
 0x8cb   : > { %v3433_v52 = vpack.c.bf16 %v6667_v41, %v6666_v26  ;;  %v3426_v23 = vpack.c.bf16 %v6682_v5, %v6681_v3 }
 0x8cc   : > { %v6675_v8 = vpop.permute.xlu1 %6674 }
 0x8cd   : > { %v6677_v61 = vunpack.i.h.bf16 %v6675_v8  ;;  %v6676_v22 = vunpack.i.l.bf16 %v6675_v8  ;;  %5784 = vmatprep.subr.bf16.mxu1 %v3433_v52  ;;  %6009 = vmatpush3.bf16.msra.mxu0 %v7217_v36 }
 0x8ce   : > { %5785 = vmatpush3.bf16.msra.mxu1 %v3425_v63  ;;  %6010 = vmatprep.subr.bf16.mxu0 %v3632_v11 }
 0x8cf   : > { %v3434_v40 = vpack.c.bf16 %v6677_v61, %v6676_v22 }
 0x8d1   : > { %5786 = vmatprep.subr.bf16.mxu1 %v3434_v40  ;;  %6011 = vmatpush3.bf16.msra.mxu0 %v3632_v11 }
 0x8d2   : > { %5787 = vmatpush3.bf16.msra.mxu1 %v3426_v23 }
 0x8d5   : > { %3492 = vmatmul.mubr.bf16.vlgmr.msra.gmra.mrb[24].mxu1 %v7208_v31 }
 0x8d6   : > { %3499 = vmatprep.mubr.bf16.mxu1 %v7211_v9 }
 0x8dd   : > { %3500 = vmatmul.mubr.bf16.gmra.mrb[28].mxu1 %v7213_v13 }
 0x9a8   : > { %v5788_v44 = vpop.f32.mrb[24].mxu1 }
 0x9a9   : > { %v5789_v43 = vpop.f32.mrb[25].mxu1 }
 0x9aa   : > { %v8926_v7 = vadd.f32 %v5789_v43, %v5788_v44  ;;  %v5791_v38 = vpop.f32.mrb[26].mxu1 }
 0x9ab   : > { %v5792_v58 = vpop.f32.mrb[27].mxu1 }
 0x9ac   : > { %v8928_v19 = vadd.f32 %v5792_v58, %v5791_v38  ;;  %v3515_v25 = vmul.f32 %v8926_v7, %v5641_v2 }
 0x9ae   : > { %v3520_v45 = vsel %vm3519_vm4, %v3515_v25, 0.0  ;;  %v3516_v33 = vmul.f32 %v8928_v19, %v5641_v2  ;;  %v3536_v12 = vmul.f32 %v8926_v7, %v3515_v25 }
 0x9af   : > { %3521 = vadd.xlane.f32.xlu1 %v3520_v45 }
 0x9b0   : > { %v5794_v51 = vpop.f32.mrb[28].mxu1  ;;  %v3523_v17 = vsel %vm3519_vm4, %v3516_v33, 0.0  ;;  %v3537_v37 = vmul.f32 %v8928_v19, %v3516_v33  ;;  %v3540_v0 = vsel %vm3519_vm4, %v3536_v12, 0.0 }
 0x9b1   : > { %v5795_v32 = vpop.f32.mrb[29].mxu1  ;;  %3524 = vadd.xlane.f32.xlu0 %v3523_v17 }
 0x9b2   : > { %v8936_v18 = vadd.f32 %v5795_v32, %v5794_v51  ;;  %v5797_v46 = vpop.f32.mrb[30].mxu1  ;;  %v3543_v14 = vsel %vm3519_vm4, %v3537_v37, 0.0 }
 0x9b3   : > { %v5798_v54 = vpop.f32.mrb[31].mxu1  ;;  %3544 = vadd.xlane.f32.xlu1 %v3543_v14 }
 0x9b4   : > { %v8939_v6 = vadd.f32 %v5798_v54, %v5797_v46  ;;  %v3517_v47 = vmul.f32 %v8936_v18, %v5641_v2 }
 0x9b5   : > { %3541 = vadd.xlane.f32.xlu0 %v3540_v0 }
 0x9b6   : > { %v3518_v35 = vmul.f32 %v8939_v6, %v5641_v2  ;;  %v3526_v50 = vsel %vm3519_vm4, %v3517_v47, 0.0  ;;  %v3538_v55 = vmul.f32 %v8936_v18, %v3517_v47 }
 0x9b8   : > { %v3529_v20 = vsel %vm3519_vm4, %v3518_v35, 0.0  ;;  %v3539_v21 = vmul.f32 %v8939_v6, %v3518_v35  ;;  %v3546_v34 = vsel %vm3519_vm4, %v3538_v55, 0.0 }
 0x9b9   : > { %3527 = vadd.xlane.f32.xlu0 %v3526_v50  ;;  %3530 = vadd.xlane.f32.xlu1 %v3529_v20 }
 0x9ba   : > { %v3549_v49 = vsel %vm3519_vm4, %v3539_v21, 0.0 }
 0x9bd   : > { %3547 = vadd.xlane.f32.xlu0 %v3546_v34  ;;  %3550 = vadd.xlane.f32.xlu1 %v3549_v49  ;;  %v7221_v34 = vld [vmem:[%s9360_s11 + $0x4] ss:$12 sps:$4 sm:$0xff]   ;;  %v7222_v49 = vld [vmem:[%s9360_s11 + $0x8] ss:$12 sps:$4 sm:$0xff]  }
 0x9be   : > { %6020 = vmatprep.mubr.msk.bf16.mxu1 %vm3839_vm7, %v7222_v49 }
 0xa3c   : > { %v3522_v16 = vpop.xlane.xlu1 %3521 }
 0xa3d   : > { %v3532_v59 = vmul.f32 0.0625, %v3522_v16 }
 0xa3e   : > { %v3525_v48 = vpop.xlane.xlu0 %3524 }
 0xa3f   : > { %v3533_v62 = vmul.f32 0.0625, %v3525_v48  ;;  %v3556_v28 = vmul.f32 %v3532_v59, %v3532_v59  ;;  %v3564_v38 = vsub.f32 %v8926_v7, %v3532_v59 }
 0xa40   : > { %v3545_v24 = vpop.xlane.xlu1 %3544 }
 0xa41   : > { %v3557_v60 = vmul.f32 %v3533_v62, %v3533_v62  ;;  %v3553_v27 = vmul.f32 0.0625, %v3545_v24  ;;  %v3565_v43 = vsub.f32 %v8928_v19, %v3533_v62 }
 0xa42   : > { %v3542_v15 = vpop.xlane.xlu0 %3541 }
 0xa43   : > { %v3561_v39 = vsub.f32 %v3553_v27, %v3557_v60  ;;  %v3552_v30 = vmul.f32 0.0625, %v3542_v15 }
 0xa45   : > { %v3569_v42 = vadd.f32 1e-05, %v3561_v39  ;;  %v3560_v29 = vsub.f32 %v3552_v30, %v3556_v28 }
 0xa46   : > { %v3528_v41 = vpop.xlane.xlu0 %3527  ;;  %v3531_v26 = vpop.xlane.xlu1 %3530 }
 0xa47   : > { %7265 = vrsqrt.f32 %v3569_v42  ;;  %v3568_v52 = vadd.f32 1e-05, %v3560_v29  ;;  %v3534_v63 = vmul.f32 0.0625, %v3528_v41  ;;  %v3535_v5 = vmul.f32 0.0625, %v3531_v26 }
 0xa49   : > { %7267 = vrsqrt.f32 %v3568_v52  ;;  %v3558_v61 = vmul.f32 %v3534_v63, %v3534_v63  ;;  %v3559_v22 = vmul.f32 %v3535_v5, %v3535_v5  ;;  %v3566_v37 = vsub.f32 %v8936_v18, %v3534_v63 }
 0xa4a   : > { %v3548_v3 = vpop.xlane.xlu0 %3547  ;;  %v3551_v8 = vpop.xlane.xlu1 %3550  ;;  %v3567_v32 = vsub.f32 %v8939_v6, %v3535_v5 }
 0xa4b   : > { %v3554_v40 = vmul.f32 0.0625, %v3548_v3  ;;  %v3555_v23 = vmul.f32 0.0625, %v3551_v8 }
 0xa4d   : > { %v3562_v31 = vsub.f32 %v3554_v40, %v3558_v61  ;;  %v3563_v9 = vsub.f32 %v3555_v23, %v3559_v22 }
 0xa4f   : > { %v3570_v13 = vadd.f32 1e-05, %v3562_v31  ;;  %v3571_v44 = vadd.f32 1e-05, %v3563_v9 }
 0xa51   : > { %v7266_v2 = vpop.eup %7265  ;;  %7269 = vrsqrt.f32 %v3570_v13 }
 0xa52   : > { %7271 = vrsqrt.f32 %v3571_v44  ;;  %v3577_v58 = vmul.f32 %v7266_v2, %v3565_v43 }
 0xa53   : > { %v7268_v25 = vpop.eup %7267 }
 0xa54   : > { %v3576_v45 = vmul.f32 %v7268_v25, %v3564_v38  ;;  %v3581_v51 = vmax.f32 %v3577_v58, 0.0 }
 0xa56   : > { %v3580_v33 = vmax.f32 %v3576_v45, 0.0 }
 0xa58   : > { %v3584_v17 = vpack.c.bf16 %v3581_v51, %v3580_v33 }
 0xa5a   : > { %6012 = vmatprep.mubr.msk.bf16.mxu0 %vm3519_vm4, %v3584_v17 }
 0xa5b   : > { %v7270_v12 = vpop.eup %7269 }
 0xa5c   : > { %v7272_v46 = vpop.eup %7271  ;;  %v3578_v19 = vmul.f32 %v7270_v12, %v3566_v37 }
 0xa5d   : > { %v3579_v14 = vmul.f32 %v7272_v46, %v3567_v32 }
 0xa5e   : > { %v3582_v54 = vmax.f32 %v3578_v19, 0.0 }
 0xa5f   : > { %v3583_v0 = vmax.f32 %v3579_v14, 0.0 }
 0xa61   : > { %v3585_v7 = vpack.c.bf16 %v3583_v0, %v3582_v54 }
 0xa63   : > { %6013 = vmatmul.mubr.msk.bf16.vlgmr.msra.gmra.mrb[20].mxu0 %vm3519_vm4, %v3585_v7 }
 0xa64   : > { %3878 = vmatprep.mubr.bf16.mxu0 %v7221_v34 }
 0xb36   : > { %v8973_v47 = vpop.f32.mrb[20].mxu0 }
 0xb37   : > { %v8975_v35 = vpop.f32.mrb[21].mxu0 }
 0xb38   : > { %v8977_v50 = vpop.f32.mrb[22].mxu0 }
 0xb39   : > { %v8979_v18 = vpop.f32.mrb[23].mxu0  ;;  %v6688_v20 = vpack.i.bf16 %v8977_v50, %v8973_v47  ;;  %v3784_v21 = vpack.c.bf16 %v8977_v50, %v8973_v47 }
 0xb3a   : > { %v6683_v6 = vpack.i.bf16 %v8979_v18, %v8975_v35  ;;  %v3783_v55 = vpack.c.bf16 %v8979_v18, %v8975_v35 }
 0xb3b   : > { %6689 = vrot.lane.b32.xlu1 %v6688_v20, %s9436_s3 }
 0xb3c   : > { %6684 = vrot.lane.b32.xlu0 %v6683_v6, %s9436_s3 }
 0xb3f   : > { %6694 = vrot.lane.b32.xlu1 %v6683_v6, %s9434_s25 }
 0xb40   : > { %6704 = vrot.lane.b32.xlu0 %v6683_v6, %s9541_s24 }
 0xb43   : > { %6699 = vrot.lane.b32.xlu1 %v6688_v20, %s9434_s25 }
 0xb44   : > { %6709 = vrot.lane.b32.xlu0 %v6688_v20, %s9541_s24 }
 0xb47   : > { %6714 = vrot.lane.b32.xlu1 %v6683_v6, %s9432_s30 }
 0xb48   : > { %6724 = vrot.lane.b32.xlu0 %v6683_v6, %s9537_s1 }
 0xb4b   : > { %6719 = vrot.lane.b32.xlu1 %v6688_v20, %s9432_s30  ;;  %s9551_s30 = smov 121  }
 0xb4c   : > { %6729 = vrot.lane.b32.xlu0 %v6688_v20, %s9537_s1 }
 0xb4f   : > { %6734 = vrot.lane.b32.xlu1 %v6683_v6, %s9430_s4 }
 0xb50   : > { %6744 = vrot.lane.b32.xlu0 %v6683_v6, %s9547_s8 }
 0xb53   : > { %6739 = vrot.lane.b32.xlu1 %v6688_v20, %s9430_s4  ;;  %s9552_s4 = smov 120  }
 0xb54   : > { %6749 = vrot.lane.b32.xlu0 %v6688_v20, %s9547_s8 }
 0xb57   : > { %6754 = vrot.lane.b32.xlu1 %v6683_v6, %s9428_s28 }
 0xb58   : > { %6759 = vrot.lane.b32.xlu0 %v6688_v20, %s9428_s28 }
 0xbad   : > { %v6690_v4 = vpop.permute.xlu1 %6689 }
 0xbae   : > { %v6685_v10 = vpop.permute.xlu0 %6684  ;;  %v6692_v1 = vunpack.i.h.bf16 %v6690_v4  ;;  %v6691_v36 = vunpack.i.l.bf16 %v6690_v4 }
 0xbaf   : > { %v6687_v56 = vunpack.i.h.bf16 %v6685_v10  ;;  %v6686_v57 = vunpack.i.l.bf16 %v6685_v10 }
 0xbb0   : > { %v3792_v48 = vpack.c.bf16 %v6692_v1, %v6691_v36 }
 0xbb1   : > { %v3791_v53 = vpack.c.bf16 %v6687_v56, %v6686_v57  ;;  %v6695_v11 = vpop.permute.xlu1 %6694  ;;  %v7219_v56 = vld [vmem:[%s9360_s11] ss:$12 sps:$4 sm:$0xff]   ;;  %v7224_v57 = vld [vmem:[%s9360_s11 + $0x1c] ss:$12 sps:$4 sm:$0xff]  }
 0xbb2   : > { %v6705_v16 = vpop.permute.xlu0 %6704  ;;  %v6697_v59 = vunpack.i.h.bf16 %v6695_v11  ;;  %v6696_v62 = vunpack.i.l.bf16 %v6695_v11  ;;  %v7226_v11 = vld [vmem:[%s9360_s11 + $0x18] ss:$12 sps:$4 sm:$0xff]  }
 0xbb3   : > { %5807 = vmatprep.subr.bf16.mxu0 %v3791_v53  ;;  %v6707_v60 = vunpack.i.h.bf16 %v6705_v16  ;;  %v6706_v27 = vunpack.i.l.bf16 %v6705_v16  ;;  %v7223_v53 = vld [vmem:[%s9360_s11 + $0x20] ss:$12 sps:$4 sm:$0xff]  }
 0xbb4   : > { %5808 = vmatpush3.bf16.msra.mxu0 %v3783_v55  ;;  %v3793_v28 = vpack.c.bf16 %v6697_v59, %v6696_v62 }
 0xbb5   : > { %v6700_v24 = vpop.permute.xlu1 %6699  ;;  %5809 = vmatprep.subr.bf16.mxu0 %v3792_v48  ;;  %v3785_v29 = vpack.c.bf16 %v6707_v60, %v6706_v27 }
 0xbb6   : > { %v6710_v15 = vpop.permute.xlu0 %6709  ;;  %v6702_v39 = vunpack.i.h.bf16 %v6700_v24  ;;  %v6701_v30 = vunpack.i.l.bf16 %v6700_v24 }
 0xbb7   : > { %v6712_v41 = vunpack.i.h.bf16 %v6710_v15  ;;  %v6711_v26 = vunpack.i.l.bf16 %v6710_v15 }
 0xbb8   : > { %5810 = vmatpush3.bf16.msra.mxu0 %v3784_v21  ;;  %v3794_v63 = vpack.c.bf16 %v6702_v39, %v6701_v30 }
 0xbb9   : > { %v6715_v42 = vpop.permute.xlu1 %6714  ;;  %5811 = vmatprep.subr.bf16.mxu0 %v3793_v28  ;;  %v3786_v61 = vpack.c.bf16 %v6712_v41, %v6711_v26  ;;  %v5657_v28 = vld [vmem:[%s9361_s12] ss:$0 sm:$0xff] }
 0xbba   : > { %v6725_v52 = vpop.permute.xlu0 %6724  ;;  %v6717_v5 = vunpack.i.h.bf16 %v6715_v42  ;;  %v6716_v3 = vunpack.i.l.bf16 %v6715_v42 }
 0xbbb   : > { %v6727_v22 = vunpack.i.h.bf16 %v6725_v52  ;;  %v6726_v40 = vunpack.i.l.bf16 %v6725_v52 }
 0xbbc   : > { %5812 = vmatpush3.bf16.msra.mxu0 %v3785_v29  ;;  %v3795_v31 = vpack.c.bf16 %v6717_v5, %v6716_v3 }
 0xbbd   : > { %v6720_v8 = vpop.permute.xlu1 %6719  ;;  %5813 = vmatprep.subr.bf16.mxu0 %v3794_v63  ;;  %v3787_v43 = vpack.c.bf16 %v6727_v22, %v6726_v40 }
 0xbbe   : > { %v6730_v23 = vpop.permute.xlu0 %6729  ;;  %v6722_v9 = vunpack.i.h.bf16 %v6720_v8  ;;  %v6721_v13 = vunpack.i.l.bf16 %v6720_v8 }
 0xbbf   : > { %v6732_v2 = vunpack.i.h.bf16 %v6730_v23  ;;  %v6731_v38 = vunpack.i.l.bf16 %v6730_v23 }
 0xbc0   : > { %5814 = vmatpush3.bf16.msra.mxu0 %v3786_v61  ;;  %v3796_v25 = vpack.c.bf16 %v6722_v9, %v6721_v13 }
 0xbc1   : > { %v6735_v44 = vpop.permute.xlu1 %6734  ;;  %5815 = vmatprep.subr.bf16.mxu0 %v3795_v31  ;;  %v3788_v12 = vpack.c.bf16 %v6732_v2, %v6731_v38 }
 0xbc2   : > { %v6745_v58 = vpop.permute.xlu0 %6744  ;;  %v6737_v45 = vunpack.i.h.bf16 %v6735_v44  ;;  %v6736_v33 = vunpack.i.l.bf16 %v6735_v44 }
 0xbc3   : > { %v6747_v51 = vunpack.i.h.bf16 %v6745_v58  ;;  %v6746_v17 = vunpack.i.l.bf16 %v6745_v58 }
 0xbc4   : > { %5816 = vmatpush3.bf16.msra.mxu0 %v3787_v43  ;;  %v3797_v46 = vpack.c.bf16 %v6737_v45, %v6736_v33 }
 0xbc5   : > { %v6740_v37 = vpop.permute.xlu1 %6739  ;;  %5817 = vmatprep.subr.bf16.mxu0 %v3796_v25  ;;  %v3789_v54 = vpack.c.bf16 %v6747_v51, %v6746_v17 }
 0xbc6   : > { %v6750_v32 = vpop.permute.xlu0 %6749  ;;  %v6742_v19 = vunpack.i.h.bf16 %v6740_v37  ;;  %v6741_v14 = vunpack.i.l.bf16 %v6740_v37  ;;  %v7227_v37 = vld [vmem:[%s9362_s13] sm:$0xff]  }
 0xbc7   : > { %v6752_v7 = vunpack.i.h.bf16 %v6750_v32  ;;  %v6751_v20 = vunpack.i.l.bf16 %v6750_v32 }
 0xbc8   : > { %5818 = vmatpush3.bf16.msra.mxu0 %v3788_v12  ;;  %v3798_v34 = vpack.c.bf16 %v6742_v19, %v6741_v14  ;;  %v7228_v12 = vld [vmem:[%s9362_s13 + $0x8] ss:$0 sps:$4 sm:$0x77]  }
 0xbc9   : > { %v6755_v0 = vpop.permute.xlu1 %6754  ;;  %5819 = vmatprep.subr.bf16.mxu0 %v3797_v46  ;;  %v3790_v36 = vpack.c.bf16 %v6752_v7, %v6751_v20  ;;  %v4042_v32 = vsel %vm4040_vm12, %v7228_v12, 0 }
 0xbca   : > { %v6757_v6 = vunpack.i.h.bf16 %v6755_v0  ;;  %v6756_v55 = vunpack.i.l.bf16 %v6755_v0  ;;  %v6760_v21 = vpop.permute.xlu0 %6759 }
 0xbcb   : > { %v6762_v49 = vunpack.i.h.bf16 %v6760_v21  ;;  %v6761_v4 = vunpack.i.l.bf16 %v6760_v21 }
 0xbcc   : > { %v3799_v10 = vpack.c.bf16 %v6757_v6, %v6756_v55  ;;  %5820 = vmatpush3.bf16.msra.mxu0 %v3789_v54 }
 0xbcd   : > { %v3800_v1 = vpack.c.bf16 %v6762_v49, %v6761_v4  ;;  %5821 = vmatprep.subr.bf16.mxu0 %v3798_v34 }
 0xbce   : > { %6016 = vmatprep.subr.bf16.mxu1 %v3799_v10 }
 0xbcf   : > { %6017 = vmatpush3.bf16.msra.mxu1 %v3799_v10 }
 0xbd0   : > { %5822 = vmatpush3.bf16.msra.mxu0 %v3790_v36  ;;  %6018 = vmatprep.subr.bf16.mxu1 %v3800_v1 }
 0xbd3   : > { %3879 = vmatmul.mubr.bf16.vlgmr.msra.gmra.mrb[24].mxu0 %v7219_v56  ;;  %6019 = vmatpush3.bf16.msra.mxu1 %v3800_v1 }
 0xbd4   : > { %3886 = vmatprep.mubr.bf16.mxu0 %v7224_v57  ;;  %6024 = vmatprep.subr.bf16.mxu1 %v7227_v37 }
 0xbd6   : > { %6021 = vmatmul.mubr.msk.bf16.vlgmr.msra.gmra.mrb[32].mxu1 %vm3839_vm7, %v7223_v53 }
 0xbd7   : > { %6025 = vmatpush3.bf16.msra.mxu1 %v7227_v37 }
 0xbd8   : > { %6108 = vmatprep.subr.msk.bf16.mxu1 %vm4040_vm12, %v7228_v12 }
 0xbdb   : > { %3887 = vmatmul.mubr.bf16.gmra.mrb[28].mxu0 %v7226_v11  ;;  %6027 = vmatpush3.bf16.msra.mxu1 %v4042_v32 }
 0xca6   : > { %v5823_v16 = vpop.f32.mrb[24].mxu0 }
 0xca7   : > { %v5824_v48 = vpop.f32.mrb[25].mxu0 }
 0xca8   : > { %v5825_v59 = vadd.f32 %v5824_v48, %v5823_v16  ;;  %v5826_v62 = vpop.f32.mrb[26].mxu0 }
 0xca9   : > { %v5827_v24 = vpop.f32.mrb[27].mxu0  ;;  %v6022_v60 = vpop.f32.mrb[32].mxu1 }
 0xcaa   : > { %v5828_v27 = vadd.f32 %v5827_v24, %v5826_v62  ;;  %v3929_v15 = vpop.f32.mrb[33].mxu1 }
 0xcab   : > { %v9028_v39 = vadd.f32 %v5825_v59, %v3929_v15  ;;  %v6023_v30 = vpop.f32.mrb[34].mxu1 }
 0xcac   : > { %v3932_v42 = vpop.f32.mrb[35].mxu1 }
 0xcad   : > { %v9030_v29 = vadd.f32 %v5828_v27, %v3932_v42  ;;  %v3951_v41 = vmul.f32 %v5657_v28, %v9028_v39 }
 0xcae   : > { %v5829_v26 = vpop.f32.mrb[28].mxu0 }
 0xcaf   : > { %v5830_v52 = vpop.f32.mrb[29].mxu0  ;;  %v3956_v63 = vsel %vm3955_vm10, %v3951_v41, 0.0  ;;  %v3952_v5 = vmul.f32 %v5657_v28, %v9030_v29  ;;  %v3972_v23 = vmul.f32 %v3951_v41, %v9028_v39 }
 0xcb0   : > { %v5831_v3 = vadd.f32 %v5830_v52, %v5829_v26  ;;  %v5832_v8 = vpop.f32.mrb[30].mxu0  ;;  %3957 = vadd.xlane.f32.xlu1 %v3956_v63 }
 0xcb1   : > { %v5833_v61 = vpop.f32.mrb[31].mxu0  ;;  %v3959_v22 = vsel %vm3955_vm10, %v3952_v5, 0.0  ;;  %v3973_v40 = vmul.f32 %v3952_v5, %v9030_v29  ;;  %v3976_v43 = vsel %vm3955_vm10, %v3972_v23, 0.0 }
 0xcb2   : > { %v9038_v31 = vadd.f32 %v6022_v60, %v5831_v3  ;;  %v5834_v9 = vadd.f32 %v5833_v61, %v5832_v8  ;;  %3960 = vadd.xlane.f32.xlu0 %v3959_v22 }
 0xcb3   : > { %v3979_v13 = vsel %vm3955_vm10, %v3973_v40, 0.0 }
 0xcb4   : > { %v9041_v44 = vadd.f32 %v6023_v30, %v5834_v9  ;;  %3980 = vadd.xlane.f32.xlu1 %v3979_v13  ;;  %v3953_v2 = vmul.f32 %v5657_v28, %v9038_v31 }
 0xcb6   : > { %3977 = vadd.xlane.f32.xlu0 %v3976_v43  ;;  %v3954_v38 = vmul.f32 %v5657_v28, %v9041_v44  ;;  %v3962_v45 = vsel %vm3955_vm10, %v3953_v2, 0.0  ;;  %v3974_v33 = vmul.f32 %v3953_v2, %v9038_v31 }
 0xcb8   : > { %v3965_v58 = vsel %vm3955_vm10, %v3954_v38, 0.0  ;;  %v3975_v25 = vmul.f32 %v3954_v38, %v9041_v44  ;;  %v3982_v17 = vsel %vm3955_vm10, %v3974_v33, 0.0  ;;  %v7231_v33 = vld [vmem:[%s9363_s14 + $0x4] ss:$12 sps:$4 sm:$0xff]  }
 0xcb9   : > { %3966 = vadd.xlane.f32.xlu1 %v3965_v58 }
 0xcba   : > { %3963 = vadd.xlane.f32.xlu0 %v3962_v45  ;;  %v3985_v51 = vsel %vm3955_vm10, %v3975_v25, 0.0 }
 0xcbd   : > { %3986 = vadd.xlane.f32.xlu1 %v3985_v51  ;;  %v7232_v51 = vld [vmem:[%s9363_s14 + $0x8] ss:$12 sps:$4 sm:$0xff]  }
 0xcbe   : > { %3983 = vadd.xlane.f32.xlu0 %v3982_v17  ;;  %6036 = vmatprep.mubr.msk.bf16.mxu0 %vm3839_vm7, %v7232_v51 }
 0xd3d   : > { %v3958_v46 = vpop.xlane.xlu1 %3957 }
 0xd3e   : > { %v3968_v14 = vmul.f32 0.0625, %v3958_v46 }
 0xd3f   : > { %v3961_v19 = vpop.xlane.xlu0 %3960 }
 0xd40   : > { %v3969_v54 = vmul.f32 0.0625, %v3961_v19  ;;  %v3992_v55 = vmul.f32 %v3968_v14, %v3968_v14  ;;  %v4000_v42 = vsub.f32 %v9028_v39, %v3968_v14 }
 0xd41   : > { %v3981_v0 = vpop.xlane.xlu1 %3980 }
 0xd42   : > { %v3993_v7 = vmul.f32 %v3969_v54, %v3969_v54  ;;  %v3989_v20 = vmul.f32 0.0625, %v3981_v0  ;;  %v4001_v28 = vsub.f32 %v9030_v29, %v3969_v54 }
 0xd43   : > { %v3978_v6 = vpop.xlane.xlu0 %3977 }
 0xd44   : > { %v3997_v21 = vsub.f32 %v3989_v20, %v3993_v7  ;;  %v3988_v34 = vmul.f32 0.0625, %v3978_v6 }
 0xd46   : > { %v4005_v49 = vadd.f32 1e-05, %v3997_v21  ;;  %v3996_v4 = vsub.f32 %v3988_v34, %v3992_v55  ;;  %v3967_v10 = vpop.xlane.xlu1 %3966 }
 0xd47   : > { %v3971_v1 = vmul.f32 0.0625, %v3967_v10  ;;  %v3964_v36 = vpop.xlane.xlu0 %3963 }
 0xd48   : > { %7273 = vrsqrt.f32 %v4005_v49  ;;  %v4004_v56 = vadd.f32 1e-05, %v3996_v4  ;;  %v3970_v57 = vmul.f32 0.0625, %v3964_v36 }
 0xd49   : > { %v3995_v11 = vmul.f32 %v3971_v1, %v3971_v1  ;;  %v4003_v8 = vsub.f32 %v9041_v44, %v3971_v1 }
 0xd4a   : > { %7275 = vrsqrt.f32 %v4004_v56  ;;  %v3987_v53 = vpop.xlane.xlu1 %3986  ;;  %v3994_v59 = vmul.f32 %v3970_v57, %v3970_v57  ;;  %v4002_v22 = vsub.f32 %v9038_v31, %v3970_v57 }
 0xd4b   : > { %v3991_v16 = vmul.f32 0.0625, %v3987_v53  ;;  %v3984_v48 = vpop.xlane.xlu0 %3983 }
 0xd4c   : > { %v3990_v62 = vmul.f32 0.0625, %v3984_v48 }
 0xd4d   : > { %v3999_v24 = vsub.f32 %v3991_v16, %v3995_v11 }
 0xd4e   : > { %v3998_v60 = vsub.f32 %v3990_v62, %v3994_v59 }
 0xd4f   : > { %v4007_v27 = vadd.f32 1e-05, %v3999_v24 }
 0xd50   : > { %v4006_v15 = vadd.f32 1e-05, %v3998_v60 }
 0xd51   : > { %7277 = vrsqrt.f32 %v4007_v27 }
 0xd52   : > { %v7274_v30 = vpop.eup %7273  ;;  %7279 = vrsqrt.f32 %v4006_v15 }
 0xd53   : > { %v4013_v41 = vmul.f32 %v7274_v30, %v4001_v28 }
 0xd54   : > { %v7276_v26 = vpop.eup %7275 }
 0xd55   : > { %v4012_v52 = vmul.f32 %v7276_v26, %v4000_v42  ;;  %v4017_v5 = vmax.f32 %v4013_v41, 0.0 }
 0xd57   : > { %v4016_v63 = vmax.f32 %v4012_v52, 0.0 }
 0xd59   : > { %v4020_v3 = vpack.c.bf16 %v4017_v5, %v4016_v63 }
 0xd5b   : > { %v7278_v61 = vpop.eup %7277  ;;  %6028 = vmatprep.mubr.msk.bf16.mxu1 %vm3955_vm10, %v4020_v3 }
 0xd5c   : > { %v7280_v40 = vpop.eup %7279  ;;  %v4015_v29 = vmul.f32 %v7278_v61, %v4003_v8 }
 0xd5d   : > { %v4014_v23 = vmul.f32 %v7280_v40, %v4002_v22 }
 0xd5e   : > { %v4019_v9 = vmax.f32 %v4015_v29, 0.0 }
 0xd5f   : > { %v4018_v13 = vmax.f32 %v4014_v23, 0.0 }
 0xd61   : > { %v4021_v43 = vpack.c.bf16 %v4019_v9, %v4018_v13 }
 0xd63   : > { %6029 = vmatmul.mubr.msk.bf16.vlgmr.msra.gmra.mrb[36].mxu1 %vm3955_vm10, %v4021_v43 }
 0xd64   : > { %4287 = vmatprep.mubr.bf16.mxu1 %v7231_v33 }
 0xe36   : > { %v6030_v39 = vpop.f32.mrb[36].mxu1 }
 0xe37   : > { %v4078_v2 = vpop.f32.mrb[37].mxu1 }
 0xe38   : > { %v6031_v38 = vpop.f32.mrb[38].mxu1 }
 0xe39   : > { %v4081_v58 = vpop.f32.mrb[39].mxu1  ;;  %v6768_v25 = vpack.i.bf16 %v6031_v38, %v6030_v39  ;;  %v4194_v44 = vpack.c.bf16 %v6031_v38, %v6030_v39 }
 0xe3a   : > { %v6763_v45 = vpack.i.bf16 %v4081_v58, %v4078_v2  ;;  %v4193_v31 = vpack.c.bf16 %v4081_v58, %v4078_v2 }
 0xe3b   : > { %6769 = vrot.lane.b32.xlu1 %v6768_v25, %s9436_s3 }
 0xe3c   : > { %6764 = vrot.lane.b32.xlu0 %v6763_v45, %s9436_s3 }
 0xe3f   : > { %6774 = vrot.lane.b32.xlu1 %v6763_v45, %s9434_s25 }
 0xe40   : > { %6784 = vrot.lane.b32.xlu0 %v6763_v45, %s9541_s24 }
 0xe43   : > { %6779 = vrot.lane.b32.xlu1 %v6768_v25, %s9434_s25 }
 0xe44   : > { %6789 = vrot.lane.b32.xlu0 %v6768_v25, %s9541_s24 }
 0xe47   : > { %6794 = vrot.lane.b32.xlu1 %v6763_v45, %s9548_s7 }
 0xe48   : > { %6804 = vrot.lane.b32.xlu0 %v6763_v45, %s9537_s1 }
 0xe4b   : > { %6799 = vrot.lane.b32.xlu1 %v6768_v25, %s9548_s7 }
 0xe4c   : > { %6809 = vrot.lane.b32.xlu0 %v6768_v25, %s9537_s1 }
 0xe4f   : > { %6814 = vrot.lane.b32.xlu1 %v6763_v45, %s9549_s27 }
 0xe50   : > { %6824 = vrot.lane.b32.xlu0 %v6763_v45, %s9547_s8 }
 0xe53   : > { %6819 = vrot.lane.b32.xlu1 %v6768_v25, %s9549_s27 }
 0xe54   : > { %6829 = vrot.lane.b32.xlu0 %v6768_v25, %s9547_s8 }
 0xe57   : > { %6834 = vrot.lane.b32.xlu1 %v6763_v45, %s9550_s29 }
 0xe58   : > { %6839 = vrot.lane.b32.xlu0 %v6768_v25, %s9550_s29 }
 0xead   : > { %v6770_v17 = vpop.permute.xlu1 %6769 }
 0xeae   : > { %v6765_v37 = vpop.permute.xlu0 %6764  ;;  %v6772_v12 = vunpack.i.h.bf16 %v6770_v17  ;;  %v6771_v32 = vunpack.i.l.bf16 %v6770_v17 }
 0xeaf   : > { %v6767_v46 = vunpack.i.h.bf16 %v6765_v37  ;;  %v6766_v19 = vunpack.i.l.bf16 %v6765_v37 }
 0xeb0   : > { %v4202_v7 = vpack.c.bf16 %v6772_v12, %v6771_v32 }
 0xeb1   : > { %v4201_v14 = vpack.c.bf16 %v6767_v46, %v6766_v19  ;;  %v6775_v54 = vpop.permute.xlu1 %6774  ;;  %v7229_v46 = vld [vmem:[%s9363_s14] ss:$12 sps:$4 sm:$0xff]   ;;  %v7234_v19 = vld [vmem:[%s9363_s14 + $0x1c] ss:$12 sps:$4 sm:$0xff]  }
 0xeb2   : > { %v6785_v0 = vpop.permute.xlu0 %6784  ;;  %v6777_v20 = vunpack.i.h.bf16 %v6775_v54  ;;  %v6776_v6 = vunpack.i.l.bf16 %v6775_v54  ;;  %v7236_v54 = vld [vmem:[%s9363_s14 + $0x18] ss:$12 sps:$4 sm:$0xff]  }
 0xeb3   : > { %5843 = vmatprep.subr.bf16.mxu1 %v4201_v14  ;;  %v6787_v21 = vunpack.i.h.bf16 %v6785_v0  ;;  %v6786_v34 = vunpack.i.l.bf16 %v6785_v0  ;;  %v7233_v14 = vld [vmem:[%s9363_s14 + $0x20] ss:$12 sps:$4 sm:$0xff]  }
 0xeb4   : > { %5844 = vmatpush3.bf16.msra.mxu1 %v4193_v31  ;;  %v4203_v4 = vpack.c.bf16 %v6777_v20, %v6776_v6 }
 0xeb5   : > { %v6780_v55 = vpop.permute.xlu1 %6779  ;;  %5845 = vmatprep.subr.bf16.mxu1 %v4202_v7  ;;  %v4195_v56 = vpack.c.bf16 %v6787_v21, %v6786_v34 }
 0xeb6   : > { %v6790_v49 = vpop.permute.xlu0 %6789  ;;  %v6782_v10 = vunpack.i.h.bf16 %v6780_v55  ;;  %v6781_v1 = vunpack.i.l.bf16 %v6780_v55 }
 0xeb7   : > { %v6792_v57 = vunpack.i.h.bf16 %v6790_v49  ;;  %v6791_v53 = vunpack.i.l.bf16 %v6790_v49 }
 0xeb8   : > { %5846 = vmatpush3.bf16.msra.mxu1 %v4194_v44  ;;  %v4204_v16 = vpack.c.bf16 %v6782_v10, %v6781_v1 }
 0xeb9   : > { %v6795_v36 = vpop.permute.xlu1 %6794  ;;  %5847 = vmatprep.subr.bf16.mxu1 %v4203_v4  ;;  %v4196_v24 = vpack.c.bf16 %v6792_v57, %v6791_v53  ;;  %v5670_v4 = vld [vmem:[%s9364_s15] ss:$0 sm:$0xff] }
 0xeba   : > { %v6805_v11 = vpop.permute.xlu0 %6804  ;;  %v6797_v48 = vunpack.i.h.bf16 %v6795_v36  ;;  %v6796_v59 = vunpack.i.l.bf16 %v6795_v36 }
 0xebb   : > { %v6807_v60 = vunpack.i.h.bf16 %v6805_v11  ;;  %v6806_v27 = vunpack.i.l.bf16 %v6805_v11 }
 0xebc   : > { %5848 = vmatpush3.bf16.msra.mxu1 %v4195_v56  ;;  %v4205_v28 = vpack.c.bf16 %v6797_v48, %v6796_v59 }
 0xebd   : > { %v6800_v62 = vpop.permute.xlu1 %6799  ;;  %5849 = vmatprep.subr.bf16.mxu1 %v4204_v16  ;;  %v4197_v26 = vpack.c.bf16 %v6807_v60, %v6806_v27 }
 0xebe   : > { %v6810_v15 = vpop.permute.xlu0 %6809  ;;  %v6802_v30 = vunpack.i.h.bf16 %v6800_v62  ;;  %v6801_v42 = vunpack.i.l.bf16 %v6800_v62 }
 0xebf   : > { %v6812_v52 = vunpack.i.h.bf16 %v6810_v15  ;;  %v6811_v63 = vunpack.i.l.bf16 %v6810_v15 }
 0xec0   : > { %5850 = vmatpush3.bf16.msra.mxu1 %v4196_v24  ;;  %v4206_v3 = vpack.c.bf16 %v6802_v30, %v6801_v42 }
 0xec1   : > { %v6815_v41 = vpop.permute.xlu1 %6814  ;;  %5851 = vmatprep.subr.bf16.mxu1 %v4205_v28  ;;  %v4198_v23 = vpack.c.bf16 %v6812_v52, %v6811_v63 }
 0xec2   : > { %v6825_v5 = vpop.permute.xlu0 %6824  ;;  %v6817_v8 = vunpack.i.h.bf16 %v6815_v41  ;;  %v6816_v61 = vunpack.i.l.bf16 %v6815_v41 }
 0xec3   : > { %v6827_v22 = vunpack.i.h.bf16 %v6825_v5  ;;  %v6826_v40 = vunpack.i.l.bf16 %v6825_v5 }
 0xec4   : > { %5852 = vmatpush3.bf16.msra.mxu1 %v4197_v26  ;;  %v4207_v13 = vpack.c.bf16 %v6817_v8, %v6816_v61 }
 0xec5   : > { %v6820_v29 = vpop.permute.xlu1 %6819  ;;  %5853 = vmatprep.subr.bf16.mxu1 %v4206_v3  ;;  %v4199_v2 = vpack.c.bf16 %v6827_v22, %v6826_v40 }
 0xec6   : > { %v6830_v9 = vpop.permute.xlu0 %6829  ;;  %v6822_v43 = vunpack.i.h.bf16 %v6820_v29  ;;  %v6821_v39 = vunpack.i.l.bf16 %v6820_v29  ;;  %v7237_v29 = vld [vmem:[%s9365_s16] sm:$0xff]  }
 0xec7   : > { %v6832_v58 = vunpack.i.h.bf16 %v6830_v9  ;;  %v6831_v25 = vunpack.i.l.bf16 %v6830_v9 }
 0xec8   : > { %5854 = vmatpush3.bf16.msra.mxu1 %v4198_v23  ;;  %v4208_v33 = vpack.c.bf16 %v6822_v43, %v6821_v39  ;;  %v7238_v23 = vld [vmem:[%s9365_s16 + $0x8] ss:$0 sps:$4 sm:$0x77]  }
 0xec9   : > { %v6835_v38 = vpop.permute.xlu1 %6834  ;;  %5855 = vmatprep.subr.bf16.mxu1 %v4207_v13  ;;  %v4200_v32 = vpack.c.bf16 %v6832_v58, %v6831_v25  ;;  %v4445_v9 = vsel %vm4040_vm12, %v7238_v23, 0 }
 0xeca   : > { %v6837_v45 = vunpack.i.h.bf16 %v6835_v38  ;;  %v6836_v31 = vunpack.i.l.bf16 %v6835_v38  ;;  %v6840_v44 = vpop.permute.xlu0 %6839 }
 0xecb   : > { %v6842_v51 = vunpack.i.h.bf16 %v6840_v44  ;;  %v6841_v17 = vunpack.i.l.bf16 %v6840_v44 }
 0xecc   : > { %v4209_v37 = vpack.c.bf16 %v6837_v45, %v6836_v31  ;;  %5856 = vmatpush3.bf16.msra.mxu1 %v4199_v2 }
 0xecd   : > { %v4210_v12 = vpack.c.bf16 %v6842_v51, %v6841_v17  ;;  %5857 = vmatprep.subr.bf16.mxu1 %v4208_v33 }
 0xece   : > { %6032 = vmatprep.subr.bf16.mxu0 %v4209_v37 }
 0xecf   : > { %6033 = vmatpush3.bf16.msra.mxu0 %v4209_v37 }
 0xed0   : > { %5858 = vmatpush3.bf16.msra.mxu1 %v4200_v32  ;;  %6034 = vmatprep.subr.bf16.mxu0 %v4210_v12 }
 0xed3   : > { %4288 = vmatmul.mubr.bf16.vlgmr.msra.gmra.mrb[40].mxu1 %v7229_v46  ;;  %6035 = vmatpush3.bf16.msra.mxu0 %v4210_v12 }
 0xed4   : > { %4295 = vmatprep.mubr.bf16.mxu1 %v7234_v19  ;;  %6040 = vmatprep.subr.bf16.mxu0 %v7237_v29 }
 0xed6   : > { %6037 = vmatmul.mubr.msk.bf16.vlgmr.msra.gmra.mrb[32].mxu0 %vm3839_vm7, %v7233_v14 }
 0xed7   : > { %6041 = vmatpush3.bf16.msra.mxu0 %v7237_v29 }
 0xed8   : > { %6109 = vmatprep.subr.msk.bf16.mxu0 %vm4040_vm12, %v7238_v23 }
 0xedb   : > { %4296 = vmatmul.mubr.bf16.gmra.mrb[44].mxu1 %v7236_v54  ;;  %6043 = vmatpush3.bf16.msra.mxu0 %v4445_v9 }
 0xfa6   : > { %v5859_v0 = vpop.f32.mrb[40].mxu1 }
 0xfa7   : > { %v5860_v7 = vpop.f32.mrb[41].mxu1 }
 0xfa8   : > { %v5861_v20 = vadd.f32 %v5860_v7, %v5859_v0  ;;  %v5862_v6 = vpop.f32.mrb[42].mxu1 }
 0xfa9   : > { %v5863_v55 = vpop.f32.mrb[43].mxu1  ;;  %v6038_v21 = vpop.f32.mrb[32].mxu0 }
 0xfaa   : > { %v5864_v34 = vadd.f32 %v5863_v55, %v5862_v6  ;;  %v4338_v49 = vpop.f32.mrb[33].mxu0 }
 0xfab   : > { %v9105_v10 = vadd.f32 %v5861_v20, %v4338_v49  ;;  %v6039_v1 = vpop.f32.mrb[34].mxu0 }
 0xfac   : > { %v4341_v36 = vpop.f32.mrb[35].mxu0 }
 0xfad   : > { %v9107_v56 = vadd.f32 %v5864_v34, %v4341_v36  ;;  %v4360_v57 = vmul.f32 %v5670_v4, %v9105_v10 }
 0xfae   : > { %v5865_v53 = vpop.f32.mrb[44].mxu1 }
 0xfaf   : > { %v5866_v11 = vpop.f32.mrb[45].mxu1  ;;  %v4364_v16 = vsel %vm3955_vm10, %v4360_v57, 0.0  ;;  %v4361_v48 = vmul.f32 %v5670_v4, %v9107_v56  ;;  %v4380_v15 = vmul.f32 %v4360_v57, %v9105_v10 }
 0xfb0   : > { %v5867_v59 = vadd.f32 %v5866_v11, %v5865_v53  ;;  %v5868_v62 = vpop.f32.mrb[46].mxu1  ;;  %4365 = vadd.xlane.f32.xlu1 %v4364_v16 }
 0xfb1   : > { %v5869_v24 = vpop.f32.mrb[47].mxu1  ;;  %v4367_v60 = vsel %vm3955_vm10, %v4361_v48, 0.0  ;;  %v4381_v27 = vmul.f32 %v4361_v48, %v9107_v56  ;;  %v4384_v26 = vsel %vm3955_vm10, %v4380_v15, 0.0 }
 0xfb2   : > { %v9115_v28 = vadd.f32 %v6038_v21, %v5867_v59  ;;  %v5870_v30 = vadd.f32 %v5869_v24, %v5868_v62  ;;  %4368 = vadd.xlane.f32.xlu0 %v4367_v60 }
 0xfb3   : > { %v4387_v42 = vsel %vm3955_vm10, %v4381_v27, 0.0 }
 0xfb4   : > { %v9118_v41 = vadd.f32 %v6039_v1, %v5870_v30  ;;  %4388 = vadd.xlane.f32.xlu1 %v4387_v42  ;;  %v4362_v52 = vmul.f32 %v5670_v4, %v9115_v28 }
 0xfb6   : > { %4385 = vadd.xlane.f32.xlu0 %v4384_v26  ;;  %v4363_v63 = vmul.f32 %v5670_v4, %v9118_v41  ;;  %v4370_v8 = vsel %vm3955_vm10, %v4362_v52, 0.0  ;;  %v4382_v61 = vmul.f32 %v4362_v52, %v9115_v28 }
 0xfb8   : > { %v4373_v5 = vsel %vm3955_vm10, %v4363_v63, 0.0  ;;  %v4383_v3 = vmul.f32 %v4363_v63, %v9118_v41  ;;  %v4390_v40 = vsel %vm3955_vm10, %v4382_v61, 0.0 }
 0xfb9   : > { %4374 = vadd.xlane.f32.xlu1 %v4373_v5 }
 0xfba   : > { %4371 = vadd.xlane.f32.xlu0 %v4370_v8  ;;  %v4393_v22 = vsel %vm3955_vm10, %v4383_v3, 0.0 }
 0xfbd   : > { %4394 = vadd.xlane.f32.xlu1 %v4393_v22 }
 0xfbe   : > { %4391 = vadd.xlane.f32.xlu0 %v4390_v40 }
0x103d   : > { %v4366_v13 = vpop.xlane.xlu1 %4365 }
0x103e   : > { %v4376_v39 = vmul.f32 0.0625, %v4366_v13 }
0x103f   : > { %v4369_v43 = vpop.xlane.xlu0 %4368 }
0x1040   : > { %v4377_v2 = vmul.f32 0.0625, %v4369_v43  ;;  %v4400_v31 = vmul.f32 %v4376_v39, %v4376_v39  ;;  %v4408_v1 = vsub.f32 %v9105_v10, %v4376_v39 }
0x1041   : > { %v4389_v38 = vpop.xlane.xlu1 %4388 }
0x1042   : > { %v4401_v58 = vmul.f32 %v4377_v2, %v4377_v2  ;;  %v4397_v25 = vmul.f32 0.0625, %v4389_v38  ;;  %v4409_v36 = vsub.f32 %v9107_v56, %v4377_v2 }
0x1043   : > { %v4386_v45 = vpop.xlane.xlu0 %4385 }
0x1044   : > { %v4405_v44 = vsub.f32 %v4397_v25, %v4401_v58  ;;  %v4396_v33 = vmul.f32 0.0625, %v4386_v45 }
0x1046   : > { %v4413_v51 = vadd.f32 1e-05, %v4405_v44  ;;  %v4404_v17 = vsub.f32 %v4396_v33, %v4400_v31  ;;  %v4375_v37 = vpop.xlane.xlu1 %4374 }
0x1047   : > { %v4379_v12 = vmul.f32 0.0625, %v4375_v37  ;;  %v4372_v32 = vpop.xlane.xlu0 %4371 }
0x1048   : > { %7281 = vrsqrt.f32 %v4413_v51  ;;  %v4412_v46 = vadd.f32 1e-05, %v4404_v17  ;;  %v4378_v19 = vmul.f32 0.0625, %v4372_v32 }
0x1049   : > { %v4403_v54 = vmul.f32 %v4379_v12, %v4379_v12  ;;  %v4411_v48 = vsub.f32 %v9118_v41, %v4379_v12 }
0x104a   : > { %7283 = vrsqrt.f32 %v4412_v46  ;;  %v4395_v14 = vpop.xlane.xlu1 %4394  ;;  %v4402_v20 = vmul.f32 %v4378_v19, %v4378_v19  ;;  %v4410_v62 = vsub.f32 %v9115_v28, %v4378_v19 }
0x104b   : > { %v4399_v0 = vmul.f32 0.0625, %v4395_v14  ;;  %v4392_v7 = vpop.xlane.xlu0 %4391 }
0x104c   : > { %v4398_v6 = vmul.f32 0.0625, %v4392_v7 }
0x104d   : > { %v4407_v55 = vsub.f32 %v4399_v0, %v4403_v54 }
0x104e   : > { %v4406_v21 = vsub.f32 %v4398_v6, %v4402_v20 }
0x104f   : > { %v4415_v34 = vadd.f32 1e-05, %v4407_v55 }
0x1050   : > { %v4414_v49 = vadd.f32 1e-05, %v4406_v21 }
0x1051   : > { %7285 = vrsqrt.f32 %v4415_v34 }
0x1052   : > { %v7282_v4 = vpop.eup %7281  ;;  %7287 = vrsqrt.f32 %v4414_v49 }
0x1053   : > { %v4421_v11 = vmul.f32 %v7282_v4, %v4409_v36 }
0x1054   : > { %v7284_v57 = vpop.eup %7283 }
0x1055   : > { %v4420_v53 = vmul.f32 %v7284_v57, %v4408_v1 }
0x1057   : > { %v4424_v16 = vpack.c.bf16 %v4421_v11, %v4420_v53 }
0x1059   : > { %6044 = vmatprep.mubr.msk.bf16.mxu0 %vm3955_vm10, %v4424_v16 }
0x105b   : > { %v7286_v59 = vpop.eup %7285 }
0x105c   : > { %v7288_v24 = vpop.eup %7287  ;;  %v4423_v60 = vmul.f32 %v7286_v59, %v4411_v48 }
0x105d   : > { %v4422_v27 = vmul.f32 %v7288_v24, %v4410_v62 }
0x105f   : > { %v4425_v15 = vpack.c.bf16 %v4423_v60, %v4422_v27 }
0x1061   : > { %6045 = vmatmul.mubr.msk.bf16.vlgmr.msra.gmra.mrb[36].mxu0 %vm3955_vm10, %v4425_v15 }
0x1134   : > { %v6046_v10 = vpop.f32.mrb[36].mxu0 }
0x1135   : > { %v9144_v56 = vadd.f32 %v6046_v10, %v8973_v47  ;;  %v4481_v30 = vpop.f32.mrb[37].mxu0  ;;  %v7241_v47 = vld [vmem:[%s9366_s17 + $0x4] ss:$12 sps:$4 sm:$0xff]  }
0x1136   : > { %v9147_v42 = vadd.f32 %v4481_v30, %v8975_v35  ;;  %v6047_v26 = vpop.f32.mrb[38].mxu0  ;;  %4690 = vmatprep.mubr.bf16.mxu0 %v7241_v47  ;;  %v7242_v35 = vld [vmem:[%s9366_s17 + $0x8] ss:$12 sps:$4 sm:$0xff]  }
0x1137   : > { %v9150_v41 = vadd.f32 %v6047_v26, %v8977_v50  ;;  %v4484_v52 = vpop.f32.mrb[39].mxu0  ;;  %6052 = vmatprep.mubr.msk.bf16.mxu1 %vm3839_vm7, %v7242_v35 }
0x1138   : > { %v9153_v28 = vadd.f32 %v4484_v52, %v8979_v18 }
0x1139   : > { %v6848_v63 = vpack.i.bf16 %v9150_v41, %v9144_v56  ;;  %v4597_v45 = vpack.c.bf16 %v9150_v41, %v9144_v56 }
0x113a   : > { %v6843_v5 = vpack.i.bf16 %v9153_v28, %v9147_v42  ;;  %v4596_v9 = vpack.c.bf16 %v9153_v28, %v9147_v42 }
0x113b   : > { %6849 = vrot.lane.b32.xlu1 %v6848_v63, %s9551_s30 }
0x113c   : > { %6844 = vrot.lane.b32.xlu0 %v6843_v5, %s9551_s30 }
0x113f   : > { %6854 = vrot.lane.b32.xlu1 %v6843_v5, %s9552_s4 }
0x1140   : > { %6864 = vrot.lane.b32.xlu0 %v6843_v5, %s9541_s24 }
0x1143   : > { %6859 = vrot.lane.b32.xlu1 %v6848_v63, %s9552_s4 }
0x1144   : > { %6869 = vrot.lane.b32.xlu0 %v6848_v63, %s9541_s24 }
0x1147   : > { %6874 = vrot.lane.b32.xlu1 %v6843_v5, %s9548_s7 }
0x1148   : > { %6884 = vrot.lane.b32.xlu0 %v6843_v5, %s9537_s1 }
0x114b   : > { %6879 = vrot.lane.b32.xlu1 %v6848_v63, %s9548_s7 }
0x114c   : > { %6889 = vrot.lane.b32.xlu0 %v6848_v63, %s9537_s1 }
0x114f   : > { %6894 = vrot.lane.b32.xlu1 %v6843_v5, %s9549_s27 }
0x1150   : > { %6904 = vrot.lane.b32.xlu0 %v6843_v5, %s9547_s8 }
0x1153   : > { %6899 = vrot.lane.b32.xlu1 %v6848_v63, %s9549_s27 }
0x1154   : > { %6909 = vrot.lane.b32.xlu0 %v6848_v63, %s9547_s8 }
0x1157   : > { %6914 = vrot.lane.b32.xlu1 %v6843_v5, %s9550_s29 }
0x1158   : > { %6919 = vrot.lane.b32.xlu0 %v6848_v63, %s9550_s29 }
0x11ad   : > { %v6850_v50 = vpop.permute.xlu1 %6849 }
0x11ae   : > { %v6845_v18 = vpop.permute.xlu0 %6844  ;;  %v6852_v3 = vunpack.i.h.bf16 %v6850_v50  ;;  %v6851_v8 = vunpack.i.l.bf16 %v6850_v50 }
0x11af   : > { %v6847_v61 = vunpack.i.h.bf16 %v6845_v18  ;;  %v6846_v22 = vunpack.i.l.bf16 %v6845_v18 }
0x11b0   : > { %v4605_v13 = vpack.c.bf16 %v6852_v3, %v6851_v8 }
0x11b1   : > { %v4604_v40 = vpack.c.bf16 %v6847_v61, %v6846_v22  ;;  %v6855_v29 = vpop.permute.xlu1 %6854 }
0x11b2   : > { %v6865_v23 = vpop.permute.xlu0 %6864  ;;  %v6857_v43 = vunpack.i.h.bf16 %v6855_v29  ;;  %v6856_v39 = vunpack.i.l.bf16 %v6855_v29  ;;  %v7244_v29 = vld [vmem:[%s9366_s17 + $0x1c] ss:$12 sps:$4 sm:$0xff]  }
0x11b3   : > { %5879 = vmatprep.subr.bf16.mxu0 %v4604_v40  ;;  %v6867_v38 = vunpack.i.h.bf16 %v6865_v23  ;;  %v6866_v58 = vunpack.i.l.bf16 %v6865_v23  ;;  %v7239_v40 = vld [vmem:[%s9366_s17] ss:$12 sps:$4 sm:$0xff]  }
0x11b4   : > { %5880 = vmatpush3.bf16.msra.mxu0 %v4596_v9  ;;  %v4606_v31 = vpack.c.bf16 %v6857_v43, %v6856_v39  ;;  %v7243_v23 = vld [vmem:[%s9366_s17 + $0x20] ss:$12 sps:$4 sm:$0xff]   ;;  %v7246_v9 = vld [vmem:[%s9366_s17 + $0x18] ss:$12 sps:$4 sm:$0xff]  }
0x11b5   : > { %v6860_v2 = vpop.permute.xlu1 %6859  ;;  %5881 = vmatprep.subr.bf16.mxu0 %v4605_v13  ;;  %v4598_v17 = vpack.c.bf16 %v6867_v38, %v6866_v58 }
0x11b6   : > { %v6870_v25 = vpop.permute.xlu0 %6869  ;;  %v6862_v44 = vunpack.i.h.bf16 %v6860_v2  ;;  %v6861_v33 = vunpack.i.l.bf16 %v6860_v2 }
0x11b7   : > { %v6872_v37 = vunpack.i.h.bf16 %v6870_v25  ;;  %v6871_v12 = vunpack.i.l.bf16 %v6870_v25 }
0x11b8   : > { %5882 = vmatpush3.bf16.msra.mxu0 %v4597_v45  ;;  %v4607_v46 = vpack.c.bf16 %v6862_v44, %v6861_v33 }
0x11b9   : > { %v6875_v51 = vpop.permute.xlu1 %6874  ;;  %5883 = vmatprep.subr.bf16.mxu0 %v4606_v31  ;;  %v4599_v0 = vpack.c.bf16 %v6872_v37, %v6871_v12  ;;  %v5683_v31 = vld [vmem:[%s9367_s18] ss:$0 sm:$0xff] }
0x11ba   : > { %v6885_v32 = vpop.permute.xlu0 %6884  ;;  %v6877_v19 = vunpack.i.h.bf16 %v6875_v51  ;;  %v6876_v14 = vunpack.i.l.bf16 %v6875_v51 }
0x11bb   : > { %v6887_v7 = vunpack.i.h.bf16 %v6885_v32  ;;  %v6886_v20 = vunpack.i.l.bf16 %v6885_v32 }
0x11bc   : > { %5884 = vmatpush3.bf16.msra.mxu0 %v4598_v17  ;;  %v4608_v55 = vpack.c.bf16 %v6877_v19, %v6876_v14 }
0x11bd   : > { %v6880_v54 = vpop.permute.xlu1 %6879  ;;  %5885 = vmatprep.subr.bf16.mxu0 %v4607_v46  ;;  %v4600_v4 = vpack.c.bf16 %v6887_v7, %v6886_v20 }
0x11be   : > { %v6890_v6 = vpop.permute.xlu0 %6889  ;;  %v6882_v21 = vunpack.i.h.bf16 %v6880_v54  ;;  %v6881_v34 = vunpack.i.l.bf16 %v6880_v54 }
0x11bf   : > { %v6892_v1 = vunpack.i.h.bf16 %v6890_v6  ;;  %v6891_v36 = vunpack.i.l.bf16 %v6890_v6 }
0x11c0   : > { %5886 = vmatpush3.bf16.msra.mxu0 %v4599_v0  ;;  %v4609_v53 = vpack.c.bf16 %v6882_v21, %v6881_v34 }
0x11c1   : > { %v6895_v49 = vpop.permute.xlu1 %6894  ;;  %5887 = vmatprep.subr.bf16.mxu0 %v4608_v55  ;;  %v4601_v24 = vpack.c.bf16 %v6892_v1, %v6891_v36 }
0x11c2   : > { %v6905_v57 = vpop.permute.xlu0 %6904  ;;  %v6897_v11 = vunpack.i.h.bf16 %v6895_v49  ;;  %v6896_v16 = vunpack.i.l.bf16 %v6895_v49 }
0x11c3   : > { %v6907_v48 = vunpack.i.h.bf16 %v6905_v57  ;;  %v6906_v59 = vunpack.i.l.bf16 %v6905_v57 }
0x11c4   : > { %5888 = vmatpush3.bf16.msra.mxu0 %v4600_v4  ;;  %v4610_v27 = vpack.c.bf16 %v6897_v11, %v6896_v16 }
0x11c5   : > { %v6900_v62 = vpop.permute.xlu1 %6899  ;;  %5889 = vmatprep.subr.bf16.mxu0 %v4609_v53  ;;  %v4602_v30 = vpack.c.bf16 %v6907_v48, %v6906_v59 }
0x11c6   : > { %v6910_v60 = vpop.permute.xlu0 %6909  ;;  %v6902_v15 = vunpack.i.h.bf16 %v6900_v62  ;;  %v6901_v10 = vunpack.i.l.bf16 %v6900_v62  ;;  %v7247_v62 = vld [vmem:[%s9368_s19] sm:$0xff]  }
0x11c7   : > { %v6912_v52 = vunpack.i.h.bf16 %v6910_v60  ;;  %v6911_v63 = vunpack.i.l.bf16 %v6910_v60 }
0x11c8   : > { %5890 = vmatpush3.bf16.msra.mxu0 %v4601_v24  ;;  %v4611_v50 = vpack.c.bf16 %v6902_v15, %v6901_v10  ;;  %v7248_v24 = vld [vmem:[%s9368_s19 + $0x8] ss:$0 sps:$4 sm:$0x77]  }
0x11c9   : > { %v6915_v26 = vpop.permute.xlu1 %6914  ;;  %5891 = vmatprep.subr.bf16.mxu0 %v4610_v27  ;;  %v4603_v22 = vpack.c.bf16 %v6912_v52, %v6911_v63  ;;  %v4852_v60 = vsel %vm4040_vm12, %v7248_v24, 0 }
0x11ca   : > { %v6917_v5 = vunpack.i.h.bf16 %v6915_v26  ;;  %v6916_v47 = vunpack.i.l.bf16 %v6915_v26  ;;  %v6920_v35 = vpop.permute.xlu0 %6919 }
0x11cb   : > { %v6922_v18 = vunpack.i.h.bf16 %v6920_v35  ;;  %v6921_v3 = vunpack.i.l.bf16 %v6920_v35 }
0x11cc   : > { %v4612_v8 = vpack.c.bf16 %v6917_v5, %v6916_v47  ;;  %5892 = vmatpush3.bf16.msra.mxu0 %v4602_v30 }
0x11cd   : > { %v4613_v61 = vpack.c.bf16 %v6922_v18, %v6921_v3  ;;  %5893 = vmatprep.subr.bf16.mxu0 %v4611_v50 }
0x11ce   : > { %6048 = vmatprep.subr.bf16.mxu1 %v4612_v8 }
0x11cf   : > { %6049 = vmatpush3.bf16.msra.mxu1 %v4612_v8 }
0x11d0   : > { %5894 = vmatpush3.bf16.msra.mxu0 %v4603_v22  ;;  %6050 = vmatprep.subr.bf16.mxu1 %v4613_v61 }
0x11d3   : > { %4691 = vmatmul.mubr.bf16.vlgmr.msra.gmra.mrb[40].mxu0 %v7239_v40  ;;  %6051 = vmatpush3.bf16.msra.mxu1 %v4613_v61 }
0x11d4   : > { %4698 = vmatprep.mubr.bf16.mxu0 %v7244_v29  ;;  %6056 = vmatprep.subr.bf16.mxu1 %v7247_v62 }
0x11d6   : > { %6053 = vmatmul.mubr.msk.bf16.vlgmr.msra.gmra.mrb[48].mxu1 %vm3839_vm7, %v7243_v23 }
0x11d7   : > { %6057 = vmatpush3.bf16.msra.mxu1 %v7247_v62 }
0x11d8   : > { %6110 = vmatprep.subr.msk.bf16.mxu1 %vm4040_vm12, %v7248_v24 }
0x11db   : > { %4699 = vmatmul.mubr.bf16.gmra.mrb[44].mxu0 %v7246_v9  ;;  %6059 = vmatpush3.bf16.msra.mxu1 %v4852_v60 }
0x12a6   : > { %v5895_v13 = vpop.f32.mrb[40].mxu0 }
0x12a7   : > { %v5896_v43 = vpop.f32.mrb[41].mxu0 }
0x12a8   : > { %v5897_v39 = vadd.f32 %v5896_v43, %v5895_v13  ;;  %v5898_v2 = vpop.f32.mrb[42].mxu0 }
0x12a9   : > { %v5899_v38 = vpop.f32.mrb[43].mxu0  ;;  %v6054_v58 = vpop.f32.mrb[48].mxu1 }
0x12aa   : > { %v5900_v25 = vadd.f32 %v5899_v38, %v5898_v2  ;;  %v4741_v45 = vpop.f32.mrb[49].mxu1 }
0x12ab   : > { %v9202_v44 = vadd.f32 %v5897_v39, %v4741_v45  ;;  %v6055_v33 = vpop.f32.mrb[50].mxu1 }
0x12ac   : > { %v4744_v51 = vpop.f32.mrb[51].mxu1 }
0x12ad   : > { %v9204_v17 = vadd.f32 %v5900_v25, %v4744_v51  ;;  %v4763_v37 = vmul.f32 %v5683_v31, %v9202_v44 }
0x12ae   : > { %v5901_v12 = vpop.f32.mrb[44].mxu0 }
0x12af   : > { %v5902_v32 = vpop.f32.mrb[45].mxu0  ;;  %v4767_v46 = vsel %vm3955_vm10, %v4763_v37, 0.0  ;;  %v4764_v19 = vmul.f32 %v5683_v31, %v9204_v17  ;;  %v4783_v6 = vmul.f32 %v4763_v37, %v9202_v44 }
0x12b0   : > { %v5903_v14 = vadd.f32 %v5902_v32, %v5901_v12  ;;  %v5904_v54 = vpop.f32.mrb[46].mxu0  ;;  %4768 = vadd.xlane.f32.xlu1 %v4767_v46 }
0x12b1   : > { %v5905_v0 = vpop.f32.mrb[47].mxu0  ;;  %v4770_v7 = vsel %vm3955_vm10, %v4764_v19, 0.0  ;;  %v4784_v20 = vmul.f32 %v4764_v19, %v9204_v17  ;;  %v4787_v4 = vsel %vm3955_vm10, %v4783_v6, 0.0 }
0x12b2   : > { %v9212_v55 = vadd.f32 %v6054_v58, %v5903_v14  ;;  %v5906_v21 = vadd.f32 %v5905_v0, %v5904_v54  ;;  %4771 = vadd.xlane.f32.xlu0 %v4770_v7 }
0x12b3   : > { %v4790_v34 = vsel %vm3955_vm10, %v4784_v20, 0.0 }
0x12b4   : > { %v9215_v49 = vadd.f32 %v6055_v33, %v5906_v21  ;;  %4791 = vadd.xlane.f32.xlu1 %v4790_v34  ;;  %v4765_v1 = vmul.f32 %v5683_v31, %v9212_v55 }
0x12b6   : > { %4788 = vadd.xlane.f32.xlu0 %v4787_v4  ;;  %v4766_v36 = vmul.f32 %v5683_v31, %v9215_v49  ;;  %v4773_v11 = vsel %vm3955_vm10, %v4765_v1, 0.0  ;;  %v4785_v16 = vmul.f32 %v4765_v1, %v9212_v55 }
0x12b8   : > { %v4776_v57 = vsel %vm3955_vm10, %v4766_v36, 0.0  ;;  %v4786_v53 = vmul.f32 %v4766_v36, %v9215_v49  ;;  %v4793_v59 = vsel %vm3955_vm10, %v4785_v16, 0.0  ;;  %v7251_v16 = vld [vmem:[%s9369_s20 + $0x4] ss:$12 sps:$4 sm:$0xff]  }
0x12b9   : > { %4777 = vadd.xlane.f32.xlu1 %v4776_v57 }
0x12ba   : > { %4774 = vadd.xlane.f32.xlu0 %v4773_v11  ;;  %v4796_v48 = vsel %vm3955_vm10, %v4786_v53, 0.0 }
0x12bd   : > { %4797 = vadd.xlane.f32.xlu1 %v4796_v48  ;;  %v7252_v48 = vld [vmem:[%s9369_s20 + $0x8] ss:$12 sps:$4 sm:$0xff]  }
0x12be   : > { %4794 = vadd.xlane.f32.xlu0 %v4793_v59  ;;  %6068 = vmatprep.mubr.msk.bf16.mxu0 %vm3839_vm7, %v7252_v48 }
0x133d   : > { %v4769_v27 = vpop.xlane.xlu1 %4768 }
0x133e   : > { %v4779_v10 = vmul.f32 0.0625, %v4769_v27 }
0x133f   : > { %v4772_v15 = vpop.xlane.xlu0 %4771 }
0x1340   : > { %v4780_v30 = vmul.f32 0.0625, %v4772_v15  ;;  %v4803_v47 = vmul.f32 %v4779_v10, %v4779_v10  ;;  %v4811_v51 = vsub.f32 %v9202_v44, %v4779_v10 }
0x1341   : > { %v4792_v26 = vpop.xlane.xlu1 %4791 }
0x1342   : > { %v4804_v52 = vmul.f32 %v4780_v30, %v4780_v30  ;;  %v4800_v63 = vmul.f32 0.0625, %v4792_v26  ;;  %v4812_v31 = vsub.f32 %v9204_v17, %v4780_v30 }
0x1343   : > { %v4789_v5 = vpop.xlane.xlu0 %4788 }
0x1344   : > { %v4808_v35 = vsub.f32 %v4800_v63, %v4804_v52  ;;  %v4799_v50 = vmul.f32 0.0625, %v4789_v5 }
0x1346   : > { %v4816_v18 = vadd.f32 1e-05, %v4808_v35  ;;  %v4807_v3 = vsub.f32 %v4799_v50, %v4803_v47  ;;  %v4778_v8 = vpop.xlane.xlu1 %4777 }
0x1347   : > { %v4782_v61 = vmul.f32 0.0625, %v4778_v8  ;;  %v4775_v22 = vpop.xlane.xlu0 %4774 }
0x1348   : > { %7289 = vrsqrt.f32 %v4816_v18  ;;  %v4815_v40 = vadd.f32 1e-05, %v4807_v3  ;;  %v4781_v29 = vmul.f32 0.0625, %v4775_v22 }
0x1349   : > { %v4806_v9 = vmul.f32 %v4782_v61, %v4782_v61  ;;  %v4814_v54 = vsub.f32 %v9215_v49, %v4782_v61 }
0x134a   : > { %7291 = vrsqrt.f32 %v4815_v40  ;;  %v4798_v23 = vpop.xlane.xlu1 %4797  ;;  %v4805_v39 = vmul.f32 %v4781_v29, %v4781_v29  ;;  %v4813_v7 = vsub.f32 %v9212_v55, %v4781_v29 }
0x134b   : > { %v4802_v13 = vmul.f32 0.0625, %v4798_v23  ;;  %v4795_v43 = vpop.xlane.xlu0 %4794 }
0x134c   : > { %v4801_v2 = vmul.f32 0.0625, %v4795_v43 }
0x134d   : > { %v4810_v38 = vsub.f32 %v4802_v13, %v4806_v9 }
0x134e   : > { %v4809_v58 = vsub.f32 %v4801_v2, %v4805_v39 }
0x134f   : > { %v4818_v25 = vadd.f32 1e-05, %v4810_v38 }
0x1350   : > { %v4817_v45 = vadd.f32 1e-05, %v4809_v58 }
0x1351   : > { %7293 = vrsqrt.f32 %v4818_v25 }
0x1352   : > { %v7290_v33 = vpop.eup %7289  ;;  %7295 = vrsqrt.f32 %v4817_v45 }
0x1353   : > { %v4824_v37 = vmul.f32 %v7290_v33, %v4812_v31 }
0x1354   : > { %v7292_v12 = vpop.eup %7291 }
0x1355   : > { %v4823_v32 = vmul.f32 %v7292_v12, %v4811_v51  ;;  %v4828_v19 = vmax.f32 %v4824_v37, 0.0 }
0x1357   : > { %v4827_v46 = vmax.f32 %v4823_v32, 0.0 }
0x1359   : > { %v4831_v14 = vpack.c.bf16 %v4828_v19, %v4827_v46 }
0x135b   : > { %v7294_v0 = vpop.eup %7293  ;;  %6060 = vmatprep.mubr.msk.bf16.mxu1 %vm3955_vm10, %v4831_v14 }
0x135c   : > { %v7296_v20 = vpop.eup %7295  ;;  %v4826_v17 = vmul.f32 %v7294_v0, %v4814_v54 }
0x135d   : > { %v4825_v6 = vmul.f32 %v7296_v20, %v4813_v7 }
0x135e   : > { %v4830_v21 = vmax.f32 %v4826_v17, 0.0 }
0x135f   : > { %v4829_v34 = vmax.f32 %v4825_v6, 0.0 }
0x1361   : > { %v4832_v4 = vpack.c.bf16 %v4830_v21, %v4829_v34 }
0x1363   : > { %6061 = vmatmul.mubr.msk.bf16.vlgmr.msra.gmra.mrb[52].mxu1 %vm3955_vm10, %v4832_v4 }
0x1364   : > { %5097 = vmatprep.mubr.bf16.mxu1 %v7251_v16 }
0x1436   : > { %v6062_v44 = vpop.f32.mrb[52].mxu1 }
0x1437   : > { %v4888_v1 = vpop.f32.mrb[53].mxu1 }
0x1438   : > { %v6063_v36 = vpop.f32.mrb[54].mxu1 }
0x1439   : > { %v4891_v57 = vpop.f32.mrb[55].mxu1  ;;  %v6928_v53 = vpack.i.bf16 %v6063_v36, %v6062_v44  ;;  %v5004_v49 = vpack.c.bf16 %v6063_v36, %v6062_v44 }
0x143a   : > { %v6923_v11 = vpack.i.bf16 %v4891_v57, %v4888_v1  ;;  %v5003_v55 = vpack.c.bf16 %v4891_v57, %v4888_v1 }
0x143b   : > { %6929 = vrot.lane.b32.xlu1 %v6928_v53, %s9551_s30 }
0x143c   : > { %6924 = vrot.lane.b32.xlu0 %v6923_v11, %s9551_s30  ;;  %s737_s30 = scalar_lea.vmem %s9553_s5, %s5709_s9 }
0x143f   : > { %6934 = vrot.lane.b32.xlu1 %v6923_v11, %s9552_s4 }
0x1440   : > { %6944 = vrot.lane.b32.xlu0 %v6923_v11, %s9541_s24 }
0x1443   : > { %6939 = vrot.lane.b32.xlu1 %v6928_v53, %s9552_s4 }
0x1444   : > { %6949 = vrot.lane.b32.xlu0 %v6928_v53, %s9541_s24 }
0x1447   : > { %6954 = vrot.lane.b32.xlu1 %v6923_v11, %s9548_s7 }
0x1448   : > { %6964 = vrot.lane.b32.xlu0 %v6923_v11, %s9537_s1 }
0x144b   : > { %6959 = vrot.lane.b32.xlu1 %v6928_v53, %s9548_s7 }
0x144c   : > { %6969 = vrot.lane.b32.xlu0 %v6928_v53, %s9537_s1 }
0x144f   : > { %6974 = vrot.lane.b32.xlu1 %v6923_v11, %s9549_s27 }
0x1450   : > { %6984 = vrot.lane.b32.xlu0 %v6923_v11, %s9547_s8 }
0x1453   : > { %6979 = vrot.lane.b32.xlu1 %v6928_v53, %s9549_s27 }
0x1454   : > { %6989 = vrot.lane.b32.xlu0 %v6928_v53, %s9547_s8 }
0x1457   : > { %6994 = vrot.lane.b32.xlu1 %v6923_v11, %s9550_s29 }
0x1458   : > { %6999 = vrot.lane.b32.xlu0 %v6928_v53, %s9550_s29 }
0x14ad   : > { %v6930_v59 = vpop.permute.xlu1 %6929 }
0x14ae   : > { %v6925_v62 = vpop.permute.xlu0 %6924  ;;  %v6932_v24 = vunpack.i.h.bf16 %v6930_v59  ;;  %v6931_v60 = vunpack.i.l.bf16 %v6930_v59 }
0x14af   : > { %v6927_v27 = vunpack.i.h.bf16 %v6925_v62  ;;  %v6926_v15 = vunpack.i.l.bf16 %v6925_v62 }
0x14b0   : > { %v5012_v52 = vpack.c.bf16 %v6932_v24, %v6931_v60 }
0x14b1   : > { %v5011_v10 = vpack.c.bf16 %v6927_v27, %v6926_v15  ;;  %v6935_v30 = vpop.permute.xlu1 %6934  ;;  %v7249_v27 = vld [vmem:[%s9369_s20] ss:$12 sps:$4 sm:$0xff]   ;;  %v7254_v15 = vld [vmem:[%s9369_s20 + $0x1c] ss:$12 sps:$4 sm:$0xff]  }
0x14b2   : > { %v6945_v26 = vpop.permute.xlu0 %6944  ;;  %v6937_v63 = vunpack.i.h.bf16 %v6935_v30  ;;  %v6936_v5 = vunpack.i.l.bf16 %v6935_v30  ;;  %v7256_v30 = vld [vmem:[%s9369_s20 + $0x18] ss:$12 sps:$4 sm:$0xff]  }
0x14b3   : > { %5915 = vmatprep.subr.bf16.mxu1 %v5011_v10  ;;  %v6947_v35 = vunpack.i.h.bf16 %v6945_v26  ;;  %v6946_v50 = vunpack.i.l.bf16 %v6945_v26  ;;  %v7253_v10 = vld [vmem:[%s9369_s20 + $0x20] ss:$12 sps:$4 sm:$0xff]  }
0x14b4   : > { %5916 = vmatpush3.bf16.msra.mxu1 %v5003_v55  ;;  %v5013_v3 = vpack.c.bf16 %v6937_v63, %v6936_v5 }
0x14b5   : > { %v6940_v47 = vpop.permute.xlu1 %6939  ;;  %5917 = vmatprep.subr.bf16.mxu1 %v5012_v52  ;;  %v5005_v40 = vpack.c.bf16 %v6947_v35, %v6946_v50 }
0x14b6   : > { %v6950_v18 = vpop.permute.xlu0 %6949  ;;  %v6942_v8 = vunpack.i.h.bf16 %v6940_v47  ;;  %v6941_v61 = vunpack.i.l.bf16 %v6940_v47 }
0x14b7   : > { %v6952_v29 = vunpack.i.h.bf16 %v6950_v18  ;;  %v6951_v23 = vunpack.i.l.bf16 %v6950_v18 }
0x14b8   : > { %5918 = vmatpush3.bf16.msra.mxu1 %v5004_v49  ;;  %v5014_v13 = vpack.c.bf16 %v6942_v8, %v6941_v61 }
0x14b9   : > { %v6955_v22 = vpop.permute.xlu1 %6954  ;;  %5919 = vmatprep.subr.bf16.mxu1 %v5013_v3  ;;  %v5006_v38 = vpack.c.bf16 %v6952_v29, %v6951_v23  ;;  %v5696_v3 = vld [vmem:[%s9370_s21] ss:$0 sm:$0xff] }
0x14ba   : > { %v6965_v9 = vpop.permute.xlu0 %6964  ;;  %v6957_v43 = vunpack.i.h.bf16 %v6955_v22  ;;  %v6956_v39 = vunpack.i.l.bf16 %v6955_v22 }
0x14bb   : > { %v6967_v58 = vunpack.i.h.bf16 %v6965_v9  ;;  %v6966_v25 = vunpack.i.l.bf16 %v6965_v9 }
0x14bc   : > { %5920 = vmatpush3.bf16.msra.mxu1 %v5005_v40  ;;  %v5015_v31 = vpack.c.bf16 %v6957_v43, %v6956_v39 }
0x14bd   : > { %v6960_v2 = vpop.permute.xlu1 %6959  ;;  %5921 = vmatprep.subr.bf16.mxu1 %v5014_v13  ;;  %v5007_v12 = vpack.c.bf16 %v6967_v58, %v6966_v25 }
0x14be   : > { %v6970_v45 = vpop.permute.xlu0 %6969  ;;  %v6962_v33 = vunpack.i.h.bf16 %v6960_v2  ;;  %v6961_v51 = vunpack.i.l.bf16 %v6960_v2 }
0x14bf   : > { %v6972_v32 = vunpack.i.h.bf16 %v6970_v45  ;;  %v6971_v46 = vunpack.i.l.bf16 %v6970_v45 }
0x14c0   : > { %5922 = vmatpush3.bf16.msra.mxu1 %v5006_v38  ;;  %v5016_v14 = vpack.c.bf16 %v6962_v33, %v6961_v51 }
0x14c1   : > { %v6975_v37 = vpop.permute.xlu1 %6974  ;;  %5923 = vmatprep.subr.bf16.mxu1 %v5015_v31  ;;  %v5008_v6 = vpack.c.bf16 %v6972_v32, %v6971_v46 }
0x14c2   : > { %v6985_v19 = vpop.permute.xlu0 %6984  ;;  %v6977_v54 = vunpack.i.h.bf16 %v6975_v37  ;;  %v6976_v0 = vunpack.i.l.bf16 %v6975_v37 }
0x14c3   : > { %v6987_v7 = vunpack.i.h.bf16 %v6985_v19  ;;  %v6986_v20 = vunpack.i.l.bf16 %v6985_v19 }
0x14c4   : > { %5924 = vmatpush3.bf16.msra.mxu1 %v5007_v12  ;;  %v5017_v34 = vpack.c.bf16 %v6977_v54, %v6976_v0 }
0x14c5   : > { %v6980_v17 = vpop.permute.xlu1 %6979  ;;  %5925 = vmatprep.subr.bf16.mxu1 %v5016_v14  ;;  %v5009_v1 = vpack.c.bf16 %v6987_v7, %v6986_v20 }
0x14c6   : > { %v6990_v21 = vpop.permute.xlu0 %6989  ;;  %v6982_v4 = vunpack.i.h.bf16 %v6980_v17  ;;  %v6981_v44 = vunpack.i.l.bf16 %v6980_v17  ;;  %v7257_v17 = vld [vmem:[%s9371_s22] sm:$0xff]  }
0x14c7   : > { %v6992_v57 = vunpack.i.h.bf16 %v6990_v21  ;;  %v6991_v53 = vunpack.i.l.bf16 %v6990_v21 }
0x14c8   : > { %5926 = vmatpush3.bf16.msra.mxu1 %v5008_v6  ;;  %v5018_v16 = vpack.c.bf16 %v6982_v4, %v6981_v44  ;;  %v7258_v6 = vld [vmem:[%s9371_s22 + $0x8] ss:$0 sps:$4 sm:$0x77]  }
0x14c9   : > { %v6995_v36 = vpop.permute.xlu1 %6994  ;;  %5927 = vmatprep.subr.bf16.mxu1 %v5017_v34  ;;  %v5010_v60 = vpack.c.bf16 %v6992_v57, %v6991_v53  ;;  %v5255_v21 = vsel %vm4040_vm12, %v7258_v6, 0  ;;  %v5306_v34 = vld [vmem:[%s9372_s23] sm:$0xff]  ;;  %v5307_v4 = vld [vmem:[%s9372_s23 + $0x8] sm:$0xff] }
0x14ca   : > { %v6997_v11 = vunpack.i.h.bf16 %v6995_v36  ;;  %v6996_v55 = vunpack.i.l.bf16 %v6995_v36  ;;  %v7000_v49 = vpop.permute.xlu0 %6999  ;;  %v6096_v44 = vpack.c.bf16 %v5307_v4, %v5306_v34 }
0x14cb   : > { %v7002_v48 = vunpack.i.h.bf16 %v7000_v49  ;;  %v7001_v59 = vunpack.i.l.bf16 %v7000_v49 }
0x14cc   : > { %v5019_v62 = vpack.c.bf16 %v6997_v11, %v6996_v55  ;;  %5928 = vmatpush3.bf16.msra.mxu1 %v5009_v1 }
0x14cd   : > { %v5020_v24 = vpack.c.bf16 %v7002_v48, %v7001_v59  ;;  %5929 = vmatprep.subr.bf16.mxu1 %v5018_v16 }
0x14ce   : > { %6064 = vmatprep.subr.bf16.mxu0 %v5019_v62 }
0x14cf   : > { %6065 = vmatpush3.bf16.msra.mxu0 %v5019_v62 }
0x14d0   : > { %5930 = vmatpush3.bf16.msra.mxu1 %v5010_v60  ;;  %6066 = vmatprep.subr.bf16.mxu0 %v5020_v24 }
0x14d3   : > { %5098 = vmatmul.mubr.bf16.vlgmr.msra.gmra.mrb[56].mxu1 %v7249_v27  ;;  %6067 = vmatpush3.bf16.msra.mxu0 %v5020_v24 }
0x14d4   : > { %5105 = vmatprep.mubr.bf16.mxu1 %v7254_v15  ;;  %6072 = vmatprep.subr.bf16.mxu0 %v7257_v17 }
0x14d6   : > { %6069 = vmatmul.mubr.msk.bf16.vlgmr.msra.gmra.mrb[48].mxu0 %vm3839_vm7, %v7253_v10 }
0x14d7   : > { %6073 = vmatpush3.bf16.msra.mxu0 %v7257_v17 }
0x14d8   : > { %6111 = vmatprep.subr.msk.bf16.mxu0 %vm4040_vm12, %v7258_v6 }
0x14db   : > { %5106 = vmatmul.mubr.bf16.gmra.mrb[60].mxu1 %v7256_v30  ;;  %6075 = vmatpush3.bf16.msra.mxu0 %v5255_v21 }
0x14dc   : > { %6097 = vmatprep.subr.bf16.mxu0 %v6096_v44 }
0x15a6   : > { %v5931_v26 = vpop.f32.mrb[56].mxu1 }
0x15a7   : > { %v5932_v52 = vpop.f32.mrb[57].mxu1 }
0x15a8   : > { %v5933_v63 = vadd.f32 %v5932_v52, %v5931_v26  ;;  %v5934_v5 = vpop.f32.mrb[58].mxu1 }
0x15a9   : > { %v6070_v47 = vpop.f32.mrb[48].mxu0  ;;  %v5935_v35 = vpop.f32.mrb[59].mxu1 }
0x15aa   : > { %v5936_v50 = vadd.f32 %v5935_v35, %v5934_v5  ;;  %v5148_v18 = vpop.f32.mrb[49].mxu0 }
0x15ab   : > { %v9279_v8 = vadd.f32 %v5933_v63, %v5148_v18  ;;  %v6071_v61 = vpop.f32.mrb[50].mxu0 }
0x15ac   : > { %v5151_v22 = vpop.f32.mrb[51].mxu0 }
0x15ad   : > { %v9281_v40 = vadd.f32 %v5936_v50, %v5151_v22  ;;  %v5170_v29 = vmul.f32 %v5696_v3, %v9279_v8 }
0x15ae   : > { %v5937_v23 = vpop.f32.mrb[60].mxu1 }
0x15af   : > { %v5938_v9 = vpop.f32.mrb[61].mxu1  ;;  %v5174_v13 = vsel %vm3955_vm10, %v5170_v29, 0.0  ;;  %v5171_v43 = vmul.f32 %v5696_v3, %v9281_v40  ;;  %v5190_v45 = vmul.f32 %v5170_v29, %v9279_v8 }
0x15b0   : > { %v5939_v39 = vadd.f32 %v5938_v9, %v5937_v23  ;;  %v5940_v2 = vpop.f32.mrb[62].mxu1  ;;  %5175 = vadd.xlane.f32.xlu1 %v5174_v13 }
0x15b1   : > { %v5941_v38 = vpop.f32.mrb[63].mxu1  ;;  %v5177_v58 = vsel %vm3955_vm10, %v5171_v43, 0.0  ;;  %v5191_v25 = vmul.f32 %v5171_v43, %v9281_v40  ;;  %v5194_v12 = vsel %vm3955_vm10, %v5190_v45, 0.0 }
0x15b2   : > { %v9289_v31 = vadd.f32 %v6070_v47, %v5939_v39  ;;  %v5942_v33 = vadd.f32 %v5941_v38, %v5940_v2  ;;  %5178 = vadd.xlane.f32.xlu0 %v5177_v58 }
0x15b3   : > { %v5197_v51 = vsel %vm3955_vm10, %v5191_v25, 0.0 }
0x15b4   : > { %v9292_v37 = vadd.f32 %v6071_v61, %v5942_v33  ;;  %5198 = vadd.xlane.f32.xlu1 %v5197_v51  ;;  %v5172_v32 = vmul.f32 %v5696_v3, %v9289_v31 }
0x15b6   : > { %5195 = vadd.xlane.f32.xlu0 %v5194_v12  ;;  %v5173_v46 = vmul.f32 %v5696_v3, %v9292_v37  ;;  %v5180_v54 = vsel %vm3955_vm10, %v5172_v32, 0.0  ;;  %v5192_v0 = vmul.f32 %v5172_v32, %v9289_v31 }
0x15b8   : > { %v5183_v19 = vsel %vm3955_vm10, %v5173_v46, 0.0  ;;  %v5193_v14 = vmul.f32 %v5173_v46, %v9292_v37  ;;  %v5200_v20 = vsel %vm3955_vm10, %v5192_v0, 0.0 }
0x15b9   : > { %5184 = vadd.xlane.f32.xlu1 %v5183_v19 }
0x15ba   : > { %5181 = vadd.xlane.f32.xlu0 %v5180_v54  ;;  %v5203_v7 = vsel %vm3955_vm10, %v5193_v14, 0.0 }
0x15bd   : > { %5204 = vadd.xlane.f32.xlu1 %v5203_v7 }
0x15be   : > { %5201 = vadd.xlane.f32.xlu0 %v5200_v20 }
0x163d   : > { %v5176_v1 = vpop.xlane.xlu1 %5175 }
0x163e   : > { %v5186_v57 = vmul.f32 0.0625, %v5176_v1 }
0x163f   : > { %v5179_v36 = vpop.xlane.xlu0 %5178 }
0x1640   : > { %v5187_v53 = vmul.f32 0.0625, %v5179_v36  ;;  %v5210_v48 = vmul.f32 %v5186_v57, %v5186_v57  ;;  %v5218_v23 = vsub.f32 %v9279_v8, %v5186_v57  ;;  %v5308_v8 = vld [vmem:[%s9372_s23 + $0x10] sm:$0xff] }
0x1641   : > { %v5199_v11 = vpop.xlane.xlu1 %5198 }
0x1642   : > { %v5211_v55 = vmul.f32 %v5187_v53, %v5187_v53  ;;  %v5207_v49 = vmul.f32 0.0625, %v5199_v11  ;;  %v5219_v9 = vsub.f32 %v9281_v40, %v5187_v53  ;;  %v5309_v40 = vld [vmem:[%s9372_s23 + $0x18] sm:$0xff] }
0x1643   : > { %v5196_v16 = vpop.xlane.xlu0 %5195  ;;  %v6100_v32 = vpack.c.bf16 %v5309_v40, %v5308_v8 }
0x1644   : > { %v5215_v59 = vsub.f32 %v5207_v49, %v5211_v55  ;;  %v5206_v62 = vmul.f32 0.0625, %v5196_v16 }
0x1646   : > { %v5223_v24 = vadd.f32 1e-05, %v5215_v59  ;;  %v5214_v60 = vsub.f32 %v5206_v62, %v5210_v48  ;;  %v5185_v27 = vpop.xlane.xlu1 %5184 }
0x1647   : > { %v5189_v15 = vmul.f32 0.0625, %v5185_v27  ;;  %v5182_v10 = vpop.xlane.xlu0 %5181 }
0x1648   : > { %7297 = vrsqrt.f32 %v5223_v24  ;;  %v5222_v30 = vadd.f32 1e-05, %v5214_v60  ;;  %v5188_v26 = vmul.f32 0.0625, %v5182_v10 }
0x1649   : > { %v5213_v63 = vmul.f32 %v5189_v15, %v5189_v15  ;;  %v5221_v38 = vsub.f32 %v9292_v37, %v5189_v15 }
0x164a   : > { %7299 = vrsqrt.f32 %v5222_v30  ;;  %v5205_v52 = vpop.xlane.xlu1 %5204  ;;  %v5212_v35 = vmul.f32 %v5188_v26, %v5188_v26  ;;  %v5220_v25 = vsub.f32 %v9289_v31, %v5188_v26  ;;  %v5310_v31 = vld [vmem:[%s9372_s23 + $0x20] sm:$0xf] }
0x164b   : > { %v5209_v5 = vmul.f32 0.0625, %v5205_v52  ;;  %v5202_v47 = vpop.xlane.xlu0 %5201 }
0x164c   : > { %v5208_v50 = vmul.f32 0.0625, %v5202_v47 }
0x164d   : > { %v5217_v18 = vsub.f32 %v5209_v5, %v5213_v63 }
0x164e   : > { %v5216_v3 = vsub.f32 %v5208_v50, %v5212_v35 }
0x164f   : > { %v5225_v61 = vadd.f32 1e-05, %v5217_v18 }
0x1650   : > { %v5224_v22 = vadd.f32 1e-05, %v5216_v3 }
0x1651   : > { %7301 = vrsqrt.f32 %v5225_v61 }
0x1652   : > { %v7298_v29 = vpop.eup %7297  ;;  %7303 = vrsqrt.f32 %v5224_v22 }
0x1653   : > { %v5231_v39 = vmul.f32 %v7298_v29, %v5219_v9 }
0x1654   : > { %v7300_v13 = vpop.eup %7299 }
0x1655   : > { %v5230_v43 = vmul.f32 %v7300_v13, %v5218_v23 }
0x1657   : > { %v5234_v2 = vpack.c.bf16 %v5231_v39, %v5230_v43 }
0x1659   : > { %6076 = vmatprep.mubr.msk.bf16.mxu0 %vm3955_vm10, %v5234_v2 }
0x165b   : > { %v7302_v58 = vpop.eup %7301 }
0x165c   : > { %v7304_v45 = vpop.eup %7303  ;;  %v5233_v33 = vmul.f32 %v7302_v58, %v5221_v38 }
0x165d   : > { %v5232_v51 = vmul.f32 %v7304_v45, %v5220_v25 }
0x165f   : > { %v5235_v12 = vpack.c.bf16 %v5233_v33, %v5232_v51 }
0x1661   : > { %6077 = vmatmul.mubr.msk.bf16.vlgmr.msra.gmra.mrb[52].mxu0 %vm3955_vm10, %v5235_v12 }
0x1662   : > { %6099 = vmatpush3.bf16.msra.mxu0 %v6096_v44 }
0x1663   : > { %6101 = vmatprep.subr.bf16.mxu0 %v6100_v32 }
0x1666   : > { %6103 = vmatpush3.bf16.msra.mxu0 %v6100_v32 }
0x1667   : > { %6088 = vmatprep.subr.msk.mxu0 %vm1405_vm0, %v5310_v31 }
0x166a   : > { %6089 = vmatpush3.msk.msra.mxu0 %vm1405_vm0, %v5310_v31  ;;  %vm5411_vm0 = vcmask 130048  }
0x1734   : > { %v6078_v37 = vpop.f32.mrb[52].mxu0 }
0x1735   : > { %v5291_v46 = vpop.f32.mrb[53].mxu0  ;;  %v5300_v7 = vadd.f32 %v6078_v37, %v9144_v56 }
0x1736   : > { %v5292_v19 = vadd.f32 %v5291_v46, %v9147_v42  ;;  %v6079_v14 = vpop.f32.mrb[54].mxu0 }
0x1737   : > { %v5294_v54 = vpop.f32.mrb[55].mxu0  ;;  %v5303_v20 = vadd.f32 %v6079_v14, %v9150_v41 }
0x1738   : > { %v5295_v0 = vadd.f32 %v5294_v54, %v9153_v28  ;;  %6090 = vmatprep.mubr.msk.f32.mxu0 %vm1861_vm3, %v5292_v19 }
0x173a   : > { %6091 = vmatmul.mubr.msk.f32.vlgmr.msra.gmra.mrb[56].mxu0 %vm1861_vm3, %v5295_v0 }
0x173b   : > { %6093 = vmatprep.mubr.msk.f32.mxu0 %vm1861_vm3, %v5300_v7 }
0x173e   : > { %6094 = vmatmul.mubr.msk.f32.gmra.mrb[58].mxu0 %vm1861_vm3, %v5303_v20 }
0x180d   : > { %v6092_v42 = vpop.f32.mrb[56].mxu0 }
0x180e   : > { %5413 = vst.msk [vmem:[%s737_s30 + $0x8] sm:$0xff] %vm5411_vm0, %v6092_v42  ;;  %v5392_v28 = vpop.f32.mrb[57].mxu0 }
0x180f   : > { %5412 = vst.msk [vmem:[%s737_s30] sm:$0xff] %vm5411_vm0, %v5392_v28 }
0x1811   : > { %v6095_v17 = vpop.f32.mrb[58].mxu0 }
0x1812   : > { %5415 = vst.msk [vmem:[%s737_s30 + $0x18] sm:$0xff] %vm5411_vm0, %v6095_v17  ;;  %v5402_v56 = vpop.f32.mrb[59].mxu0 }
0x1813   : > { %5414 = vst.msk [vmem:[%s737_s30 + $0x10] sm:$0xff] %vm5411_vm0, %v5402_v56 }
0x1814 PF: > { %s9554_s2 = sld [smem:[#allocation2_spill]] }
0x181a   : > { %s34_s5 = sadd.s32 1, %s9554_s2  }
0x181b   : > { %p31_p4 = scmp.ge.s32.totalorder %s34_s5, 4  }
0x181d   :  { %33 = sbr.rel (!%p31_p4) target bundleno = 12 (0xc), region = 146 }

</bundles_post_ra>
